<compile_context>
chip_gen: v6e
topology: v6e:2x2x1
jax: 0.10.0
libtpu: 0.0.40
codegen_flags: <defaults>
</compile_context>

<pallas_src>
import functools

import numpy as np
import jax
import jax.numpy as jnp
from jax.experimental import pallas as pl
from jax.experimental.pallas import tpu as pltpu


# -----------------------------------------------------------------------------
# DARTS_V2 normal genotype (reduction=False, reduction_prev=False)
# -----------------------------------------------------------------------------
NORMAL = [
    ("sep_conv_3x3", 0), ("sep_conv_3x3", 1),   # node 2 = op(s0) + op(s1)
    ("sep_conv_3x3", 0), ("sep_conv_3x3", 1),   # node 3 = op(s0) + op(s1)
    ("sep_conv_3x3", 1), ("skip_connect", 0),   # node 4 = op(s1) + s0
    ("skip_connect", 0), ("dil_conv_3x3", 2),   # node 5 = s0 + op(node2)
]
NORMAL_CONCAT = [2, 3, 4, 5]
STEPS = len(NORMAL) // 2


# -----------------------------------------------------------------------------
# Fused cell kernel (DARTS_V2 normal wiring hard-coded)
# -----------------------------------------------------------------------------
def _cell_kernel(x0_ref, x1_ref, w0_ref, w1_ref, a01_ref, a11_ref, a2_ref,
                 adil_ref, bias_ref, o_ref, *, lanes, rows_per_img):
    f32, bf16 = jnp.float32, jnp.bfloat16
    L, H = lanes, rows_per_img
    M = x0_ref.shape[0]                      # IMGS_PER_BLOCK * H rows

    bias = bias_ref[...]                     # (13, L) f32, lane-tiled BN biases

    def b(j):                                # folded-BN bias epilogue (f32 VPU)
        return bias[j:j + 1, :]

    def mxu(lhs_bf16, rhs):                  # bf16 MXU matmul, f32 accumulate
        return jnp.dot(lhs_bf16, rhs, preferred_element_type=f32)

    # Per-image row index: with many images per block, the conv's zero padding
    # along H must be an explicit per-image mask (not the block edge).
    row = jax.lax.broadcasted_iota(jnp.int32, (M, L), 0)
    row = (row & (H - 1)) if (H & (H - 1)) == 0 else (row % H)
    masks = {d: (row >= d, row < H - d) for d in (1, 2)}

    def shift_rows(x, dh):                   # out[r] = x[r + dh], block-edge zero fill
        z = jnp.zeros((abs(dh), x.shape[1]), x.dtype)
        if dh > 0:
            return jnp.concatenate([x[dh:, :], z], axis=0)
        return jnp.concatenate([z, x[:dh, :]], axis=0)

    def dw_lhs(x, d):
        """ReLU(x) -> (M, 3L) bf16 LHS whose three column blocks are the three
        depthwise kernel rows x[r-d], x[r], x[r+d], zero padded per image."""
        rx = jnp.maximum(x, 0.0)
        up_ok, dn_ok = masks[d]
        up = jnp.where(up_ok, shift_rows(rx, -d), 0.0)   # x[r-d]
        dn = jnp.where(dn_ok, shift_rows(rx, d), 0.0)    # x[r+d]
        return jnp.concatenate([up, rx, dn], axis=1).astype(bf16)

    # --- preprocess: ReLUConvBN(Cin, C, 1, 1, 0); BN scale folded into weights
    s0 = mxu(jnp.maximum(x0_ref[...], 0.0).astype(bf16), w0_ref[...]) + b(0)
    s1 = mxu(jnp.maximum(x1_ref[...], 0.0).astype(bf16), w1_ref[...]) + b(1)

    # --- sep_conv stage 1, N-concatenated over edges that share an input
    t02 = mxu(dw_lhs(s0, 1), a01_ref[...])   # edges 0,2   -> (M, 2L)
    t134 = mxu(dw_lhs(s1, 1), a11_ref[...])  # edges 1,3,4 -> (M, 3L)
    t0 = t02[:, :L] + b(2)
    t2 = t02[:, L:] + b(3)
    t1 = t134[:, :L] + b(4)
    t3 = t134[:, L:2 * L] + b(5)
    t4 = t134[:, 2 * L:] + b(6)

    # --- sep_conv stage 2 (one K=3L matmul per edge); nodes stored as ready
    h0 = mxu(dw_lhs(t0, 1), a2_ref[0]) + b(7)
    h1 = mxu(dw_lhs(t1, 1), a2_ref[1]) + b(8)
    n2 = h0 + h1                              # node 2 (also feeds dil_conv)
    o_ref[:, pl.ds(0 * L, L)] = n2

    h2 = mxu(dw_lhs(t2, 1), a2_ref[2]) + b(9)
    h3 = mxu(dw_lhs(t3, 1), a2_ref[3]) + b(10)
    o_ref[:, pl.ds(1 * L, L)] = h2 + h3       # node 3

    h4 = mxu(dw_lhs(t4, 1), a2_ref[4]) + b(11)
    o_ref[:, pl.ds(2 * L, L)] = h4 + s0       # node 4 = sep(s1) + skip(s0)

    # --- dil_conv_3x3 (dilation 2) on node 2; node 5 = skip(s0) + dil(node2)
    h7 = mxu(dw_lhs(n2, 2), adil_ref[...]) + b(12)
    o_ref[:, pl.ds(3 * L, L)] = s0 + h7       # node 5


# -----------------------------------------------------------------------------
# One-time parameter preparation (hoisted out of the hot path)
# -----------------------------------------------------------------------------
def _stage_matrices(dw, pw, w_spatial, dilation):
    """Fold (depthwise 3x3) o (pointwise 1x1) into 3 block-banded
    (W*Cin, W*Cout) matrices, one per depthwise kernel row kh.  Both convs are
    linear with nothing in between, so the composition is exact."""
    dw = np.asarray(dw, np.float32)            # (3, 3, C)   [kh, kw, c]
    pw = np.asarray(pw, np.float32)            # (C, Cout)
    cin, cout = pw.shape
    mats = []
    for kh in range(3):
        a = np.zeros((w_spatial * cin, w_spatial * cout), np.float32)
        for kw in range(3):
            blk = dw[kh, kw, :][:, None] * pw  # (C, Cout)
            off = (kw - 1) * dilation
            for wo in range(w_spatial):
                wi = wo + off
                if 0 <= wi < w_spatial:        # zero padding along W is implicit
                    a[wi * cin:(wi + 1) * cin, wo * cout:(wo + 1) * cout] += blk
        mats.append(a)
    return mats


def prepare_cell(params, C, W):
    """Precompute, in f32 then cast to bf16 for the MXU:
      - block-diagonal 1x1 preprocess weights,
      - K-concatenated (3L, L) dw+pw stage matrices (3 depthwise rows stacked
        along K so each stage is one matmul),
      - N-concatenation of stage-1 matrices of sep_convs that share an input
        (edges 0&2 read state0, edges 1,3&4 read state1),
      - BN scale folded into the weight columns; biases kept as (13, L) f32."""
    ops = params["ops"]

    def lane_tile(v):                  # (C,) -> (W*C,)   (lane order is w-major)
        return np.tile(np.asarray(v, np.float32), W)

    def block_diag_scaled(w, scale):   # (Cin, Cout) -> (W*Cin, W*Cout), scale folded
        a = np.kron(np.eye(W, dtype=np.float32), np.asarray(w, np.float32))
        return a * lane_tile(scale)[None, :]

    def stage_matrix(dw, pw, scale, d):
        mats = _stage_matrices(dw, pw, W, d)                 # 3 x (W*C, W*C)
        return np.concatenate(mats, axis=0) * lane_tile(scale)[None, :]   # (3L, L)

    A01 = np.concatenate(
        [stage_matrix(ops[0]["dw1"], ops[0]["pw1"], ops[0]["scale1"], 1),
         stage_matrix(ops[2]["dw1"], ops[2]["pw1"], ops[2]["scale1"], 1)], axis=1)
    A11 = np.concatenate(
        [stage_matrix(ops[1]["dw1"], ops[1]["pw1"], ops[1]["scale1"], 1),
         stage_matrix(ops[3]["dw1"], ops[3]["pw1"], ops[3]["scale1"], 1),
         stage_matrix(ops[4]["dw1"], ops[4]["pw1"], ops[4]["scale1"], 1)], axis=1)
    A2 = np.stack([stage_matrix(ops[k]["dw2"], ops[k]["pw2"], ops[k]["scale2"], 1)
                   for k in (0, 1, 2, 3, 4)])
    Adil = stage_matrix(ops[7]["dw"], ops[7]["pw"], ops[7]["scale"], 2)

    bias = np.stack([
        lane_tile(params["pre0"]["bias"]), lane_tile(params["pre1"]["bias"]),
        lane_tile(ops[0]["bias1"]), lane_tile(ops[2]["bias1"]),
        lane_tile(ops[1]["bias1"]), lane_tile(ops[3]["bias1"]), lane_tile(ops[4]["bias1"]),
        lane_tile(ops[0]["bias2"]), lane_tile(ops[1]["bias2"]), lane_tile(ops[2]["bias2"]),
        lane_tile(ops[3]["bias2"]), lane_tile(ops[4]["bias2"]),
        lane_tile(ops[7]["bias"]),
    ])

    return {
        "C": C,
        "w0": jnp.asarray(block_diag_scaled(params["pre0"]["w"], params["pre0"]["scale"]),
                          jnp.bfloat16),
        "w1": jnp.asarray(block_diag_scaled(params["pre1"]["w"], params["pre1"]["scale"]),
                          jnp.bfloat16),
        "A01": jnp.asarray(A01, jnp.bfloat16),
        "A11": jnp.asarray(A11, jnp.bfloat16),
        "A2": jnp.asarray(A2, jnp.bfloat16),
        "Adil": jnp.asarray(Adil, jnp.bfloat16),
        "bias": jnp.asarray(bias, jnp.float32),
    }


# -----------------------------------------------------------------------------
# Cell forward (one fused pallas_call)
# -----------------------------------------------------------------------------
def cell_forward(s0_nchw, s1_nchw, prep, drop_prob=0.0, imgs_per_block=8):
    """Cell.forward(s0, s1, drop_prob) in eval mode."""
    # TODO(synk): training-mode drop_path (per-sample Bernoulli scaling) is not
    # implemented; eval-mode forward only.
    del drop_prob
    N, C0, H, W = s0_nchw.shape
    _, C1, _, _ = s1_nchw.shape
    C = prep["C"]
    L, L0, L1 = W * C, W * C0, W * C1
    n_cat = 4

    # Largest divisor of N (<= target) whose row count is sublane aligned.
    ipb = 0
    for k in range(1, min(N, imgs_per_block) + 1):
        if N % k == 0 and (k * H) % 8 == 0:
            ipb = k
    if ipb == 0:
        ipb = N                      # whole batch in one block (full-dim block)
    M = ipb * H

    # NCHW -> lane-dense (N*H, W*C): channels-last with W and C merged on lanes.
    x0 = jnp.transpose(s0_nchw, (0, 2, 3, 1)).reshape(N * H, L0)
    x1 = jnp.transpose(s1_nchw, (0, 2, 3, 1)).reshape(N * H, L1)

    kernel = functools.partial(_cell_kernel, lanes=L, rows_per_img=H)

    # 11 stage matmuls (K = 3L) + 2 preprocess matmuls per output row.
    flops = int(2 * N * H * (L0 * L + L1 * L + 11 * 3 * L * L))
    bytes_accessed = int(x0.size * 4 + x1.size * 4 + N * H * n_cat * L * 4 +
                         2 * (prep["w0"].size + prep["w1"].size + prep["A01"].size +
                              prep["A11"].size + prep["A2"].size + prep["Adil"].size) +
                         4 * prep["bias"].size)

    # Constant-index weight inputs are small (~1.1 MiB) so default double
    # buffering is harmless; activations/out are pipelined per grid step.
    out2d = pl.pallas_call(
        kernel,
        out_shape=jax.ShapeDtypeStruct((N * H, n_cat * L), jnp.float32),
        grid=(N // ipb,),
        in_specs=[
            pl.BlockSpec((M, L0), lambda g: (g, 0)),
            pl.BlockSpec((M, L1), lambda g: (g, 0)),
            pl.BlockSpec(prep["w0"].shape, lambda g: (0, 0)),
            pl.BlockSpec(prep["w1"].shape, lambda g: (0, 0)),
            pl.BlockSpec(prep["A01"].shape, lambda g: (0, 0)),
            pl.BlockSpec(prep["A11"].shape, lambda g: (0, 0)),
            pl.BlockSpec(prep["A2"].shape, lambda g: (0, 0, 0)),
            pl.BlockSpec(prep["Adil"].shape, lambda g: (0, 0)),
            pl.BlockSpec(prep["bias"].shape, lambda g: (0, 0)),
        ],
        out_specs=pl.BlockSpec((M, n_cat * L), lambda g: (g, 0)),
        compiler_params=pltpu.CompilerParams(dimension_semantics=("parallel",)),
        cost_estimate=pl.CostEstimate(flops=flops, transcendentals=0,
                                      bytes_accessed=bytes_accessed),
    )(x0, x1, prep["w0"], prep["w1"], prep["A01"], prep["A11"], prep["A2"],
      prep["Adil"], prep["bias"])

    # (N*H, 4*W*C) -> NCHW (N, 4C, H, W): single layout transpose outside.
    out = out2d.reshape(N, H, n_cat, W, C).transpose(0, 2, 4, 1, 3)
    return out.reshape(N, n_cat * C, H, W)


# -----------------------------------------------------------------------------
# Deterministic synthetic parameters (BN running stats folded to scale/bias)
# -----------------------------------------------------------------------------
def _bn_fold(gamma, beta, mean, var, eps=1e-5):
    scale = gamma / jnp.sqrt(var + eps)
    bias = beta - mean * scale
    return scale, bias


def init_params(key, C_pp, C_p, C):
    keys = iter(jax.random.split(key, 128))

    def conv(shape, s=0.1):
        return s * jax.random.normal(next(keys), shape, jnp.float32)

    def bn(c):
        gamma = 1.0 + 0.1 * jax.random.normal(next(keys), (c,), jnp.float32)
        beta = 0.1 * jax.random.normal(next(keys), (c,), jnp.float32)
        mean = 0.1 * jax.random.normal(next(keys), (c,), jnp.float32)
        var = 1.0 + 0.1 * jax.random.uniform(next(keys), (c,), jnp.float32)
        return _bn_fold(gamma, beta, mean, var)

    def relu_conv_bn_params(cin, cout):
        s, b = bn(cout)
        return {"w": conv((cin, cout)), "scale": s, "bias": b}

    def sep_conv_params(c):
        s1, b1 = bn(c)
        s2, b2 = bn(c)
        return {"dw1": conv((3, 3, c)), "pw1": conv((c, c)), "scale1": s1, "bias1": b1,
                "dw2": conv((3, 3, c)), "pw2": conv((c, c)), "scale2": s2, "bias2": b2}

    def dil_conv_params(c):
        s, b = bn(c)
        return {"dw": conv((3, 3, c)), "pw": conv((c, c)), "scale": s, "bias": b}

    op_params = []
    for name, _ in NORMAL:
        if name == "sep_conv_3x3":
            op_params.append(sep_conv_params(C))
        elif name == "dil_conv_3x3":
            op_params.append(dil_conv_params(C))
        else:  # skip_connect -> Identity
            op_params.append(None)

    return {"pre0": relu_conv_bn_params(C_pp, C),
            "pre1": relu_conv_bn_params(C_p, C),
            "ops": op_params}


# -----------------------------------------------------------------------------
# Pure-JAX f32 reference (same math, no Pallas) for validation
# -----------------------------------------------------------------------------
def cell_reference(s0_nchw, s1_nchw, params):
    hp = jax.lax.Precision.HIGHEST

    def pw(x, w, scale, bias, relu):
        if relu:
            x = jnp.maximum(x, 0.0)
        y = jnp.einsum("nhwc,cd->nhwd", x, w, precision=hp)
        return y * scale + bias

    def dw(x, w33c, d):  # ReLU -> depthwise 3x3 (dilation d, padding d)
        x = jnp.maximum(x, 0.0)
        n, h, w, c = x.shape
        xp = jnp.pad(x, ((0, 0), (d, d), (d, d), (0, 0)))
        acc = jnp.zeros_like(x)
        for kh in range(3):
            for kw in range(3):
                acc = acc + xp[:, kh * d:kh * d + h, kw * d:kw * d + w, :] * w33c[kh, kw, :]
        return acc

    def sep(x, p):
        h = pw(dw(x, p["dw1"], 1), p["pw1"], p["scale1"], p["bias1"], False)
        return pw(dw(h, p["dw2"], 1), p["pw2"], p["scale2"], p["bias2"], False)

    def dil(x, p):
        return pw(dw(x, p["dw"], 2), p["pw"], p["scale"], p["bias"], False)

    fns = {"sep_conv_3x3": sep, "dil_conv_3x3": dil, "skip_connect": lambda x, p: x}

    s0 = jnp.transpose(s0_nchw, (0, 2, 3, 1))
    s1 = jnp.transpose(s1_nchw, (0, 2, 3, 1))
    s0 = pw(s0, params["pre0"]["w"], params["pre0"]["scale"], params["pre0"]["bias"], True)
    s1 = pw(s1, params["pre1"]["w"], params["pre1"]["scale"], params["pre1"]["bias"], True)
    states = [s0, s1]
    for i in range(STEPS):
        n1, i1 = NORMAL[2 * i]
        n2, i2 = NORMAL[2 * i + 1]
        h1 = fns[n1](states[i1], params["ops"][2 * i])
        h2 = fns[n2](states[i2], params["ops"][2 * i + 1])
        states.append(h1 + h2)
    out = jnp.concatenate([states[i] for i in NORMAL_CONCAT], axis=-1)
    return jnp.transpose(out, (0, 3, 1, 2))


# -----------------------------------------------------------------------------
if __name__ == "__main__":
    key = jax.random.PRNGKey(0)
    kx0, kx1, kp = jax.random.split(key, 3)

    # W * C = 128 -> one full lane tile per image row.  16 images, 8 per block
    # -> M = 64 rows per matmul and a 2-step "parallel" grid (both v7x cores).
    N, C_pp, C_p, C, H, W = 16, 16, 16, 16, 8, 8
    s0 = jax.random.normal(kx0, (N, C_pp, H, W), jnp.float32)  # NCHW (PyTorch)
    s1 = jax.random.normal(kx1, (N, C_p, H, W), jnp.float32)

    params = init_params(kp, C_pp, C_p, C)
    prep = prepare_cell(params, C, W)   # one-time weight folding / packing

    out = cell_forward(s0, s1, prep, drop_prob=0.2, imgs_per_block=8)
    out = jax.block_until_ready(out)

    assert out.shape == (N, len(NORMAL_CONCAT) * C, H, W)
    assert bool(jnp.all(jnp.isfinite(out)))

    # Validate against the f32 reference (bf16 only used for MXU operands).
    ref = cell_reference(s0, s1, params)
    max_err = float(jnp.max(jnp.abs(out - ref)))
    assert max_err < 5e-2, f"max abs err vs f32 reference: {max_err}"

    print("KERNEL_OK")
</pallas_src>

<mosaic_0001>
module attributes {stable_mosaic.version = 11 : i64} {
  func.func @_cell_kernel(%arg0: i32, %arg1: memref<64x128xf32, #tpu.memory_space<vmem>>, %arg2: memref<64x128xf32, #tpu.memory_space<vmem>>, %arg3: memref<128x128xbf16, #tpu.memory_space<vmem>>, %arg4: memref<128x128xbf16, #tpu.memory_space<vmem>>, %arg5: memref<384x256xbf16, #tpu.memory_space<vmem>>, %arg6: memref<384x384xbf16, #tpu.memory_space<vmem>>, %arg7: memref<5x384x128xbf16, #tpu.memory_space<vmem>>, %arg8: memref<384x128xbf16, #tpu.memory_space<vmem>>, %arg9: memref<13x128xf32, #tpu.memory_space<vmem>>, %arg10: memref<64x512xf32, #tpu.memory_space<vmem>>) attributes {dimension_semantics = [#tpu.dimension_semantics<parallel>], iteration_bounds = array<i64: 2>, scalar_prefetch = 0 : i64, scratch_operands = 0 : i64, tpu.core_type = #tpu.core_type<tc>, window_params = [{transform_indices = @transform_0, window_bounds = array<i64: 64, 128>}, {transform_indices = @transform_1, window_bounds = array<i64: 64, 128>}, {pipeline_mode = #tpu.pipeline_mode<synchronous>, transform_indices = @transform_2, window_bounds = array<i64: 128, 128>}, {pipeline_mode = #tpu.pipeline_mode<synchronous>, transform_indices = @transform_3, window_bounds = array<i64: 128, 128>}, {pipeline_mode = #tpu.pipeline_mode<synchronous>, transform_indices = @transform_4, window_bounds = array<i64: 384, 256>}, {pipeline_mode = #tpu.pipeline_mode<synchronous>, transform_indices = @transform_5, window_bounds = array<i64: 384, 384>}, {pipeline_mode = #tpu.pipeline_mode<synchronous>, transform_indices = @transform_6, window_bounds = array<i64: 5, 384, 128>}, {pipeline_mode = #tpu.pipeline_mode<synchronous>, transform_indices = @transform_7, window_bounds = array<i64: 384, 128>}, {pipeline_mode = #tpu.pipeline_mode<synchronous>, transform_indices = @transform_8, window_bounds = array<i64: 13, 128>}, {transform_indices = @transform_9, window_bounds = array<i64: 64, 512>}]} {
    %c0 = arith.constant 0 : index
    %c0_0 = arith.constant 0 : index
    %0 = vector.load %arg9[%c0, %c0_0] : memref<13x128xf32, #tpu.memory_space<vmem>>, vector<13x128xf32>
    %1 = tpu.iota {dimensions = array<i32: 0>} : vector<64x128xi32>
    %c7_i32 = arith.constant 7 : i32
    %2 = vector.broadcast %c7_i32 : i32 to vector<64x128xi32>
    %3 = arith.andi %1, %2 : vector<64x128xi32>
    %c1_i32 = arith.constant 1 : i32
    %4 = vector.broadcast %c1_i32 : i32 to vector<64x128xi32>
    %5 = arith.cmpi sge, %3, %4 : vector<64x128xi32>
    %c7_i32_1 = arith.constant 7 : i32
    %6 = vector.broadcast %c7_i32_1 : i32 to vector<64x128xi32>
    %7 = arith.cmpi slt, %3, %6 : vector<64x128xi32>
    %c2_i32 = arith.constant 2 : i32
    %8 = vector.broadcast %c2_i32 : i32 to vector<64x128xi32>
    %9 = arith.cmpi sge, %3, %8 : vector<64x128xi32>
    %c6_i32 = arith.constant 6 : i32
    %10 = vector.broadcast %c6_i32 : i32 to vector<64x128xi32>
    %11 = arith.cmpi slt, %3, %10 : vector<64x128xi32>
    %c0_2 = arith.constant 0 : index
    %c0_3 = arith.constant 0 : index
    %12 = vector.load %arg1[%c0_2, %c0_3] : memref<64x128xf32, #tpu.memory_space<vmem>>, vector<64x128xf32>
    %cst = arith.constant 0.000000e+00 : f32
    %13 = vector.broadcast %cst : f32 to vector<64x128xf32>
    %14 = arith.maximumf %12, %13 : vector<64x128xf32>
    %15 = arith.truncf %14 : vector<64x128xf32> to vector<64x128xbf16>
    %c0_4 = arith.constant 0 : index
    %c0_5 = arith.constant 0 : index
    %16 = vector.load %arg3[%c0_4, %c0_5] : memref<128x128xbf16, #tpu.memory_space<vmem>>, vector<128x128xbf16>
    %cst_6 = arith.constant dense<0.000000e+00> : vector<64x128xf32>
    %17 = tpu.matmul %15, %16, %cst_6 {dimension_numbers = #tpu.dot_dimension_numbers<[1], [0], [0], [1], [0, 0, 1, 1], [], []>} : vector<64x128xbf16>, vector<128x128xbf16>, vector<64x128xf32> -> vector<64x128xf32>
    %18 = vector.extract_strided_slice %0 {offsets = [0, 0], sizes = [1, 128], strides = [1, 1]} : vector<13x128xf32> to vector<1x128xf32>
    %19 = vector.broadcast %18 : vector<1x128xf32> to vector<64x128xf32>
    %20 = arith.addf %17, %19 : vector<64x128xf32>
    %c0_7 = arith.constant 0 : index
    %c0_8 = arith.constant 0 : index
    %21 = vector.load %arg2[%c0_7, %c0_8] : memref<64x128xf32, #tpu.memory_space<vmem>>, vector<64x128xf32>
    %cst_9 = arith.constant 0.000000e+00 : f32
    %22 = vector.broadcast %cst_9 : f32 to vector<64x128xf32>
    %23 = arith.maximumf %21, %22 : vector<64x128xf32>
    %24 = arith.truncf %23 : vector<64x128xf32> to vector<64x128xbf16>
    %c0_10 = arith.constant 0 : index
    %c0_11 = arith.constant 0 : index
    %25 = vector.load %arg4[%c0_10, %c0_11] : memref<128x128xbf16, #tpu.memory_space<vmem>>, vector<128x128xbf16>
    %cst_12 = arith.constant dense<0.000000e+00> : vector<64x128xf32>
    %26 = tpu.matmul %24, %25, %cst_12 {dimension_numbers = #tpu.dot_dimension_numbers<[1], [0], [0], [1], [0, 0, 1, 1], [], []>} : vector<64x128xbf16>, vector<128x128xbf16>, vector<64x128xf32> -> vector<64x128xf32>
    %27 = vector.extract_strided_slice %0 {offsets = [1, 0], sizes = [1, 128], strides = [1, 1]} : vector<13x128xf32> to vector<1x128xf32>
    %28 = vector.broadcast %27 : vector<1x128xf32> to vector<64x128xf32>
    %29 = arith.addf %26, %28 : vector<64x128xf32>
    %cst_13 = arith.constant 0.000000e+00 : f32
    %30 = vector.broadcast %cst_13 : f32 to vector<64x128xf32>
    %31 = arith.maximumf %20, %30 : vector<64x128xf32>
    %cst_14 = arith.constant 0.000000e+00 : f32
    %32 = vector.broadcast %cst_14 : f32 to vector<1x128xf32>
    %33 = vector.extract_strided_slice %31 {offsets = [0, 0], sizes = [63, 128], strides = [1, 1]} : vector<64x128xf32> to vector<63x128xf32>
    %34 = tpu.concatenate %32, %33 in 0 : vector<1x128xf32>, vector<63x128xf32> -> vector<64x128xf32>
    %cst_15 = arith.constant 0.000000e+00 : f32
    %35 = vector.broadcast %cst_15 : f32 to vector<64x128xf32>
    %36 = arith.select %5, %34, %35 : vector<64x128xi1>, vector<64x128xf32>
    %cst_16 = arith.constant 0.000000e+00 : f32
    %37 = vector.broadcast %cst_16 : f32 to vector<1x128xf32>
    %38 = vector.extract_strided_slice %31 {offsets = [1, 0], sizes = [63, 128], strides = [1, 1]} : vector<64x128xf32> to vector<63x128xf32>
    %39 = tpu.concatenate %38, %37 in 0 : vector<63x128xf32>, vector<1x128xf32> -> vector<64x128xf32>
    %cst_17 = arith.constant 0.000000e+00 : f32
    %40 = vector.broadcast %cst_17 : f32 to vector<64x128xf32>
    %41 = arith.select %7, %39, %40 : vector<64x128xi1>, vector<64x128xf32>
    %42 = tpu.concatenate %36, %31, %41 in 1 : vector<64x128xf32>, vector<64x128xf32>, vector<64x128xf32> -> vector<64x384xf32>
    %43 = arith.truncf %42 : vector<64x384xf32> to vector<64x384xbf16>
    %c0_18 = arith.constant 0 : index
    %c0_19 = arith.constant 0 : index
    %44 = vector.load %arg5[%c0_18, %c0_19] : memref<384x256xbf16, #tpu.memory_space<vmem>>, vector<384x256xbf16>
    %cst_20 = arith.constant dense<0.000000e+00> : vector<64x256xf32>
    %45 = tpu.matmul %43, %44, %cst_20 {dimension_numbers = #tpu.dot_dimension_numbers<[1], [0], [0], [1], [0, 0, 1, 1], [], []>} : vector<64x384xbf16>, vector<384x256xbf16>, vector<64x256xf32> -> vector<64x256xf32>
    %cst_21 = arith.constant 0.000000e+00 : f32
    %46 = vector.broadcast %cst_21 : f32 to vector<64x128xf32>
    %47 = arith.maximumf %29, %46 : vector<64x128xf32>
    %cst_22 = arith.constant 0.000000e+00 : f32
    %48 = vector.broadcast %cst_22 : f32 to vector<1x128xf32>
    %49 = vector.extract_strided_slice %47 {offsets = [0, 0], sizes = [63, 128], strides = [1, 1]} : vector<64x128xf32> to vector<63x128xf32>
    %50 = tpu.concatenate %48, %49 in 0 : vector<1x128xf32>, vector<63x128xf32> -> vector<64x128xf32>
    %cst_23 = arith.constant 0.000000e+00 : f32
    %51 = vector.broadcast %cst_23 : f32 to vector<64x128xf32>
    %52 = arith.select %5, %50, %51 : vector<64x128xi1>, vector<64x128xf32>
    %cst_24 = arith.constant 0.000000e+00 : f32
    %53 = vector.broadcast %cst_24 : f32 to vector<1x128xf32>
    %54 = vector.extract_strided_slice %47 {offsets = [1, 0], sizes = [63, 128], strides = [1, 1]} : vector<64x128xf32> to vector<63x128xf32>
    %55 = tpu.concatenate %54, %53 in 0 : vector<63x128xf32>, vector<1x128xf32> -> vector<64x128xf32>
    %cst_25 = arith.constant 0.000000e+00 : f32
    %56 = vector.broadcast %cst_25 : f32 to vector<64x128xf32>
    %57 = arith.select %7, %55, %56 : vector<64x128xi1>, vector<64x128xf32>
    %58 = tpu.concatenate %52, %47, %57 in 1 : vector<64x128xf32>, vector<64x128xf32>, vector<64x128xf32> -> vector<64x384xf32>
    %59 = arith.truncf %58 : vector<64x384xf32> to vector<64x384xbf16>
    %c0_26 = arith.constant 0 : index
    %c0_27 = arith.constant 0 : index
    %60 = vector.load %arg6[%c0_26, %c0_27] : memref<384x384xbf16, #tpu.memory_space<vmem>>, vector<384x384xbf16>
    %cst_28 = arith.constant dense<0.000000e+00> : vector<64x384xf32>
    %61 = tpu.matmul %59, %60, %cst_28 {dimension_numbers = #tpu.dot_dimension_numbers<[1], [0], [0], [1], [0, 0, 1, 1], [], []>} : vector<64x384xbf16>, vector<384x384xbf16>, vector<64x384xf32> -> vector<64x384xf32>
    %62 = vector.extract_strided_slice %45 {offsets = [0, 0], sizes = [64, 128], strides = [1, 1]} : vector<64x256xf32> to vector<64x128xf32>
    %63 = vector.extract_strided_slice %0 {offsets = [2, 0], sizes = [1, 128], strides = [1, 1]} : vector<13x128xf32> to vector<1x128xf32>
    %64 = vector.broadcast %63 : vector<1x128xf32> to vector<64x128xf32>
    %65 = arith.addf %62, %64 : vector<64x128xf32>
    %66 = vector.extract_strided_slice %45 {offsets = [0, 128], sizes = [64, 128], strides = [1, 1]} : vector<64x256xf32> to vector<64x128xf32>
    %67 = vector.extract_strided_slice %0 {offsets = [3, 0], sizes = [1, 128], strides = [1, 1]} : vector<13x128xf32> to vector<1x128xf32>
    %68 = vector.broadcast %67 : vector<1x128xf32> to vector<64x128xf32>
    %69 = arith.addf %66, %68 : vector<64x128xf32>
    %70 = vector.extract_strided_slice %61 {offsets = [0, 0], sizes = [64, 128], strides = [1, 1]} : vector<64x384xf32> to vector<64x128xf32>
    %71 = vector.extract_strided_slice %0 {offsets = [4, 0], sizes = [1, 128], strides = [1, 1]} : vector<13x128xf32> to vector<1x128xf32>
    %72 = vector.broadcast %71 : vector<1x128xf32> to vector<64x128xf32>
    %73 = arith.addf %70, %72 : vector<64x128xf32>
    %74 = vector.extract_strided_slice %61 {offsets = [0, 128], sizes = [64, 128], strides = [1, 1]} : vector<64x384xf32> to vector<64x128xf32>
    %75 = vector.extract_strided_slice %0 {offsets = [5, 0], sizes = [1, 128], strides = [1, 1]} : vector<13x128xf32> to vector<1x128xf32>
    %76 = vector.broadcast %75 : vector<1x128xf32> to vector<64x128xf32>
    %77 = arith.addf %74, %76 : vector<64x128xf32>
    %78 = vector.extract_strided_slice %61 {offsets = [0, 256], sizes = [64, 128], strides = [1, 1]} : vector<64x384xf32> to vector<64x128xf32>
    %79 = vector.extract_strided_slice %0 {offsets = [6, 0], sizes = [1, 128], strides = [1, 1]} : vector<13x128xf32> to vector<1x128xf32>
    %80 = vector.broadcast %79 : vector<1x128xf32> to vector<64x128xf32>
    %81 = arith.addf %78, %80 : vector<64x128xf32>
    %cst_29 = arith.constant 0.000000e+00 : f32
    %82 = vector.broadcast %cst_29 : f32 to vector<64x128xf32>
    %83 = arith.maximumf %65, %82 : vector<64x128xf32>
    %cst_30 = arith.constant 0.000000e+00 : f32
    %84 = vector.broadcast %cst_30 : f32 to vector<1x128xf32>
    %85 = vector.extract_strided_slice %83 {offsets = [0, 0], sizes = [63, 128], strides = [1, 1]} : vector<64x128xf32> to vector<63x128xf32>
    %86 = tpu.concatenate %84, %85 in 0 : vector<1x128xf32>, vector<63x128xf32> -> vector<64x128xf32>
    %cst_31 = arith.constant 0.000000e+00 : f32
    %87 = vector.broadcast %cst_31 : f32 to vector<64x128xf32>
    %88 = arith.select %5, %86, %87 : vector<64x128xi1>, vector<64x128xf32>
    %cst_32 = arith.constant 0.000000e+00 : f32
    %89 = vector.broadcast %cst_32 : f32 to vector<1x128xf32>
    %90 = vector.extract_strided_slice %83 {offsets = [1, 0], sizes = [63, 128], strides = [1, 1]} : vector<64x128xf32> to vector<63x128xf32>
    %91 = tpu.concatenate %90, %89 in 0 : vector<63x128xf32>, vector<1x128xf32> -> vector<64x128xf32>
    %cst_33 = arith.constant 0.000000e+00 : f32
    %92 = vector.broadcast %cst_33 : f32 to vector<64x128xf32>
    %93 = arith.select %7, %91, %92 : vector<64x128xi1>, vector<64x128xf32>
    %94 = tpu.concatenate %88, %83, %93 in 1 : vector<64x128xf32>, vector<64x128xf32>, vector<64x128xf32> -> vector<64x384xf32>
    %95 = arith.truncf %94 : vector<64x384xf32> to vector<64x384xbf16>
    %c0_34 = arith.constant 0 : index
    %c0_35 = arith.constant 0 : index
    %c0_36 = arith.constant 0 : index
    %96 = vector.load %arg7[%c0_34, %c0_35, %c0_36] : memref<5x384x128xbf16, #tpu.memory_space<vmem>>, vector<1x384x128xbf16>
    %97 = vector.shape_cast %96 : vector<1x384x128xbf16> to vector<384x128xbf16>
    %cst_37 = arith.constant dense<0.000000e+00> : vector<64x128xf32>
    %98 = tpu.matmul %95, %97, %cst_37 {dimension_numbers = #tpu.dot_dimension_numbers<[1], [0], [0], [1], [0, 0, 1, 1], [], []>} : vector<64x384xbf16>, vector<384x128xbf16>, vector<64x128xf32> -> vector<64x128xf32>
    %99 = vector.extract_strided_slice %0 {offsets = [7, 0], sizes = [1, 128], strides = [1, 1]} : vector<13x128xf32> to vector<1x128xf32>
    %100 = vector.broadcast %99 : vector<1x128xf32> to vector<64x128xf32>
    %101 = arith.addf %98, %100 : vector<64x128xf32>
    %cst_38 = arith.constant 0.000000e+00 : f32
    %102 = vector.broadcast %cst_38 : f32 to vector<64x128xf32>
    %103 = arith.maximumf %73, %102 : vector<64x128xf32>
    %cst_39 = arith.constant 0.000000e+00 : f32
    %104 = vector.broadcast %cst_39 : f32 to vector<1x128xf32>
    %105 = vector.extract_strided_slice %103 {offsets = [0, 0], sizes = [63, 128], strides = [1, 1]} : vector<64x128xf32> to vector<63x128xf32>
    %106 = tpu.concatenate %104, %105 in 0 : vector<1x128xf32>, vector<63x128xf32> -> vector<64x128xf32>
    %cst_40 = arith.constant 0.000000e+00 : f32
    %107 = vector.broadcast %cst_40 : f32 to vector<64x128xf32>
    %108 = arith.select %5, %106, %107 : vector<64x128xi1>, vector<64x128xf32>
    %cst_41 = arith.constant 0.000000e+00 : f32
    %109 = vector.broadcast %cst_41 : f32 to vector<1x128xf32>
    %110 = vector.extract_strided_slice %103 {offsets = [1, 0], sizes = [63, 128], strides = [1, 1]} : vector<64x128xf32> to vector<63x128xf32>
    %111 = tpu.concatenate %110, %109 in 0 : vector<63x128xf32>, vector<1x128xf32> -> vector<64x128xf32>
    %cst_42 = arith.constant 0.000000e+00 : f32
    %112 = vector.broadcast %cst_42 : f32 to vector<64x128xf32>
    %113 = arith.select %7, %111, %112 : vector<64x128xi1>, vector<64x128xf32>
    %114 = tpu.concatenate %108, %103, %113 in 1 : vector<64x128xf32>, vector<64x128xf32>, vector<64x128xf32> -> vector<64x384xf32>
    %115 = arith.truncf %114 : vector<64x384xf32> to vector<64x384xbf16>
    %c1 = arith.constant 1 : index
    %c0_43 = arith.constant 0 : index
    %c0_44 = arith.constant 0 : index
    %116 = vector.load %arg7[%c1, %c0_43, %c0_44] : memref<5x384x128xbf16, #tpu.memory_space<vmem>>, vector<1x384x128xbf16>
    %117 = vector.shape_cast %116 : vector<1x384x128xbf16> to vector<384x128xbf16>
    %cst_45 = arith.constant dense<0.000000e+00> : vector<64x128xf32>
    %118 = tpu.matmul %115, %117, %cst_45 {dimension_numbers = #tpu.dot_dimension_numbers<[1], [0], [0], [1], [0, 0, 1, 1], [], []>} : vector<64x384xbf16>, vector<384x128xbf16>, vector<64x128xf32> -> vector<64x128xf32>
    %119 = vector.extract_strided_slice %0 {offsets = [8, 0], sizes = [1, 128], strides = [1, 1]} : vector<13x128xf32> to vector<1x128xf32>
    %120 = vector.broadcast %119 : vector<1x128xf32> to vector<64x128xf32>
    %121 = arith.addf %118, %120 : vector<64x128xf32>
    %122 = arith.addf %101, %121 : vector<64x128xf32>
    %c0_46 = arith.constant 0 : index
    %c0_47 = arith.constant 0 : index
    %123 = vector.load %arg10[%c0_46, %c0_47] : memref<64x512xf32, #tpu.memory_space<vmem>>, vector<64x128xf32>
    tpu.vector_store %arg10[%c0_46, %c0_47], %122 {strides = array<i32>} : memref<64x512xf32, #tpu.memory_space<vmem>>, vector<64x128xf32>,
    %cst_48 = arith.constant 0.000000e+00 : f32
    %124 = vector.broadcast %cst_48 : f32 to vector<64x128xf32>
    %125 = arith.maximumf %69, %124 : vector<64x128xf32>
    %cst_49 = arith.constant 0.000000e+00 : f32
    %126 = vector.broadcast %cst_49 : f32 to vector<1x128xf32>
    %127 = vector.extract_strided_slice %125 {offsets = [0, 0], sizes = [63, 128], strides = [1, 1]} : vector<64x128xf32> to vector<63x128xf32>
    %128 = tpu.concatenate %126, %127 in 0 : vector<1x128xf32>, vector<63x128xf32> -> vector<64x128xf32>
    %cst_50 = arith.constant 0.000000e+00 : f32
    %129 = vector.broadcast %cst_50 : f32 to vector<64x128xf32>
    %130 = arith.select %5, %128, %129 : vector<64x128xi1>, vector<64x128xf32>
    %cst_51 = arith.constant 0.000000e+00 : f32
    %131 = vector.broadcast %cst_51 : f32 to vector<1x128xf32>
    %132 = vector.extract_strided_slice %125 {offsets = [1, 0], sizes = [63, 128], strides = [1, 1]} : vector<64x128xf32> to vector<63x128xf32>
    %133 = tpu.concatenate %132, %131 in 0 : vector<63x128xf32>, vector<1x128xf32> -> vector<64x128xf32>
    %cst_52 = arith.constant 0.000000e+00 : f32
    %134 = vector.broadcast %cst_52 : f32 to vector<64x128xf32>
    %135 = arith.select %7, %133, %134 : vector<64x128xi1>, vector<64x128xf32>
    %136 = tpu.concatenate %130, %125, %135 in 1 : vector<64x128xf32>, vector<64x128xf32>, vector<64x128xf32> -> vector<64x384xf32>
    %137 = arith.truncf %136 : vector<64x384xf32> to vector<64x384xbf16>
    %c2 = arith.constant 2 : index
    %c0_53 = arith.constant 0 : index
    %c0_54 = arith.constant 0 : index
    %138 = vector.load %arg7[%c2, %c0_53, %c0_54] : memref<5x384x128xbf16, #tpu.memory_space<vmem>>, vector<1x384x128xbf16>
    %139 = vector.shape_cast %138 : vector<1x384x128xbf16> to vector<384x128xbf16>
    %cst_55 = arith.constant dense<0.000000e+00> : vector<64x128xf32>
    %140 = tpu.matmul %137, %139, %cst_55 {dimension_numbers = #tpu.dot_dimension_numbers<[1], [0], [0], [1], [0, 0, 1, 1], [], []>} : vector<64x384xbf16>, vector<384x128xbf16>, vector<64x128xf32> -> vector<64x128xf32>
    %141 = vector.extract_strided_slice %0 {offsets = [9, 0], sizes = [1, 128], strides = [1, 1]} : vector<13x128xf32> to vector<1x128xf32>
    %142 = vector.broadcast %141 : vector<1x128xf32> to vector<64x128xf32>
    %143 = arith.addf %140, %142 : vector<64x128xf32>
    %cst_56 = arith.constant 0.000000e+00 : f32
    %144 = vector.broadcast %cst_56 : f32 to vector<64x128xf32>
    %145 = arith.maximumf %77, %144 : vector<64x128xf32>
    %cst_57 = arith.constant 0.000000e+00 : f32
    %146 = vector.broadcast %cst_57 : f32 to vector<1x128xf32>
    %147 = vector.extract_strided_slice %145 {offsets = [0, 0], sizes = [63, 128], strides = [1, 1]} : vector<64x128xf32> to vector<63x128xf32>
    %148 = tpu.concatenate %146, %147 in 0 : vector<1x128xf32>, vector<63x128xf32> -> vector<64x128xf32>
    %cst_58 = arith.constant 0.000000e+00 : f32
    %149 = vector.broadcast %cst_58 : f32 to vector<64x128xf32>
    %150 = arith.select %5, %148, %149 : vector<64x128xi1>, vector<64x128xf32>
    %cst_59 = arith.constant 0.000000e+00 : f32
    %151 = vector.broadcast %cst_59 : f32 to vector<1x128xf32>
    %152 = vector.extract_strided_slice %145 {offsets = [1, 0], sizes = [63, 128], strides = [1, 1]} : vector<64x128xf32> to vector<63x128xf32>
    %153 = tpu.concatenate %152, %151 in 0 : vector<63x128xf32>, vector<1x128xf32> -> vector<64x128xf32>
    %cst_60 = arith.constant 0.000000e+00 : f32
    %154 = vector.broadcast %cst_60 : f32 to vector<64x128xf32>
    %155 = arith.select %7, %153, %154 : vector<64x128xi1>, vector<64x128xf32>
    %156 = tpu.concatenate %150, %145, %155 in 1 : vector<64x128xf32>, vector<64x128xf32>, vector<64x128xf32> -> vector<64x384xf32>
    %157 = arith.truncf %156 : vector<64x384xf32> to vector<64x384xbf16>
    %c3 = arith.constant 3 : index
    %c0_61 = arith.constant 0 : index
    %c0_62 = arith.constant 0 : index
    %158 = vector.load %arg7[%c3, %c0_61, %c0_62] : memref<5x384x128xbf16, #tpu.memory_space<vmem>>, vector<1x384x128xbf16>
    %159 = vector.shape_cast %158 : vector<1x384x128xbf16> to vector<384x128xbf16>
    %cst_63 = arith.constant dense<0.000000e+00> : vector<64x128xf32>
    %160 = tpu.matmul %157, %159, %cst_63 {dimension_numbers = #tpu.dot_dimension_numbers<[1], [0], [0], [1], [0, 0, 1, 1], [], []>} : vector<64x384xbf16>, vector<384x128xbf16>, vector<64x128xf32> -> vector<64x128xf32>
    %161 = vector.extract_strided_slice %0 {offsets = [10, 0], sizes = [1, 128], strides = [1, 1]} : vector<13x128xf32> to vector<1x128xf32>
    %162 = vector.broadcast %161 : vector<1x128xf32> to vector<64x128xf32>
    %163 = arith.addf %160, %162 : vector<64x128xf32>
    %164 = arith.addf %143, %163 : vector<64x128xf32>
    %c0_64 = arith.constant 0 : index
    %c128 = arith.constant 128 : index
    %165 = vector.load %arg10[%c0_64, %c128] : memref<64x512xf32, #tpu.memory_space<vmem>>, vector<64x128xf32>
    tpu.vector_store %arg10[%c0_64, %c128], %164 {strides = array<i32>} : memref<64x512xf32, #tpu.memory_space<vmem>>, vector<64x128xf32>,
    %cst_65 = arith.constant 0.000000e+00 : f32
    %166 = vector.broadcast %cst_65 : f32 to vector<64x128xf32>
    %167 = arith.maximumf %81, %166 : vector<64x128xf32>
    %cst_66 = arith.constant 0.000000e+00 : f32
    %168 = vector.broadcast %cst_66 : f32 to vector<1x128xf32>
    %169 = vector.extract_strided_slice %167 {offsets = [0, 0], sizes = [63, 128], strides = [1, 1]} : vector<64x128xf32> to vector<63x128xf32>
    %170 = tpu.concatenate %168, %169 in 0 : vector<1x128xf32>, vector<63x128xf32> -> vector<64x128xf32>
    %cst_67 = arith.constant 0.000000e+00 : f32
    %171 = vector.broadcast %cst_67 : f32 to vector<64x128xf32>
    %172 = arith.select %5, %170, %171 : vector<64x128xi1>, vector<64x128xf32>
    %cst_68 = arith.constant 0.000000e+00 : f32
    %173 = vector.broadcast %cst_68 : f32 to vector<1x128xf32>
    %174 = vector.extract_strided_slice %167 {offsets = [1, 0], sizes = [63, 128], strides = [1, 1]} : vector<64x128xf32> to vector<63x128xf32>
    %175 = tpu.concatenate %174, %173 in 0 : vector<63x128xf32>, vector<1x128xf32> -> vector<64x128xf32>
    %cst_69 = arith.constant 0.000000e+00 : f32
    %176 = vector.broadcast %cst_69 : f32 to vector<64x128xf32>
    %177 = arith.select %7, %175, %176 : vector<64x128xi1>, vector<64x128xf32>
    %178 = tpu.concatenate %172, %167, %177 in 1 : vector<64x128xf32>, vector<64x128xf32>, vector<64x128xf32> -> vector<64x384xf32>
    %179 = arith.truncf %178 : vector<64x384xf32> to vector<64x384xbf16>
    %c4 = arith.constant 4 : index
    %c0_70 = arith.constant 0 : index
    %c0_71 = arith.constant 0 : index
    %180 = vector.load %arg7[%c4, %c0_70, %c0_71] : memref<5x384x128xbf16, #tpu.memory_space<vmem>>, vector<1x384x128xbf16>
    %181 = vector.shape_cast %180 : vector<1x384x128xbf16> to vector<384x128xbf16>
    %cst_72 = arith.constant dense<0.000000e+00> : vector<64x128xf32>
    %182 = tpu.matmul %179, %181, %cst_72 {dimension_numbers = #tpu.dot_dimension_numbers<[1], [0], [0], [1], [0, 0, 1, 1], [], []>} : vector<64x384xbf16>, vector<384x128xbf16>, vector<64x128xf32> -> vector<64x128xf32>
    %183 = vector.extract_strided_slice %0 {offsets = [11, 0], sizes = [1, 128], strides = [1, 1]} : vector<13x128xf32> to vector<1x128xf32>
    %184 = vector.broadcast %183 : vector<1x128xf32> to vector<64x128xf32>
    %185 = arith.addf %182, %184 : vector<64x128xf32>
    %186 = arith.addf %185, %20 : vector<64x128xf32>
    %c0_73 = arith.constant 0 : index
    %c256 = arith.constant 256 : index
    %187 = vector.load %arg10[%c0_73, %c256] : memref<64x512xf32, #tpu.memory_space<vmem>>, vector<64x128xf32>
    tpu.vector_store %arg10[%c0_73, %c256], %186 {strides = array<i32>} : memref<64x512xf32, #tpu.memory_space<vmem>>, vector<64x128xf32>,
    %cst_74 = arith.constant 0.000000e+00 : f32
    %188 = vector.broadcast %cst_74 : f32 to vector<64x128xf32>
    %189 = arith.maximumf %122, %188 : vector<64x128xf32>
    %cst_75 = arith.constant 0.000000e+00 : f32
    %190 = vector.broadcast %cst_75 : f32 to vector<2x128xf32>
    %191 = vector.extract_strided_slice %189 {offsets = [0, 0], sizes = [62, 128], strides = [1, 1]} : vector<64x128xf32> to vector<62x128xf32>
    %192 = tpu.concatenate %190, %191 in 0 : vector<2x128xf32>, vector<62x128xf32> -> vector<64x128xf32>
    %cst_76 = arith.constant 0.000000e+00 : f32
    %193 = vector.broadcast %cst_76 : f32 to vector<64x128xf32>
    %194 = arith.select %9, %192, %193 : vector<64x128xi1>, vector<64x128xf32>
    %cst_77 = arith.constant 0.000000e+00 : f32
    %195 = vector.broadcast %cst_77 : f32 to vector<2x128xf32>
    %196 = vector.extract_strided_slice %189 {offsets = [2, 0], sizes = [62, 128], strides = [1, 1]} : vector<64x128xf32> to vector<62x128xf32>
    %197 = tpu.concatenate %196, %195 in 0 : vector<62x128xf32>, vector<2x128xf32> -> vector<64x128xf32>
    %cst_78 = arith.constant 0.000000e+00 : f32
    %198 = vector.broadcast %cst_78 : f32 to vector<64x128xf32>
    %199 = arith.select %11, %197, %198 : vector<64x128xi1>, vector<64x128xf32>
    %200 = tpu.concatenate %194, %189, %199 in 1 : vector<64x128xf32>, vector<64x128xf32>, vector<64x128xf32> -> vector<64x384xf32>
    %201 = arith.truncf %200 : vector<64x384xf32> to vector<64x384xbf16>
    %c0_79 = arith.constant 0 : index
    %c0_80 = arith.constant 0 : index
    %202 = vector.load %arg8[%c0_79, %c0_80] : memref<384x128xbf16, #tpu.memory_space<vmem>>, vector<384x128xbf16>
    %cst_81 = arith.constant dense<0.000000e+00> : vector<64x128xf32>
    %203 = tpu.matmul %201, %202, %cst_81 {dimension_numbers = #tpu.dot_dimension_numbers<[1], [0], [0], [1], [0, 0, 1, 1], [], []>} : vector<64x384xbf16>, vector<384x128xbf16>, vector<64x128xf32> -> vector<64x128xf32>
    %204 = vector.extract_strided_slice %0 {offsets = [12, 0], sizes = [1, 128], strides = [1, 1]} : vector<13x128xf32> to vector<1x128xf32>
    %205 = vector.broadcast %204 : vector<1x128xf32> to vector<64x128xf32>
    %206 = arith.addf %203, %205 : vector<64x128xf32>
    %207 = arith.addf %20, %206 : vector<64x128xf32>
    %c0_82 = arith.constant 0 : index
    %c384 = arith.constant 384 : index
    %208 = vector.load %arg10[%c0_82, %c384] : memref<64x512xf32, #tpu.memory_space<vmem>>, vector<64x128xf32>
    tpu.vector_store %arg10[%c0_82, %c384], %207 {strides = array<i32>} : memref<64x512xf32, #tpu.memory_space<vmem>>, vector<64x128xf32>,
    return
  }
  func.func @transform_0(%arg0: i32) -> (i32, i32) {
    %c0_i32 = arith.constant 0 : i32
    %c0_i32_0 = arith.constant 0 : i32
    return %arg0, %c0_i32 : i32, i32
  }
  func.func @transform_1(%arg0: i32) -> (i32, i32) {
    %c0_i32 = arith.constant 0 : i32
    %c0_i32_0 = arith.constant 0 : i32
    return %arg0, %c0_i32 : i32, i32
  }
  func.func @transform_2(%arg0: i32) -> (i32, i32) {
    %c0_i32 = arith.constant 0 : i32
    %c0_i32_0 = arith.constant 0 : i32
    %c0_i32_1 = arith.constant 0 : i32
    return %c0_i32, %c0_i32_0 : i32, i32
  }
  func.func @transform_3(%arg0: i32) -> (i32, i32) {
    %c0_i32 = arith.constant 0 : i32
    %c0_i32_0 = arith.constant 0 : i32
    %c0_i32_1 = arith.constant 0 : i32
    return %c0_i32, %c0_i32_0 : i32, i32
  }
  func.func @transform_4(%arg0: i32) -> (i32, i32) {
    %c0_i32 = arith.constant 0 : i32
    %c0_i32_0 = arith.constant 0 : i32
    %c0_i32_1 = arith.constant 0 : i32
    return %c0_i32, %c0_i32_0 : i32, i32
  }
  func.func @transform_5(%arg0: i32) -> (i32, i32) {
    %c0_i32 = arith.constant 0 : i32
    %c0_i32_0 = arith.constant 0 : i32
    %c0_i32_1 = arith.constant 0 : i32
    return %c0_i32, %c0_i32_0 : i32, i32
  }
  func.func @transform_6(%arg0: i32) -> (i32, i32, i32) {
    %c0_i32 = arith.constant 0 : i32
    %c0_i32_0 = arith.constant 0 : i32
    %c0_i32_1 = arith.constant 0 : i32
    %c0_i32_2 = arith.constant 0 : i32
    return %c0_i32, %c0_i32_0, %c0_i32_1 : i32, i32, i32
  }
  func.func @transform_7(%arg0: i32) -> (i32, i32) {
    %c0_i32 = arith.constant 0 : i32
    %c0_i32_0 = arith.constant 0 : i32
    %c0_i32_1 = arith.constant 0 : i32
    return %c0_i32, %c0_i32_0 : i32, i32
  }
  func.func @transform_8(%arg0: i32) -> (i32, i32) {
    %c0_i32 = arith.constant 0 : i32
    %c0_i32_0 = arith.constant 0 : i32
    %c0_i32_1 = arith.constant 0 : i32
    return %c0_i32, %c0_i32_0 : i32, i32
  }
  func.func @transform_9(%arg0: i32) -> (i32, i32) {
    %c0_i32 = arith.constant 0 : i32
    %c0_i32_0 = arith.constant 0 : i32
    return %arg0, %c0_i32 : i32, i32
  }
}

</mosaic_0001>

<bundles_post_ra>
// kernel: tpu_custom_call.1
= control target key start
LH: loop header
LB: loop body
LE: loop exit
PB: predicated region body
PF: predicated region fallthrough
CT: control target
= control target key end

     0   :  { %s8550_s0 = inlined_call_operand.hbm [shape: f32[128,128], index: 0, kind: input, shape index: {}]   ;;  %s8551_s1 = inlined_call_operand.hbm [shape: f32[128,128], index: 1, kind: input, shape index: {}]   ;;  %s8552_s2 = inlined_call_operand.hbm [shape: bf16[128,128], index: 2, kind: input, shape index: {}]   ;;  %s8553_s3 = inlined_call_operand.hbm [shape: bf16[128,128], index: 3, kind: input, shape index: {}]   ;;  %s8554_s4 = inlined_call_operand.hbm [shape: bf16[384,256], index: 4, kind: input, shape index: {}]   ;;  %s8555_s5 = inlined_call_operand.hbm [shape: bf16[384,384], index: 5, kind: input, shape index: {}]   ;;  %s8556_s6 = inlined_call_operand.hbm [shape: bf16[5,384,128], index: 6, kind: input, shape index: {}]   ;;  %s8557_s7 = inlined_call_operand.hbm [shape: bf16[384,128], index: 7, kind: input, shape index: {}]   ;;  %s8558_s8 = inlined_call_operand.hbm [shape: f32[13,128], index: 8, kind: input, shape index: {}]   ;;  %s8559_s9 = inlined_call_operand.hbm [shape: f32[128,512], index: 9, kind: output, shape index: {}]  }
   0x1   :  { %8611 = sst [smem:[#allocation48_spill]] %s8550_s0 }
   0x2   :  { %8612 = sst [smem:[#allocation49_spill]] %s8552_s2 }
   0x3   :  { %8613 = sst [smem:[#allocation50_spill]] %s8553_s3 }
   0x4   :  { %8614 = sst [smem:[#allocation51_spill]] %s8554_s4 }
   0x5   :  { %8615 = sst [smem:[#allocation52_spill]] %s8555_s5 }
   0x6   :  { %8616 = sst [smem:[#allocation53_spill]] %s8556_s6 }
   0x7   :  { %8617 = sst [smem:[#allocation54_spill]] %s8557_s7 }
   0x8   :  { %8618 = sst [smem:[#allocation55_spill]] %s8558_s8 }
   0x9   :  { %14 = vsyncpa [#allocation3], 0 }
   0xa   :  { %16 = vsyncpa [#allocation3 + $0x1], 0 }
   0xb   :  { %17 = vsyncpa [#allocation6], 0 }
   0xc   :  { %19 = vsyncpa [#allocation6 + $0x1], 0 }
   0xd   :  { %20 = vsyncpa [#allocation9], 0 }
   0xe   :  { %21 = vsyncpa [#allocation12], 0 }
   0xf   :  { %22 = vsyncpa [#allocation15], 0 }
  0x10   :  { %23 = vsyncpa [#allocation4], 0 }
  0x11   :  { %25 = vsyncpa [#allocation4 + $0x1], 0  ;;  %s7035_s30 = smov 0   ;;  %s7037_s10 = smov 0  }
  0x12   :  { %s7039_s11 = smov 0   ;;  %s7041_s12 = smov 0  }
  0x13 LB: > { %s6966_s13 = smov [#allocation7]   ;;  %s7056_s15 = sadd.s32 4294967295, %s6964_s12   ;;  %s6964_s12 = sphi %s7041_s12, %s8741_s12   ;;  %s6960_s11 = sphi %s7039_s11, %s8740_s11   ;;  %s6956_s10 = sphi %s7037_s10, %s8739_s10   ;;  %s6952_s30 = sphi %s7035_s30, %s8738_s30  }
  0x14   : > { %s273_s14 = sshll.u32 %s6966_s13, 4  ;;  %p5045_p0 = scmp.ge.s32.totalorder %s6964_s12, 1  ;;  %s274_s14 = int_to_ptr.vmem [resolvable:$true] %s273_s14 }
  0x15   : > { %p8564_p1 = scmp.eq.s32.totalorder %s7056_s15, 0  ;;  %p261_p2 = scmp.lt.s32.totalorder %s6964_s12, 3 }
  0x16   : > { %s6967_s17 = smov [#allocation8]   ;;  %s6968_s20 = smov [#allocation11]  }
  0x17   : > { %p7061_p3 = pnand %p5045_p0, %p261_p2  ;;  %s286_s18 = sshll.u32 %s6967_s17, 4  ;;  %s7074_s18 = int_to_ptr.vmem [resolvable:$true] %s286_s18 }
  0x18   : > { %s312_s21 = sshll.u32 %s6968_s20, 4  ;;  %s6653_s23 = scalar_lea.vmem %s274_s14, 1024  ;;  %s7076_s21 = int_to_ptr.vmem [resolvable:$true] %s312_s21 }
  0x19   : > { %p6215_p5 = pneg %p7061_p3  ;;  %p6654_p8 = scmp.ne.s32.totalorder %s274_s14, %s6653_s23 }
  0x1a   : > { %p6661_p11 = scmp.lt.s32.totalorder %s274_s14, %s274_s14  ;;  %p6662_p12 = scmp.lt.s32.totalorder %s6653_s23, %s6653_s23 }
  0x1b   : > { %p7070_p6 = pnand %p6215_p5, %p8564_p1 }
  0x1c   : > { %p6663_p13 = por %p6662_p12, %p6661_p11 }
  0x1d   : > { %p7080_p7 = pneg %p7070_p6 }
  0x1f   : > { %p6656_p9 = pnand %p6654_p8, %p7080_p7 }
  0x21   : > { %p6657_p10 = pneg %p6656_p9 }
  0x23   : > { %p6664_p0 = pnand %p6663_p13, %p6657_p10 }
  0x25   : > { %6667 = shalt.err (!%p6664_p0)
}
  0x26   : > { %s6969_s24 = smov 64   ;;  %s6970_s25 = smov 4  }
  0x27   : > { %s8622_s2 = sld [smem:[#allocation49_spill]]  ;;  %s6679_s28 = scalar_lea.vmem %s7074_s18, 1024 }
  0x28   : > { %p6680_p2 = scmp.ne.s32.totalorder %s7074_s18, %s6679_s28  ;;  %p6687_p9 = scmp.lt.s32.totalorder %s7074_s18, %s7074_s18 }
  0x29   : > { %p6688_p10 = scmp.lt.s32.totalorder %s6679_s28, %s6679_s28 }
  0x2a   : > { %p6682_p5 = pnand %p6680_p2, %p7080_p7 }
  0x2b   : > { %p6689_p11 = por %p6688_p10, %p6687_p9 }
  0x2c   : > { %p6683_p8 = pneg %p6682_p5 }
  0x2d   : > { %6218 = dma.hbm_to_vmem [thread:$0]  (!%p7070_p6), %s8622_s2, 1024, %s274_s14, [#allocation6], %s6969_s24, %s6969_s24, %s6970_s25  }
  0x2e   : > { %p6690_p12 = pnand %p6689_p11, %p6683_p8 }
  0x30   : > { %6693 = shalt.err (!%p6690_p12)
}
  0x31   : > { %s8623_s3 = sld [smem:[#allocation50_spill]]  ;;  %s6705_s14 = scalar_lea.vmem %s7076_s21, 9216 }
  0x32   : > { %p6706_p13 = scmp.ne.s32.totalorder %s7076_s21, %s6705_s14  ;;  %p6713_p5 = scmp.lt.s32.totalorder %s7076_s21, %s7076_s21 }
  0x33   : > { %p6714_p8 = scmp.lt.s32.totalorder %s6705_s14, %s6705_s14 }
  0x34   : > { %p6708_p0 = pnand %p6706_p13, %p7080_p7 }
  0x35   : > { %p6715_p9 = por %p6714_p8, %p6713_p5 }
  0x36   : > { %p6709_p2 = pneg %p6708_p0 }
  0x37   : > { %6221 = dma.hbm_to_vmem [thread:$0]  (!%p7070_p6), %s8623_s3, 1024, %s7074_s18, [#allocation9], %s6969_s24, %s6969_s24, %s6970_s25  }
  0x38   : > { %p6716_p10 = pnand %p6715_p9, %p6709_p2 }
  0x3a   : > { %6719 = shalt.err (!%p6716_p10)
}
  0x3b   : > { %s6971_s17 = smov 192   ;;  %s6972_s20 = smov 12  }
  0x3c   : > { %s8624_s5 = sld [smem:[#allocation52_spill]]  ;;  %s6973_s18 = smov [#allocation14]  }
  0x3d   : > { %s338_s27 = sshll.u32 %s6973_s18, 4  ;;  %s6974_s28 = smov [#allocation10]   ;;  %s339_s27 = int_to_ptr.vmem [resolvable:$true] %s338_s27 }
  0x3e   : > { %s299_s29 = sshll.u32 %s6974_s28, 4  ;;  %s6731_s13 = scalar_lea.vmem %s339_s27, 3072  ;;  %s300_s29 = int_to_ptr.vmem [resolvable:$true] %s299_s29 }
  0x3f   : > { %p6732_p11 = scmp.ne.s32.totalorder %s339_s27, %s6731_s13  ;;  %p6739_p0 = scmp.lt.s32.totalorder %s339_s27, %s339_s27 }
  0x40   : > { %p6740_p2 = scmp.lt.s32.totalorder %s6731_s13, %s6731_s13 }
  0x41   : > { %p6734_p12 = pnand %p6732_p11, %p7080_p7 }
  0x42   : > { %6227 = dma.hbm_to_vmem [thread:$0]  (!%p7070_p6), %s8624_s5, 9216, %s7076_s21, [#allocation12], %s6971_s17, %s6971_s17, %s6972_s20  }
  0x43   : > { %p6735_p13 = pneg %p6734_p12  ;;  %p6741_p5 = por %p6740_p2, %p6739_p0 }
  0x45   : > { %p6742_p8 = pnand %p6741_p5, %p6735_p13 }
  0x47   : > { %6745 = shalt.err (!%p6742_p8)
}
  0x48   : > { %s8625_s7 = sld [smem:[#allocation54_spill]]  ;;  %s6757_s17 = scalar_lea.vmem %s300_s29, 6144 }
  0x49   : > { %p6758_p9 = scmp.ne.s32.totalorder %s300_s29, %s6757_s17  ;;  %p6765_p12 = scmp.lt.s32.totalorder %s300_s29, %s300_s29 }
  0x4a   : > { %p6766_p0 = scmp.lt.s32.totalorder %s6757_s17, %s6757_s17 }
  0x4b   : > { %p6760_p10 = pnand %p6758_p9, %p7080_p7 }
  0x4c   : > { %p6767_p13 = por %p6766_p0, %p6765_p12 }
  0x4d   : > { %p6761_p11 = pneg %p6760_p10 }
  0x4e   : > { %6233 = dma.hbm_to_vmem [thread:$0]  (!%p7070_p6), %s8625_s7, 3072, %s339_s27, [#allocation15], %s6969_s24, %s6969_s24, %s6970_s25  }
  0x4f   : > { %p6768_p2 = pnand %p6767_p13, %p6761_p11 }
  0x51   : > { %6771 = shalt.err (!%p6768_p2)
}
  0x52   : > { %s8560_s20 = smov 128   ;;  %s8562_s23 = smov 8  }
  0x53   : > { %s8626_s4 = sld [smem:[#allocation51_spill]]  ;;  %s6977_s27 = smov [#allocation13]  }
  0x54   : > { %s325_s28 = sshll.u32 %s6977_s27, 4  ;;  %s6978_s13 = smov [#allocation16]   ;;  %s326_s28 = int_to_ptr.vmem [resolvable:$true] %s325_s28 }
  0x55   : > { %s351_s21 = sshll.u32 %s6978_s13, 4  ;;  %s6783_s14 = scalar_lea.vmem %s326_s28, 15360  ;;  %s352_s21 = int_to_ptr.vmem [resolvable:$true] %s351_s21 }
  0x56   : > { %p6784_p5 = scmp.ne.s32.totalorder %s326_s28, %s6783_s14  ;;  %p6791_p10 = scmp.lt.s32.totalorder %s326_s28, %s326_s28 }
  0x57   : > { %p6792_p11 = scmp.lt.s32.totalorder %s6783_s14, %s6783_s14 }
  0x58   : > { %p6786_p8 = pnand %p6784_p5, %p7080_p7 }
  0x59   : > { %6224 = dma.hbm_to_vmem [thread:$0]  (!%p7070_p6), %s8626_s4, 6144, %s300_s29, [#allocation9], %s8560_s20, %s8560_s20, %s8562_s23  }
  0x5a   : > { %p6787_p9 = pneg %p6786_p8  ;;  %p6793_p12 = por %p6792_p11, %p6791_p10 }
  0x5c   : > { %p6794_p0 = pnand %p6793_p12, %p6787_p9 }
  0x5e   : > { %6797 = shalt.err (!%p6794_p0)
}
  0x5f   : > { %s8627_s6 = sld [smem:[#allocation53_spill]]  ;;  %s6809_s26 = scalar_lea.vmem %s352_s21, 256 }
  0x60   : > { %p6810_p13 = scmp.ne.s32.totalorder %s352_s21, %s6809_s26  ;;  %p6817_p8 = scmp.lt.s32.totalorder %s352_s21, %s352_s21 }
  0x61   : > { %p6818_p10 = scmp.lt.s32.totalorder %s6809_s26, %s6809_s26 }
  0x62   : > { %p6812_p2 = pnand %p6810_p13, %p7080_p7 }
  0x63   : > { %p6819_p9 = por %p6818_p10, %p6817_p8 }
  0x64   : > { %p6813_p5 = pneg %p6812_p2 }
  0x65   : > { %6230 = dma.hbm_to_vmem [thread:$0]  (!%p7070_p6), %s8627_s6, 15360, %s326_s28, [#allocation12], %s6969_s24, %s6969_s24, %s6970_s25  }
  0x66   : > { %p6820_p11 = pnand %p6819_p9, %p6813_p5 }
  0x68   : > { %6823 = shalt.err (!%p6820_p11)
}
  0x69   : > { %s8628_s8 = sld [smem:[#allocation55_spill]]  ;;  %s5044_s19 = sadd.s32 4294967294, %s6964_s12  }
  0x6a   : > { %s7163_s22 = sadd.s32 1, %s6964_s12   ;;  %s38_s24 = sadd.s32 1, %s6960_s11 }
  0x6b   : > { %s35_s25 = ssub.s32 %s6964_s12, %s7163_s22  ;;  %p45_p7 = scmp.ne.s32.totalorder %s6960_s11, %s6956_s10 }
  0x6c   : > { %p36_p12 = scmp.eq.s32.totalorder %s35_s25, 0  ;;  %p46_p0 = scmp.eq.s32.totalorder %s6964_s12, 0 }
  0x6d   : > { %p51_p13 = scmp.ne.s32.totalorder %s6956_s10, %s6952_s30  ;;  %p248_p2 = scmp.eq.s32.totalorder %s7056_s15, 1 }
  0x6e   : > { %s7175_s28 = scalar_select %p36_p12, %s6960_s11, %s38_s24  }
  0x6f   : > { %6236 = dma.hbm_to_vmem [thread:$0]  (!%p7070_p6), %s8628_s8, 256, %s352_s21, [#allocation15], %s8560_s20, %s8560_s20, %s8562_s23  }
  0x70   : > { %p47_p5 = por %p46_p0, %p45_p7  ;;  %p7179_p8 = por %p8564_p1, %p51_p13 }
  0x71   : > { %p7183_p6 = por %p248_p2, %p45_p7  ;;  %p254_p10 = scmp.eq.s32.totalorder %s5044_s19, 1 }
  0x72   : > { %s8629_s13 = scalar_select %p7179_p8, 1, 0 }
  0x73   : > { %s8630_s21 = scalar_select %p7183_p6, 1, 0 }
  0x74   : > { %p6255_p9 = scmp.lt.s32.totalorder %s6964_s12, 2  ;;  %s365_s14 = sand.u32 1, %s6960_s11  }
  0x75   : > { %p7189_p11 = por %p254_p10, %p51_p13  ;;  %s7193_s17 = sshll.u32 %s365_s14, 6 }
  0x76   : > { %s5573_s26 = sshll.u32 %s6964_s12, 10  ;;  %s8632_s0 = sld [smem:[#allocation48_spill]] }
  0x77   : > { %s8631_s29 = scalar_select %p7189_p11, 1, 0 }
  0x78   : > { %s369_s25 = scalar_lea.vmem [#allocation2], %s7193_s17  ;;  %p7202_p7 = pnand %p6255_p9, %p47_p5 }
  0x79   : > { %s376_s19 = sshll.u32 %s369_s25, 4  ;;  %s7211_s3 = scalar_lea.hbm %s8551_s1, %s5573_s26  ;;  %s7206_s19 = int_to_ptr.vmem [resolvable:$true] %s376_s19 }
  0x7a   : > { %s7213_s18 = scalar_lea.sflag [#allocation3], %s365_s14  ;;  %p6826_p0 = pneg %p7202_p7 }
  0x7c   : > { %s7199_s24 = scalar_lea.hbm %s8632_s0, %s5573_s26  ;;  %s6829_s5 = scalar_lea.hbm %s8632_s0, 2048 }
  0x7d   : > { %s6824_s27 = scalar_lea.hbm %s7199_s24, 1024  ;;  %p6830_p5 = scmp.lt.s32.totalorder %s7199_s24, %s8632_s0 }
  0x7e   : > { %p6825_p12 = scmp.ne.s32.totalorder %s7199_s24, %s6824_s27  ;;  %p6831_p10 = scmp.lt.s32.totalorder %s6829_s5, %s6824_s27 }
  0x80   : > { %p6827_p13 = pnand %p6826_p0, %p6825_p12  ;;  %p6832_p9 = por %p6831_p10, %p6830_p5 }
  0x82   : > { %p6828_p2 = pneg %p6827_p13 }
  0x84   : > { %p6833_p4 = pnand %p6832_p9, %p6828_p2 }
  0x86   : > { %6836 = shalt.err (!%p6833_p4)
}
  0x87   : > { %s6837_s2 = scalar_lea.vmem %s7206_s19, 1024  ;;  %s6979_s4 = smov [#allocation2]  }
  0x88   : > { %p6838_p1 = scmp.ne.s32.totalorder %s7206_s19, %s6837_s2  ;;  %s6842_s23 = sshll.u32 %s6979_s4, 4  ;;  %s6843_s23 = int_to_ptr.vmem [resolvable:$false] %s6842_s23 }
  0x89   : > { %s6844_s14 = scalar_lea.vmem %s6843_s23, 2048  ;;  %p6845_p11 = scmp.lt.s32.totalorder %s7206_s19, %s6843_s23 }
  0x8a   : > { %p6840_p12 = pnand %p6838_p1, %p6826_p0  ;;  %p6846_p6 = scmp.lt.s32.totalorder %s6844_s14, %s6837_s2 }
  0x8c   : > { %p6841_p13 = pneg %p6840_p12  ;;  %p6847_p8 = por %p6846_p6, %p6845_p11 }
  0x8e   : > { %p6848_p5 = pnand %p6847_p8, %p6841_p13 }
  0x90   : > { %6851 = shalt.err (!%p6848_p5)
}
  0x91   : > { %s8634_s5 = smov 8   ;;  %s8635_s6 = smov 128  }
  0x92   : > { %6240 = dma.hbm_to_vmem [thread:$0]  (!%p7202_p7), %s7199_s24, 1024, %s7206_s19, %s7213_s18, %s8635_s6, %s8635_s6, %s8634_s5  }
  0x93   : > { %s390_s7 = scalar_lea.vmem [#allocation5], %s7193_s17  ;;  %s386_s27 = sand.u32 1, %s6964_s12  }
  0x94   : > { %s397_s26 = sshll.u32 %s390_s7, 4  ;;  %s387_s25 = scalar_lea.sflag [#allocation6], %s386_s27  ;;  %s7245_s26 = int_to_ptr.vmem [resolvable:$true] %s397_s26 }
  0x95   : > { %s6852_s2 = scalar_lea.hbm %s7211_s3, 1024  ;;  %s6857_s14 = scalar_lea.hbm %s8551_s1, 2048 }
  0x96   : > { %p6853_p1 = scmp.ne.s32.totalorder %s7211_s3, %s6852_s2  ;;  %p6858_p6 = scmp.lt.s32.totalorder %s7211_s3, %s8551_s1 }
  0x97   : > { %p6859_p11 = scmp.lt.s32.totalorder %s6857_s14, %s6852_s2 }
  0x98   : > { %p6855_p4 = pnand %p6853_p1, %p6826_p0 }
  0x99   : > { %p6860_p2 = por %p6859_p11, %p6858_p6 }
  0x9a   : > { %p6856_p8 = pneg %p6855_p4 }
  0x9c   : > { %p6861_p10 = pnand %p6860_p2, %p6856_p8 }
  0x9e   : > { %6864 = shalt.err (!%p6861_p10)
}
  0x9f   : > { %s6865_s17 = scalar_lea.vmem %s7245_s26, 1024  ;;  %s6980_s24 = smov [#allocation5]  }
  0xa0   : > { %p6866_p9 = scmp.ne.s32.totalorder %s7245_s26, %s6865_s17  ;;  %s6870_s19 = sshll.u32 %s6980_s24, 4  ;;  %s6871_s19 = int_to_ptr.vmem [resolvable:$false] %s6870_s19 }
  0xa1   : > { %s6872_s18 = scalar_lea.vmem %s6871_s19, 2048  ;;  %p6873_p5 = scmp.lt.s32.totalorder %s7245_s26, %s6871_s19 }
  0xa2   : > { %p6868_p12 = pnand %p6866_p9, %p6826_p0  ;;  %p6874_p1 = scmp.lt.s32.totalorder %s6872_s18, %s6865_s17 }
  0xa4   : > { %p6869_p13 = pneg %p6868_p12  ;;  %p6875_p4 = por %p6874_p1, %p6873_p5 }
  0xa6   : > { %p6876_p6 = pnand %p6875_p4, %p6869_p13 }
  0xa8   : > { %6879 = shalt.err (!%p6876_p6)
}
  0xa9   : > { %6243 = dma.hbm_to_vmem [thread:$0]  (!%p7202_p7), %s7211_s3, 1024, %s7245_s26, %s387_s25, %s8635_s6, %s8635_s6, %s8634_s5  }
  0xaa   : > { %409 = sbr.rel (%p7061_p3) target bundleno = 1174 (0x496), region = 56 }
  0xaf   : > { %s7275_s0 = sand.u32 1, %s6956_s10   ;;  %p8636_p0 = scmp.ne.s32.totalorder %s8629_s13, 0 }
  0xb0   : > { %s5061_s8 = sshll.u32 %s7275_s0, 6  ;;  %s412_s7 = scalar_lea.sflag [#allocation3], %s7275_s0 }
  0xb1   : > { %s7279_s27 = scalar_lea.vmem [#allocation2], %s5061_s8 }
  0xb2   : > { %6923 = dma.done.wait (%p8636_p0), %s412_s7, 1024  }
  0xb3   : > { %6925 = vsyncadd (%p8636_p0), %s412_s7, 4294966272  ;;  %s420_s3 = sand.u32 1, %s7056_s15   ;;  %s7286_s20 = scalar_lea.vmem [#allocation5], %s5061_s8 }
  0xb4   : > { %s421_s16 = scalar_lea.sflag [#allocation6], %s420_s3 }
  0xb5   : > { %6927 = dma.done.wait (%p8636_p0), %s421_s16, 1024  }
  0xb6   : > { %6929 = vsyncadd (%p8636_p0), %s421_s16, 4294966272  ;;  %p8637_p3 = scmp.eq.s32.totalorder %s7056_s15, 0 }
  0xb8   : > { %6931 = dma.done.wait (%p8637_p3), [#allocation6], 1024   ;;  %p8638_p7 = pmov %p8637_p3 }
  0xb9   : > { %p8639_p8 = pmov %p8637_p3 }
  0xba   : > { %6933 = vsyncadd (%p8638_p7), [#allocation6], 4294966272 }
  0xbb   : > { %6935 = dma.done.wait (%p8639_p8), [#allocation9], 7168   ;;  %p8640_p11 = pmov %p8637_p3 }
  0xbc   : > { %p8641_p2 = pmov %p8637_p3 }
  0xbd   : > { %6937 = vsyncadd (%p8640_p11), [#allocation9], 4294960128 }
  0xbe   : > { %6939 = dma.done.wait (%p8641_p2), [#allocation12], 24576   ;;  %p8642_p10 = pmov %p8641_p2 }
  0xbf   : > { %p8643_p9 = pmov %p8641_p2 }
  0xc0   : > { %6941 = vsyncadd (%p8642_p10), [#allocation12], 4294942720 }
  0xc1   : > { %6943 = dma.done.wait (%p8643_p9), [#allocation15], 3328   ;;  %p8644_p12 = pmov %p8641_p2 }
  0xc2   : > { %v6312_v0 = vld [vmem:[#allocation7 + $0x38] sm:$0xff]   ;;  %v6313_v1 = vld [vmem:[#allocation7 + $0x30] sm:$0xff]   ;;  %v6314_v2 = vld [vmem:[#allocation7 + $0x28] sm:$0xff]   ;;  %vm869_vm0 = vcmask 1040384   ;;  %vm902_vm1 = vcmask 1046528   ;;  %s5070_s13 = sshll.u32 %s7275_s0, 8 }
  0xc3   : > { %6945 = vsyncadd (%p8644_p12), [#allocation15], 4294963968  ;;  %5965 = vmatprep.subr.bf16.mxu0 %v6312_v0  ;;  %v6315_v3 = vld [vmem:[#allocation7 + $0x20] sm:$0xff]   ;;  %v548_v5 = vld [vmem:[%s7279_s27 + $0x8] sm:$0xff]  ;;  %s8294_s5 = scalar_lea.vmem [#allocation17], %s5070_s13  ;;  %s5576_s6 = sshll.u32 %s7056_s15, 12 }
  0xc4   : > { %5966 = vmatpush3.bf16.msra.mxu0 %v6312_v0  ;;  %v547_v4 = vld [vmem:[%s7279_s27] sm:$0xff]  ;;  %v556_v7 = vmax.f32 %v548_v5, 0.0  ;;  %v6320_v8 = vld [vmem:[#allocation8 + $0x38] sm:$0xff]   ;;  %v6321_v10 = vld [vmem:[#allocation8 + $0x30] sm:$0xff]   ;;  %s4882_s26 = sshll.u32 %s8294_s5, 4  ;;  %s8503_s4 = scalar_lea.hbm %s8559_s9, %s5576_s6  ;;  %s8505_s26 = int_to_ptr.vmem [resolvable:$true] %s4882_s26 }
  0xc5   : > { %5967 = vmatprep.subr.bf16.mxu0 %v6313_v1  ;;  %v555_v6 = vmax.f32 %v547_v4, 0.0  ;;  %v6316_v11 = vld [vmem:[#allocation7 + $0x18] sm:$0xff]   ;;  %5989 = vmatprep.subr.bf16.mxu1 %v6320_v8  ;;  %v6322_v12 = vld [vmem:[#allocation8 + $0x28] sm:$0xff]   ;;  %v6317_v13 = vld [vmem:[#allocation7 + $0x10] sm:$0xff]   ;;  %s4868_s23 = scalar_lea.sflag [#allocation4], %s7275_s0  ;;  %s6880_s14 = scalar_lea.vmem %s8505_s26, 4096 }
  0xc6   : > { %5990 = vmatpush3.bf16.msra.mxu1 %v6320_v8  ;;  %v6323_v14 = vld [vmem:[#allocation8 + $0x20] sm:$0xff]   ;;  %v701_v16 = vld [vmem:[%s7286_s20 + $0x8] sm:$0xff]  ;;  %v6324_v20 = vld [vmem:[#allocation8 + $0x18] sm:$0xff]   ;;  %p6881_p13 = scmp.ne.s32.totalorder %s8505_s26, %s6880_s14  ;;  %p8735_p5 = scmp.ne.s32.totalorder %s8630_s21, 0 }
  0xc7   : > { %v563_v9 = vpack.c.bf16 %v556_v7, %v555_v6  ;;  %5991 = vmatprep.subr.bf16.mxu1 %v6321_v10  ;;  %v700_v15 = vld [vmem:[%s7286_s20] sm:$0xff]  ;;  %v6318_v17 = vld [vmem:[#allocation7 + $0x8] sm:$0xff]   ;;  %v709_v19 = vmax.f32 %v701_v16, 0.0  ;;  %v549_v23 = vld [vmem:[%s7279_s27 + $0x10] sm:$0xff]  ;;  %s6982_s15 = smov [#allocation17]  }
  0xc8   : > { %5968 = vmatpush3.bf16.msra.mxu0 %v6313_v1  ;;  %v708_v18 = vmax.f32 %v700_v15, 0.0  ;;  %v6319_v21 = vld [vmem:[#allocation7] sm:$0xff]   ;;  %v550_v24 = vld [vmem:[%s7279_s27 + $0x18] sm:$0xff]  ;;  %v552_v26 = vld [vmem:[%s7279_s27 + $0x28] sm:$0xff]  ;;  %v557_v27 = vmax.f32 %v549_v23, 0.0  ;;  %p6882_p1 = pnand %p6881_p13, %p8735_p5  ;;  %s6884_s17 = sshll.u32 %s6982_s15, 4  ;;  %s6885_s17 = int_to_ptr.vmem [resolvable:$false] %s6884_s17 }
  0xc9   : > { %5969 = vmatprep.subr.bf16.mxu0 %v6314_v2  ;;  %5981 = vmatprep.mubr.bf16.mxu0 %v563_v9  ;;  %v551_v25 = vld [vmem:[%s7279_s27 + $0x20] sm:$0xff]  ;;  %v558_v28 = vmax.f32 %v550_v24, 0.0  ;;  %v6325_v29 = vld [vmem:[#allocation8 + $0x10] sm:$0xff]   ;;  %v560_v31 = vmax.f32 %v552_v26, 0.0  ;;  %v554_v34 = vld [vmem:[%s7279_s27 + $0x38] sm:$0xff]  ;;  %s6886_s24 = scalar_lea.vmem %s6885_s17, 8192  ;;  %p6887_p6 = scmp.lt.s32.totalorder %s8505_s26, %s6885_s17 }
  0xca   : > { %5992 = vmatpush3.bf16.msra.mxu1 %v6321_v10  ;;  %v716_v22 = vpack.c.bf16 %v709_v19, %v708_v18  ;;  %v559_v30 = vmax.f32 %v551_v25, 0.0  ;;  %v6330_v32 = vld [vmem:[#allocation10 + $0x74] ss:$8 sps:$4 sm:$0xff]   ;;  %v6326_v36 = vld [vmem:[#allocation8 + $0x8] sm:$0xff]   ;;  %v6328_v38 = vld [vmem:[#allocation10 + $0x70] ss:$8 sps:$4 sm:$0xff]   ;;  %p6883_p4 = pneg %p6882_p1  ;;  %p6888_p0 = scmp.lt.s32.totalorder %s6886_s24, %s6880_s14 }
  0xcb   : > { %5993 = vmatprep.subr.bf16.mxu1 %v6322_v12  ;;  %v553_v33 = vld [vmem:[%s7279_s27 + $0x30] sm:$0xff]  ;;  %v564_v35 = vpack.c.bf16 %v558_v28, %v557_v27  ;;  %v6327_v39 = vld [vmem:[#allocation8] sm:$0xff]   ;;  %v703_v42 = vld [vmem:[%s7286_s20 + $0x18] sm:$0xff]  ;;  %v562_v45 = vmax.f32 %v554_v34, 0.0 }
  0xcc   : > { %5970 = vmatpush3.bf16.msra.mxu0 %v6314_v2  ;;  %6005 = vmatprep.mubr.bf16.mxu1 %v716_v22  ;;  %v565_v37 = vpack.c.bf16 %v560_v31, %v559_v30  ;;  %v702_v40 = vld [vmem:[%s7286_s20 + $0x10] sm:$0xff]  ;;  %v6333_v41 = vld [vmem:[#allocation10 + $0x64] ss:$8 sps:$4 sm:$0xff]   ;;  %v561_v44 = vmax.f32 %v553_v33, 0.0  ;;  %v6331_v47 = vld [vmem:[#allocation10 + $0x60] ss:$8 sps:$4 sm:$0xff]   ;;  %p6889_p3 = por %p6888_p0, %p6887_p6 }
  0xcd   : > { %5971 = vmatprep.subr.bf16.mxu0 %v6315_v3  ;;  %v704_v43 = vld [vmem:[%s7286_s20 + $0x20] sm:$0xff]  ;;  %v705_v46 = vld [vmem:[%s7286_s20 + $0x28] sm:$0xff]  ;;  %v710_v48 = vmax.f32 %v702_v40, 0.0  ;;  %v711_v49 = vmax.f32 %v703_v42, 0.0  ;;  %v6336_v50 = vld [vmem:[#allocation10 + $0x54] ss:$8 sps:$4 sm:$0xff]  }
  0xce   : > { %5994 = vmatpush3.bf16.msra.mxu1 %v6322_v12  ;;  %v712_v51 = vmax.f32 %v704_v43, 0.0  ;;  %v713_v52 = vmax.f32 %v705_v46, 0.0  ;;  %v566_v53 = vpack.c.bf16 %v562_v45, %v561_v44  ;;  %v706_v54 = vld [vmem:[%s7286_s20 + $0x30] sm:$0xff]  ;;  %v707_v58 = vld [vmem:[%s7286_s20 + $0x38] sm:$0xff]  ;;  %v6339_v59 = vld [vmem:[#allocation10 + $0x44] ss:$8 sps:$4 sm:$0xff]   ;;  %v498_v43 = vlaneseq  ;;  %p6890_p7 = pnand %p6889_p3, %p6883_p4 }
  0xcf   : > { %5995 = vmatprep.subr.bf16.mxu1 %v6323_v14  ;;  %v6354_v55 = vld [vmem:[#allocation10 + $0x174] ss:$8 sps:$4 sm:$0xff]   ;;  %v6334_v56 = vld [vmem:[#allocation10 + $0x50] ss:$8 sps:$4 sm:$0xff]   ;;  %v717_v57 = vpack.c.bf16 %v711_v49, %v710_v48  ;;  %v6360_v62 = vld [vmem:[#allocation10 + $0x164] ss:$8 sps:$4 sm:$0xff]  }
  0xd0   : > { %5972 = vmatpush3.bf16.msra.mxu0 %v6315_v3  ;;  %v718_v60 = vpack.c.bf16 %v713_v52, %v712_v51  ;;  %v6352_v61 = vld [vmem:[#allocation10 + $0x170] ss:$8 sps:$4 sm:$0xff]   ;;  %v714_v63 = vmax.f32 %v706_v54, 0.0  ;;  %v715_v0 = vmax.f32 %v707_v58, 0.0  ;;  %v6337_v1 = vld [vmem:[#allocation10 + $0x40] ss:$8 sps:$4 sm:$0xff]  }
  0xd1   : > { %5973 = vmatprep.subr.bf16.mxu0 %v6316_v11  ;;  %v6342_v2 = vld [vmem:[#allocation10 + $0x34] ss:$8 sps:$4 sm:$0xff]   ;;  %v6358_v3 = vld [vmem:[#allocation10 + $0x160] ss:$8 sps:$4 sm:$0xff]   ;;  %v6340_v5 = vld [vmem:[#allocation10 + $0x30] ss:$8 sps:$4 sm:$0xff]  }
  0xd2   : > { %5996 = vmatpush3.bf16.msra.mxu1 %v6323_v14  ;;  %v6366_v4 = vld [vmem:[#allocation10 + $0x154] ss:$8 sps:$4 sm:$0xff]   ;;  %v6345_v6 = vld [vmem:[#allocation10 + $0x24] ss:$8 sps:$4 sm:$0xff]   ;;  %v6364_v7 = vld [vmem:[#allocation10 + $0x150] ss:$8 sps:$4 sm:$0xff]   ;;  %v719_v8 = vpack.c.bf16 %v715_v0, %v714_v63 }
  0xd3   : > { %5997 = vmatprep.subr.bf16.mxu1 %v6324_v20  ;;  %v6372_v9 = vld [vmem:[#allocation10 + $0x144] ss:$8 sps:$4 sm:$0xff]   ;;  %v6343_v10 = vld [vmem:[#allocation10 + $0x20] ss:$8 sps:$4 sm:$0xff]   ;;  %v6346_v14 = vld [vmem:[#allocation10 + $0x10] ss:$8 sps:$4 sm:$0xff]  }
  0xd4   : > { %5974 = vmatpush3.bf16.msra.mxu0 %v6316_v11  ;;  %v6348_v11 = vld [vmem:[#allocation10 + $0x14] ss:$8 sps:$4 sm:$0xff]   ;;  %v6370_v12 = vld [vmem:[#allocation10 + $0x140] ss:$8 sps:$4 sm:$0xff]   ;;  %v6351_v15 = vld [vmem:[#allocation10 + $0x4] ss:$8 sps:$4 sm:$0xff]  }
  0xd5   : > { %5975 = vmatprep.subr.bf16.mxu0 %v6317_v13  ;;  %v6376_v16 = vld [vmem:[#allocation10 + $0x130] ss:$8 sps:$4 sm:$0xff]   ;;  %v6357_v18 = vld [vmem:[#allocation10 + $0xf4] ss:$8 sps:$4 sm:$0xff]   ;;  %v6375_v24 = vld [vmem:[#allocation10 + $0xc4] ss:$8 sps:$4 sm:$0xff]  }
  0xd6   : > { %5998 = vmatpush3.bf16.msra.mxu1 %v6324_v20  ;;  %v6355_v19 = vld [vmem:[#allocation10 + $0xf0] ss:$8 sps:$4 sm:$0xff]   ;;  %v6363_v20 = vld [vmem:[#allocation10 + $0xe4] ss:$8 sps:$4 sm:$0xff]   ;;  %v6369_v22 = vld [vmem:[#allocation10 + $0xd4] ss:$8 sps:$4 sm:$0xff]  }
  0xd7   : > { %5999 = vmatprep.subr.bf16.mxu1 %v6325_v29  ;;  %v6367_v23 = vld [vmem:[#allocation10 + $0xd0] ss:$8 sps:$4 sm:$0xff]   ;;  %v6373_v25 = vld [vmem:[#allocation10 + $0xc0] ss:$8 sps:$4 sm:$0xff]   ;;  %v6381_v26 = vld [vmem:[#allocation10 + $0xb4] ss:$8 sps:$4 sm:$0xff]  }
  0xd8   : > { %5976 = vmatpush3.bf16.msra.mxu0 %v6317_v13  ;;  %v6378_v13 = vld [vmem:[#allocation10 + $0x134] ss:$8 sps:$4 sm:$0xff]   ;;  %v6379_v27 = vld [vmem:[#allocation10 + $0xb0] ss:$8 sps:$4 sm:$0xff]   ;;  %v6384_v28 = vld [vmem:[#allocation10 + $0x124] ss:$8 sps:$4 sm:$0xff]  }
  0xd9   : > { %5977 = vmatprep.subr.bf16.mxu0 %v6318_v17  ;;  %v6387_v30 = vld [vmem:[#allocation10 + $0xa4] ss:$8 sps:$4 sm:$0xff]   ;;  %v6385_v31 = vld [vmem:[#allocation10 + $0xa0] ss:$8 sps:$4 sm:$0xff]   ;;  %v6388_v33 = vld [vmem:[#allocation10 + $0x110] ss:$8 sps:$4 sm:$0xff]  }
  0xda   : > { %6000 = vmatpush3.bf16.msra.mxu1 %v6325_v29  ;;  %v6382_v29 = vld [vmem:[#allocation10 + $0x120] ss:$8 sps:$4 sm:$0xff]   ;;  %v6393_v34 = vld [vmem:[#allocation10 + $0x94] ss:$8 sps:$4 sm:$0xff]   ;;  %v6402_v40 = vld [vmem:[#allocation11 + $0xac] ss:$12 sps:$4 sm:$0xff]  }
  0xdb   : > { %6001 = vmatprep.subr.bf16.mxu1 %v6326_v36  ;;  %v6405_v42 = vld [vmem:[#allocation11 + $0x22c] ss:$12 sps:$4 sm:$0xff]   ;;  %v7325_v44 = vshrl.u32 %v498_v43, 7  ;;  %v7328_v46 = vld [vmem:[#allocation16] sm:$0xff] }
  0xdc   : > { %5978 = vmatpush3.bf16.msra.mxu0 %v6318_v17  ;;  %v6349_v17 = vld [vmem:[#allocation10] ss:$8 sps:$4 sm:$0xff]  }
  0xdd   : > { %5979 = vmatprep.subr.bf16.mxu0 %v6319_v21  ;;  %v8570_v45 = vsub.s32 0, %v7325_v44  ;;  %v500_v49 = vadd.s32 8, %v7325_v44  ;;  %v501_v63 = vadd.s32 16, %v7325_v44  ;;  %v502_v0 = vadd.s32 24, %v7325_v44 }
  0xde   : > { %6002 = vmatpush3.bf16.msra.mxu1 %v6326_v36  ;;  %v6396_v36 = vld [vmem:[#allocation10 + $0x104] ss:$8 sps:$4 sm:$0xff]  }
  0xdf   : > { %6003 = vmatprep.subr.bf16.mxu1 %v6327_v39 }
  0xe0   : > { %5980 = vmatpush3.bf16.msra.mxu0 %v6319_v21  ;;  %v6361_v21 = vld [vmem:[#allocation10 + $0xe0] ss:$8 sps:$4 sm:$0xff]  }
  0xe1   : > { %1235 = vmatprep.subr.bf16.mxu0 %v6330_v32  ;;  %v6390_v32 = vld [vmem:[#allocation10 + $0x114] ss:$8 sps:$4 sm:$0xff]  }
  0xe2   : > { %6004 = vmatpush3.bf16.msra.mxu1 %v6327_v39  ;;  %v6397_v39 = vld [vmem:[#allocation10 + $0x80] ss:$8 sps:$4 sm:$0xff]  }
  0xe3   : > { %5982 = vmatmul.mubr.bf16.vlgmr.msra.gmra.mxu0 %v564_v35  ;;  %1308 = vmatprep.subr.bf16.mxu1 %v6354_v55  ;;  %v6391_v35 = vld [vmem:[#allocation10 + $0x90] ss:$8 sps:$4 sm:$0xff]   ;;  %v7344_v55 = vand.u32 7, %v7325_v44 }
  0xe4   : > { %5985 = vmatprep.mubr.bf16.mxu0 %v565_v37  ;;  %1236 = vmatpush1.bf16.msra.mxu0 %v6328_v38  ;;  %v6394_v37 = vld [vmem:[#allocation10 + $0x100] ss:$8 sps:$4 sm:$0xff]   ;;  %v6399_v38 = vld [vmem:[#allocation10 + $0x84] ss:$8 sps:$4 sm:$0xff]  }
  0xe5   : > { %1237 = vmatprep.subr.bf16.mxu0 %v6333_v41  ;;  %6006 = vmatmul.mubr.bf16.vlgmr.msra.gmra.mxu1 %v717_v57  ;;  %v6981_v41 = vmov 0   ;;  %8647 = vst [vmem:[#allocation27_spill] sm:$0xff] %v7344_v55  ;;  %vm515_vm2 = vcmp.ge.s32.totalorder %v7344_v55, 1  ;;  %vm523_vm4 = vcmp.lt.s32.totalorder %v7344_v55, 7 }
  0xe6   : > { %6009 = vmatprep.mubr.bf16.mxu1 %v718_v60  ;;  %1309 = vmatpush1.bf16.msra.mxu1 %v6352_v61 }
  0xe7   : > { %1310 = vmatprep.subr.bf16.mxu1 %v6360_v62 }
  0xe8   : > { %1238 = vmatpush1.bf16.msra.mxu0 %v6331_v47  ;;  %v7333_v47 = vrot.slane %v7328_v46, %v8570_v45 }
  0xe9   : > { %1239 = vmatprep.subr.bf16.mxu0 %v6336_v50 }
  0xea   : > { %1311 = vmatpush1.bf16.msra.mxu1 %v6358_v3 }
  0xeb   : > { %5986 = vmatmul.mubr.bf16.gmra.mxu0 %v566_v53  ;;  %1312 = vmatprep.subr.bf16.mxu1 %v6366_v4 }
  0xec   : > { %1240 = vmatpush1.bf16.msra.mxu0 %v6334_v56  ;;  %v7346_v56 = vand.u32 7, %v500_v49  ;;  %v6417_v49 = vld [vmem:[#allocation11 + $0x1fc] ss:$12 sps:$4 sm:$0xff]  }
  0xed   : > { %1241 = vmatprep.subr.bf16.mxu0 %v6339_v59  ;;  %6010 = vmatmul.mubr.bf16.gmra.mxu1 %v719_v8 }
  0xee   : > { %1313 = vmatpush1.bf16.msra.mxu1 %v6364_v7  ;;  %1340 = vmatprep.mubr.bf16.mxu1 %v6981_v41  ;;  %8648 = vst [vmem:[#allocation28_spill] sm:$0xff] %v7346_v56  ;;  %vm516_vm3 = vcmp.ge.s32.totalorder %v7346_v56, 1  ;;  %vm524_vm5 = vcmp.lt.s32.totalorder %v7346_v56, 7 }
  0xef   : > { %1314 = vmatprep.subr.bf16.mxu1 %v6372_v9  ;;  %vm7377_vm6 = vmpackc.low %vm516_vm3, %vm515_vm2 }
  0xf0   : > { %1242 = vmatpush1.bf16.msra.mxu0 %v6337_v1  ;;  %vm7395_vm7 = vmpackc.low %vm524_vm5, %vm523_vm4 }
  0xf1   : > { %1243 = vmatprep.subr.bf16.mxu0 %v6342_v2 }
  0xf2   : > { %1315 = vmatpush1.bf16.msra.mxu1 %v6370_v12 }
  0xf3   : > { %1316 = vmatprep.subr.bf16.mxu1 %v6378_v13 }
  0xf4   : > { %1244 = vmatpush1.bf16.msra.mxu0 %v6340_v5 }
  0xf5   : > { %1245 = vmatprep.subr.bf16.mxu0 %v6345_v6 }
  0xf6   : > { %1317 = vmatpush1.bf16.msra.mxu1 %v6376_v16 }
  0xf7   : > { %1318 = vmatprep.subr.bf16.mxu1 %v6384_v28 }
  0xf8   : > { %1246 = vmatpush1.bf16.msra.mxu0 %v6343_v10 }
  0xf9   : > { %1247 = vmatprep.subr.bf16.mxu0 %v6348_v11 }
  0xfa   : > { %1319 = vmatpush1.bf16.msra.mxu1 %v6382_v29 }
  0xfb   : > { %1320 = vmatprep.subr.bf16.mxu1 %v6390_v32 }
  0xfc   : > { %1248 = vmatpush1.bf16.msra.mxu0 %v6346_v14  ;;  %v7381_v14 = vand.u32 7, %v501_v63 }
  0xfd   : > { %1249 = vmatprep.subr.bf16.mxu0 %v6351_v15  ;;  %v7383_v15 = vand.u32 7, %v502_v0 }
  0xfe   : > { %1321 = vmatpush1.bf16.msra.mxu1 %v6388_v33  ;;  %8655 = vst [vmem:[#allocation33_spill] sm:$0xff] %v7381_v14  ;;  %vm517_vm8 = vcmp.ge.s32.totalorder %v7381_v14, 1  ;;  %vm525_vm10 = vcmp.lt.s32.totalorder %v7381_v14, 7 }
  0xff   : > { %1322 = vmatprep.subr.bf16.mxu1 %v6396_v36  ;;  %8656 = vst [vmem:[#allocation34_spill] sm:$0xff] %v7383_v15  ;;  %vm518_vm9 = vcmp.ge.s32.totalorder %v7383_v15, 1  ;;  %vm526_vm11 = vcmp.lt.s32.totalorder %v7383_v15, 7 }
 0x100   : > { %1250 = vmatpush1.bf16.msra.mxu0 %v6349_v17  ;;  %vm7441_vm12 = vmpackc.low %vm518_vm9, %vm517_vm8 }
 0x101   : > { %1251 = vmatprep.subr.bf16.mxu0 %v6357_v18  ;;  %vm7459_vm13 = vmpackc.low %vm526_vm11, %vm525_vm10 }
 0x102   : > { %1323 = vmatpush1.bf16.msra.mxu1 %v6394_v37 }
 0x103   : > { %1953 = vmatprep.subr.bf16.mxu1 %v6402_v40  ;;  %v6414_v40 = vld [vmem:[#allocation11 + $0x7c] ss:$12 sps:$4 sm:$0xff]  }
 0x104   : > { %1252 = vmatpush2.bf16.msra.mxu0 %v6355_v19 }
 0x105   : > { %1253 = vmatprep.subr.bf16.mxu0 %v6363_v20  ;;  %v6400_v20 = vld [vmem:[#allocation11 + $0xa8] ss:$12 sps:$4 sm:$0xff]  }
 0x108   : > { %1254 = vmatpush2.bf16.msra.mxu0 %v6361_v21 }
 0x109   : > { %1255 = vmatprep.subr.bf16.mxu0 %v6369_v22 }
 0x10c   : > { %1256 = vmatpush2.bf16.msra.mxu0 %v6367_v23 }
 0x10d   : > { %1257 = vmatprep.subr.bf16.mxu0 %v6375_v24 }
 0x110   : > { %1258 = vmatpush2.bf16.msra.mxu0 %v6373_v25  ;;  %v6403_v25 = vld [vmem:[#allocation11 + $0x228] ss:$12 sps:$4 sm:$0xff]  }
 0x111   : > { %1259 = vmatprep.subr.bf16.mxu0 %v6381_v26  ;;  %v6408_v26 = vld [vmem:[#allocation11 + $0x94] ss:$12 sps:$4 sm:$0xff]  }
 0x114   : > { %1260 = vmatpush2.bf16.msra.mxu0 %v6379_v27 }
 0x115   : > { %1261 = vmatprep.subr.bf16.mxu0 %v6387_v30  ;;  %v6411_v30 = vld [vmem:[#allocation11 + $0x214] ss:$12 sps:$4 sm:$0xff]  }
 0x118   : > { %1262 = vmatpush2.bf16.msra.mxu0 %v6385_v31 }
 0x119   : > { %1263 = vmatprep.subr.bf16.mxu0 %v6393_v34  ;;  %v503_v34 = vadd.s32 32, %v7325_v44 }
 0x11c   : > { %1264 = vmatpush2.bf16.msra.mxu0 %v6391_v35  ;;  %v504_v35 = vadd.s32 40, %v7325_v44 }
 0x11d   : > { %1265 = vmatprep.subr.bf16.mxu0 %v6399_v38  ;;  %v6406_v38 = vld [vmem:[#allocation11 + $0x90] ss:$12 sps:$4 sm:$0xff]  }
 0x120   : > { %1266 = vmatpush2.bf16.msra.mxu0 %v6397_v39  ;;  %v6409_v39 = vld [vmem:[#allocation11 + $0x210] ss:$12 sps:$4 sm:$0xff]  }
 0x121   : > { %2026 = vmatprep.subr.bf16.mxu0 %v6405_v42 }
 0x1a3   : > { %v5983_v48 = vpop.f32.mrf.mxu0 }
 0x1a4   : > { %v7337_v50 = vadd.f32 %v5983_v48, %v7333_v47 }
 0x1a5   : > { %v669_v51 = vpop.f32.mrf.mxu0  ;;  %v7405_v31 = vpop.f32.mrf.mxu1 }
 0x1a6   : > { %8645 = vst [vmem:[#allocation25_spill] sm:$0xff] %v7337_v50  ;;  %v7340_v52 = vadd.f32 %v669_v51, %v7333_v47  ;;  %v7349_v57 = vmax.f32 %v7337_v50, 0.0  ;;  %v8569_v51 = vsub.s32 1, %v7325_v44 }
 0x1a7   : > { %v5984_v53 = vpop.f32.mrf.mxu0 }
 0x1a8   : > { %8646 = vst [vmem:[#allocation26_spill] sm:$0xff] %v7340_v52  ;;  %v853_v54 = vmax.f32 %v7340_v52, 0.0  ;;  %v7352_v58 = vadd.f32 %v5984_v53, %v7333_v47  ;;  %v906_v2 = vrot.slane %v7349_v57, 1  ;;  %v873_v36 = vrot.slane %v7349_v57, 7  ;;  %v7432_v53 = vpop.f32.mrf.mxu1 }
 0x1a9   : > { %v672_v59 = vpop.f32.mrf.mxu0 }
 0x1aa   : > { %8649 = vst [vmem:[#allocation29_spill] sm:$0xff] %v7352_v58  ;;  %v7355_v60 = vadd.f32 %v672_v59, %v7333_v47  ;;  %v870_v61 = vrot.slane %v853_v54, 7  ;;  %v903_v3 = vrot.slane %v853_v54, 1  ;;  %v7365_v4 = vmax.f32 %v7352_v58, 0.0 }
 0x1ab   : > { %v5987_v62 = vpop.f32.mrf.mxu0 }
 0x1ac   : > { %8650 = vst [vmem:[#allocation30_spill] sm:$0xff] %v7355_v60  ;;  %v854_v1 = vmax.f32 %v7355_v60, 0.0  ;;  %v893_v10 = vsel %vm869_vm0, 0.0, %v870_v61  ;;  %v7373_v11 = vadd.f32 %v5987_v62, %v7333_v47  ;;  %v939_v29 = vpack.c.bf16 %v7365_v4, %v7349_v57  ;;  %v6628_v57 = vld [vmem:[#allocation14 + $0xa8] sm:$0xff]  }
 0x1ad   : > { %v685_v5 = vpop.f32.mrf.mxu0  ;;  %v875_v32 = vrot.slane %v7365_v4, 7  ;;  %v908_v33 = vrot.slane %v7365_v4, 1  ;;  %v7448_v62 = vand.u32 7, %v504_v35  ;;  %v6432_v4 = vld [vmem:[#allocation11 + $0x34] ss:$12 sps:$4 sm:$0xff]  }
 0x1ae   : > { %v871_v6 = vrot.slane %v854_v1, 7  ;;  %v904_v7 = vrot.slane %v854_v1, 1  ;;  %v7369_v8 = vadd.f32 %v685_v5, %v7333_v47  ;;  %v936_v9 = vpack.c.bf16 %v854_v1, %v853_v54  ;;  %8652 = vst [vmem:[#allocation32_spill] sm:$0xff] %v7373_v11 }
 0x1af   : > { %v5988_v12 = vpop.f32.mrf.mxu0  ;;  %v7417_v37 = vmax.f32 %v7373_v11, 0.0  ;;  %v876_v54 = vsel %vm869_vm0, %v873_v36, %v875_v32  ;;  %v909_v59 = vsel %vm902_vm1, %v906_v2, %v908_v33  ;;  %8663 = vst [vmem:[#allocation37_spill] sm:$0xff] %v7448_v62  ;;  %vm520_vm15 = vcmp.ge.s32.totalorder %v7448_v62, 1 }
 0x1b0   : > { %8651 = vst [vmem:[#allocation31_spill] sm:$0xff] %v7369_v8  ;;  %v872_v16 = vsel %vm869_vm0, %v870_v61, %v871_v6  ;;  %v905_v17 = vsel %vm902_vm1, %v903_v3, %v904_v7  ;;  %v907_v18 = vsel %vm902_vm1, %v904_v7, %v906_v2  ;;  %v7389_v19 = vmax.f32 %v7369_v8, 0.0  ;;  %1267 = vmatprep.mubr.bf16.mxu0 %v936_v9  ;;  %v6412_v3 = vld [vmem:[#allocation11 + $0x78] ss:$12 sps:$4 sm:$0xff]  }
 0x1b1   : > { %v5136_v22 = vpack.c.bf16 %v872_v16, %v893_v10  ;;  %v5148_v23 = vpack.c.bf16 %v907_v18, %v905_v17  ;;  %v688_v24 = vpop.f32.mrf.mxu0  ;;  %v874_v43 = vsel %vm869_vm0, %v871_v6, %v873_v36  ;;  %v7446_v61 = vand.u32 7, %v503_v34  ;;  %v6415_v7 = vld [vmem:[#allocation11 + $0x1f8] ss:$12 sps:$4 sm:$0xff]   ;;  %v7466_v16 = vpop.f32.mrf.mxu1 }
 0x1b2   : > { %v910_v27 = vrot.slane %v7389_v19, 1  ;;  %v7401_v28 = vadd.f32 %v688_v24, %v7333_v47  ;;  %v914_v63 = vrot.slane %v7417_v37, 1  ;;  %v7452_v0 = vadd.f32 %v5988_v12, %v7333_v47  ;;  %v6420_v9 = vld [vmem:[#allocation11 + $0x64] ss:$12 sps:$4 sm:$0xff]   ;;  %v6418_v24 = vld [vmem:[#allocation11 + $0x60] ss:$12 sps:$4 sm:$0xff]  }
 0x1b3   : > { %5137 = vmatmul.mubr.msk.bf16.vlgmr.msra.gmra.mxu0 %vm7377_vm6, %v5136_v22  ;;  %5149 = vmatmul.mubr.msk.bf16.vlgmr.msra.gmra.mxu1 %vm7395_vm7, %v5148_v23  ;;  %8662 = vst [vmem:[#allocation36_spill] sm:$0xff] %v7446_v61  ;;  %v5139_v6 = vpack.c.bf16 %v876_v54, %v874_v43  ;;  %v6423_v12 = vld [vmem:[#allocation11 + $0x1e4] ss:$12 sps:$4 sm:$0xff]   ;;  %v505_v17 = vadd.s32 48, %v7325_v44  ;;  %v7476_v18 = vrot.slane %v7328_v46, %v8569_v51  ;;  %vm519_vm14 = vcmp.ge.s32.totalorder %v7446_v61, 1  ;;  %v825_v34 = vpop.f32.mrf.mxu1 }
 0x1b4   : > { %8659 = vst [vmem:[#allocation35_spill] sm:$0xff] %v7401_v28  ;;  %1954 = vmatpush1.bf16.msra.mxu1 %v6400_v20  ;;  %1277 = vmatprep.mubr.bf16.mxu0 %v939_v29  ;;  %v7424_v42 = vmax.f32 %v7401_v28, 0.0  ;;  %v911_v48 = vsel %vm902_vm1, %v908_v33, %v910_v27  ;;  %8664 = vst [vmem:[#allocation38_spill] sm:$0xff] %v7452_v0  ;;  %v506_v20 = vadd.s32 56, %v7325_v44  ;;  %v877_v22 = vrot.slane %v7389_v19, 7 }
 0x1b5   : > { %2027 = vmatpush1.bf16.msra.mxu0 %v6403_v25  ;;  %1955 = vmatprep.subr.bf16.mxu1 %v6408_v26  ;;  %v5151_v47 = vpack.c.bf16 %v911_v48, %v909_v59  ;;  %v860_v23 = vmax.f32 %v7452_v0, 0.0  ;;  %v6421_v29 = vld [vmem:[#allocation11 + $0x1e0] ss:$12 sps:$4 sm:$0xff]   ;;  %vm527_vm2 = vcmp.lt.s32.totalorder %v7446_v61, 7  ;;  %vm528_vm3 = vcmp.lt.s32.totalorder %v7448_v62, 7  ;;  %vm7502_vm4 = vmpackc.low %vm520_vm15, %vm519_vm14 }
 0x1b6   : > { %2028 = vmatprep.subr.bf16.mxu0 %v6411_v30  ;;  %1350 = vmatprep.mubr.bf16.mxu1 %v6981_v41  ;;  %v912_v1 = vrot.slane %v7424_v42, 1  ;;  %v942_v2 = vpack.c.bf16 %v7424_v42, %v7389_v19  ;;  %v879_v10 = vrot.slane %v7424_v42, 7  ;;  %v6426_v30 = vld [vmem:[#allocation11 + $0x4c] ss:$12 sps:$4 sm:$0xff]   ;;  %v881_v35 = vrot.slane %v7417_v37, 7  ;;  %vm7515_vm5 = vmpackc.low %vm528_vm3, %vm527_vm2 }
 0x1b7   : > { %v6429_v19 = vld [vmem:[#allocation11 + $0x1cc] ss:$12 sps:$4 sm:$0xff]   ;;  %v831_v36 = vadd.f32 %v7405_v31, %v7476_v18  ;;  %v883_v42 = vrot.slane %v860_v23, 7  ;;  %v916_v43 = vrot.slane %v860_v23, 1  ;;  %v6424_v48 = vld [vmem:[#allocation11 + $0x48] ss:$12 sps:$4 sm:$0xff]   ;;  %v945_v54 = vpack.c.bf16 %v860_v23, %v7417_v37 }
 0x1b8   : > { %1956 = vmatpush1.bf16.msra.mxu1 %v6406_v38  ;;  %v913_v25 = vsel %vm902_vm1, %v910_v27, %v912_v1  ;;  %v915_v26 = vsel %vm902_vm1, %v912_v1, %v914_v63  ;;  %v880_v33 = vsel %vm869_vm0, %v877_v22, %v879_v10  ;;  %v7493_v27 = vand.u32 7, %v505_v17  ;;  %v6427_v1 = vld [vmem:[#allocation11 + $0x1c8] ss:$12 sps:$4 sm:$0xff]   ;;  %v6634_v38 = vld [vmem:[#allocation14 + $0x98] sm:$0xff]  }
 0x1b9   : > { %2029 = vmatpush1.bf16.msra.mxu0 %v6409_v39  ;;  %1957 = vmatprep.subr.bf16.mxu1 %v6414_v40  ;;  %v5154_v39 = vpack.c.bf16 %v915_v26, %v913_v25  ;;  %v7506_v40 = vand.u32 7, %v506_v20  ;;  %v926_v17 = vsel %vm902_vm1, %v916_v43, 0.0  ;;  %v7538_v20 = vmax.f32 %v831_v36, 0.0 }
 0x1ba   : > { %2030 = vmatprep.subr.bf16.mxu0 %v6417_v49  ;;  %8667 = vst [vmem:[#allocation39_spill] sm:$0xff] %v7493_v27  ;;  %v878_v49 = vsel %vm869_vm0, %v875_v32, %v877_v22  ;;  %v826_v32 = vadd.f32 %v825_v34, %v7476_v18  ;;  %vm521_vm8 = vcmp.ge.s32.totalorder %v7493_v27, 1  ;;  %vm529_vm10 = vcmp.lt.s32.totalorder %v7493_v27, 7 }
 0x1bb   : > { %5140 = vmatmul.mubr.msk.bf16.gmra.mxu0 %vm7441_vm12, %v5139_v6  ;;  %5152 = vmatmul.mubr.msk.bf16.gmra.mxu1 %vm7459_vm13, %v5151_v47  ;;  %8670 = vst [vmem:[#allocation40_spill] sm:$0xff] %v7506_v40  ;;  %v5142_v59 = vpack.c.bf16 %v880_v33, %v878_v49  ;;  %v7523_v6 = vpop.f32.mrf.mxu1  ;;  %vm522_vm9 = vcmp.ge.s32.totalorder %v7506_v40, 1  ;;  %v6433_v47 = vld [vmem:[#allocation11 + $0x1b0] ss:$12 sps:$4 sm:$0xff]   ;;  %vm530_vm11 = vcmp.lt.s32.totalorder %v7506_v40, 7  ;;  %v1432_v34 = vrot.slane %v7538_v20, 1 }
 0x1bc   : > { %1958 = vmatpush1.bf16.msra.mxu1 %v6412_v3  ;;  %1287 = vmatprep.mubr.bf16.mxu0 %v942_v2  ;;  %v823_v3 = vadd.f32 %v7432_v53, %v7476_v18  ;;  %v6435_v2 = vld [vmem:[#allocation11 + $0x1b4] ss:$12 sps:$4 sm:$0xff]   ;;  %v6430_v53 = vld [vmem:[#allocation11 + $0x30] ss:$12 sps:$4 sm:$0xff]   ;;  %v7542_v23 = vmax.f32 %v826_v32, 0.0  ;;  %vm7550_vm14 = vmpackc.low %vm522_vm9, %vm521_vm8 }
 0x1bd   : > { %2031 = vmatpush1.bf16.msra.mxu0 %v6415_v7  ;;  %1959 = vmatprep.subr.bf16.mxu1 %v6420_v9  ;;  %v882_v7 = vsel %vm869_vm0, %v879_v10, %v881_v35  ;;  %v884_v9 = vsel %vm869_vm0, %v881_v35, %v883_v42  ;;  %v6441_v10 = vld [vmem:[#allocation11 + $0x19c] ss:$12 sps:$4 sm:$0xff]   ;;  %v838_v37 = vpop.f32.mrf.mxu1  ;;  %vm7558_vm15 = vmpackc.low %vm530_vm11, %vm529_vm10  ;;  %v6447_v42 = vld [vmem:[#allocation11 + $0x184] ss:$12 sps:$4 sm:$0xff]  }
 0x1be   : > { %2032 = vmatprep.subr.bf16.mxu0 %v6423_v12  ;;  %1360 = vmatprep.mubr.bf16.mxu1 %v6981_v41  ;;  %v917_v12 = vsel %vm902_vm1, %v914_v63, %v916_v43  ;;  %v7540_v22 = vmax.f32 %v823_v3, 0.0  ;;  %v5145_v25 = vpack.c.bf16 %v884_v9, %v882_v7  ;;  %v1430_v36 = vrot.slane %v7542_v23, 1  ;;  %v6442_v49 = vld [vmem:[#allocation11] ss:$12 sps:$4 sm:$0xff]   ;;  %v6448_v7 = vld [vmem:[#allocation11 + $0x168] ss:$12 sps:$4 sm:$0xff]  }
 0x1bf   : > { %v5157_v26 = vpack.c.bf16 %v926_v17, %v917_v12  ;;  %v6012_v43 = vpop.f32.mrf.mxu1  ;;  %v6445_v3 = vld [vmem:[#allocation11 + $0x180] ss:$12 sps:$4 sm:$0xff]   ;;  %v847_v12 = vadd.f32 %v7523_v6, %v7476_v18  ;;  %v6457_v6 = vld [vmem:[#allocation11 + $0x98] ss:$12 sps:$4 sm:$0xff]   ;;  %v6637_v33 = vld [vmem:[#allocation14 + $0x90] sm:$0xff]  }
 0x1c0   : > { %1960 = vmatpush1.bf16.msra.mxu1 %v6418_v24  ;;  %v6438_v24 = vld [vmem:[#allocation11 + $0x1c] ss:$12 sps:$4 sm:$0xff]   ;;  %v1429_v35 = vrot.slane %v7540_v22, 1  ;;  %v6450_v32 = vld [vmem:[#allocation11 + $0x16c] ss:$12 sps:$4 sm:$0xff]  }
 0x1c1   : > { %2033 = vmatpush1.bf16.msra.mxu0 %v6421_v29  ;;  %1961 = vmatprep.subr.bf16.mxu1 %v6426_v30  ;;  %v834_v29 = vadd.f32 %v7466_v16, %v7476_v18  ;;  %v6436_v30 = vld [vmem:[#allocation11 + $0x18] ss:$12 sps:$4 sm:$0xff]   ;;  %v839_v16 = vadd.f32 %v838_v37, %v7476_v18 }
 0x1c2   : > { %2034 = vmatprep.subr.bf16.mxu0 %v6429_v19  ;;  %v6439_v19 = vld [vmem:[#allocation11 + $0x198] ss:$12 sps:$4 sm:$0xff]  }
 0x1c3   : > { %5143 = vmatmul.mubr.msk.bf16.gmra.mxu0 %vm7502_vm4, %v5142_v59  ;;  %5155 = vmatmul.mubr.msk.bf16.gmra.mxu1 %vm7515_vm5, %v5154_v39  ;;  %v6444_v39 = vld [vmem:[#allocation11 + $0x4] ss:$12 sps:$4 sm:$0xff]   ;;  %v1431_v59 = vsel %vm902_vm1, %v1429_v35, %v1430_v36 }
 0x1c4   : > { %1962 = vmatpush1.bf16.msra.mxu1 %v6424_v48  ;;  %1297 = vmatprep.mubr.bf16.mxu0 %v945_v54  ;;  %v7568_v48 = vpack.c.bf16 %v7542_v23, %v7540_v22  ;;  %v7575_v54 = vmax.f32 %v834_v29, 0.0  ;;  %v7592_v29 = vmax.f32 %v847_v12, 0.0  ;;  %v6471_v12 = vld [vmem:[#allocation11 + $0x110] ss:$12 sps:$4 sm:$0xff]  }
 0x1c5   : > { %2035 = vmatpush1.bf16.msra.mxu0 %v6427_v1  ;;  %1963 = vmatprep.subr.bf16.mxu1 %v6432_v4  ;;  %v1433_v1 = vsel %vm902_vm1, %v1430_v36, %v1432_v34  ;;  %v7579_v4 = vmax.f32 %v839_v16, 0.0  ;;  %v6458_v16 = vld [vmem:[#allocation11 + $0x138] ss:$12 sps:$4 sm:$0xff]  }
 0x1c6   : > { %2036 = vmatprep.subr.bf16.mxu0 %v6435_v2  ;;  %1370 = vmatprep.mubr.bf16.mxu1 %v6981_v41  ;;  %v6451_v2 = vld [vmem:[#allocation11 + $0x170] ss:$12 sps:$4 sm:$0xff]   ;;  %v1434_v9 = vrot.slane %v7575_v54, 1 }
 0x1c7   : > { %v1436_v17 = vrot.slane %v7579_v4, 1 }
 0x1c8   : > { %1964 = vmatpush1.bf16.msra.mxu1 %v6430_v53  ;;  %v841_v53 = vpop.f32.mrf.mxu1  ;;  %v1435_v35 = vsel %vm902_vm1, %v1432_v34, %v1434_v9  ;;  %v6465_v34 = vld [vmem:[#allocation11 + $0x124] ss:$12 sps:$4 sm:$0xff]  }
 0x1c9   : > { %2037 = vmatpush1.bf16.msra.mxu0 %v6433_v47  ;;  %1965 = vmatprep.subr.bf16.mxu1 %v6438_v24  ;;  %v7582_v47 = vpack.c.bf16 %v1433_v1, %v1431_v59  ;;  %v6452_v24 = vld [vmem:[#allocation11 + $0xb0] ss:$12 sps:$4 sm:$0xff]   ;;  %v842_v37 = vadd.f32 %v841_v53, %v7476_v18  ;;  %v1437_v36 = vsel %vm902_vm1, %v1434_v9, %v1436_v17 }
 0x1ca   : > { %2038 = vmatprep.subr.bf16.mxu0 %v6441_v10  ;;  %v6455_v10 = vld [vmem:[#allocation11 + $0x154] ss:$12 sps:$4 sm:$0xff]   ;;  %v850_v59 = vadd.f32 %v6012_v43, %v7476_v18  ;;  %v6470_v18 = vld [vmem:[#allocation11 + $0x10c] ss:$12 sps:$4 sm:$0xff]  }
 0x1cb   : > { %5146 = vmatmul.mubr.msk.bf16.gmra.mxu0 %vm7550_vm14, %v5145_v25  ;;  %5158 = vmatmul.mubr.msk.bf16.gmra.mxu1 %vm7558_vm15, %v5157_v26  ;;  %v6456_v25 = vld [vmem:[#allocation11 + $0x158] ss:$12 sps:$4 sm:$0xff]   ;;  %v6453_v26 = vld [vmem:[#allocation11 + $0x150] ss:$12 sps:$4 sm:$0xff]  }
 0x1cc   : > { %1966 = vmatpush1.bf16.msra.mxu1 %v6436_v30  ;;  %2058 = vmatprep.mubr.bf16.mxu0 %v6981_v41  ;;  %v7594_v30 = vmax.f32 %v842_v37, 0.0  ;;  %v7607_v53 = vmax.f32 %v850_v59, 0.0  ;;  %v6478_v59 = vld [vmem:[#allocation11 + $0xd8] ss:$12 sps:$4 sm:$0xff]  }
 0x1cd   : > { %2039 = vmatpush1.bf16.msra.mxu0 %v6439_v19  ;;  %1967 = vmatprep.subr.bf16.mxu1 %v6444_v39  ;;  %v6460_v19 = vld [vmem:[#allocation11 + $0x13c] ss:$12 sps:$4 sm:$0xff]   ;;  %v6461_v39 = vld [vmem:[#allocation11 + $0x140] ss:$12 sps:$4 sm:$0xff]  }
 0x1ce   : > { %2040 = vmatprep.subr.bf16.mxu0 %v6447_v42  ;;  %1985 = vmatprep.mubr.bf16.mxu1 %v7568_v48  ;;  %v7599_v42 = vpack.c.bf16 %v1437_v36, %v1435_v35  ;;  %v1438_v1 = vrot.slane %v7594_v30, 1  ;;  %v1442_v37 = vrot.slane %v7607_v53, 1  ;;  %v6477_v35 = vld [vmem:[#allocation11 + $0x38] ss:$12 sps:$4 sm:$0xff]   ;;  %v6480_v36 = vld [vmem:[#allocation11 + $0xdc] ss:$12 sps:$4 sm:$0xff]  }
 0x1d0   : > { %1968 = vmatpush1.bf16.msra.mxu1 %v6442_v49  ;;  %v1440_v49 = vrot.slane %v7592_v29, 1  ;;  %v1439_v43 = vsel %vm902_vm1, %v1436_v17, %v1438_v1  ;;  %v6473_v17 = vld [vmem:[#allocation11 + $0xf0] ss:$12 sps:$4 sm:$0xff]  }
 0x1d1   : > { %2041 = vmatpush1.bf16.msra.mxu0 %v6445_v3  ;;  %1969 = vmatprep.subr.bf16.mxu1 %v6450_v32  ;;  %v6462_v3 = vld [vmem:[#allocation11 + $0x80] ss:$12 sps:$4 sm:$0xff]   ;;  %v6466_v32 = vld [vmem:[#allocation11 + $0x128] ss:$12 sps:$4 sm:$0xff]  }
 0x1d2   : > { %5601 = vmatprep.subr.bf16.mxu0 %v6451_v2  ;;  %v6463_v2 = vld [vmem:[#allocation11 + $0x120] ss:$12 sps:$4 sm:$0xff]   ;;  %v1441_v9 = vsel %vm902_vm1, %v1438_v1, %v1440_v49 }
 0x1d4   : > { %1970 = vmatpush2.bf16.msra.mxu1 %v6448_v7  ;;  %5245 = vmatmul.mubr.msk.bf16.vlgmr.msra.gmra.mxu0 %vm7395_vm7, %v7582_v47  ;;  %v6467_v7 = vld [vmem:[#allocation11 + $0x68] ss:$12 sps:$4 sm:$0xff]  }
 0x1d5   : > { %5602 = vmatpush3.bf16.msra.mxu0 %v6452_v24  ;;  %1971 = vmatprep.subr.bf16.mxu1 %v6455_v10  ;;  %v6468_v24 = vld [vmem:[#allocation11 + $0x108] ss:$12 sps:$4 sm:$0xff]   ;;  %v7612_v10 = vpack.c.bf16 %v1441_v9, %v1439_v43 }
 0x1d6   : > { %5603 = vmatprep.subr.bf16.mxu0 %v6456_v25  ;;  %2068 = vmatprep.mubr.bf16.mxu0 %v6981_v41  ;;  %v6472_v25 = vld [vmem:[#allocation11 + $0x50] ss:$12 sps:$4 sm:$0xff]  }
 0x1d8   : > { %1972 = vmatpush2.bf16.msra.mxu1 %v6453_v26  ;;  %v6475_v26 = vld [vmem:[#allocation11 + $0xf4] ss:$12 sps:$4 sm:$0xff]  }
 0x1d9   : > { %5604 = vmatpush3.bf16.msra.mxu0 %v6457_v6  ;;  %1973 = vmatprep.subr.bf16.mxu1 %v6460_v19  ;;  %v6476_v6 = vld [vmem:[#allocation11 + $0xf8] ss:$12 sps:$4 sm:$0xff]   ;;  %v1452_v19 = vsel %vm902_vm1, %v1442_v37, 0.0 }
 0x1da   : > { %5605 = vmatprep.subr.bf16.mxu0 %v6461_v39  ;;  %v1443_v39 = vsel %vm902_vm1, %v1440_v49, %v1442_v37  ;;  %v6487_v49 = vld [vmem:[#allocation11 + $0x8] ss:$12 sps:$4 sm:$0xff]   ;;  %v6489_v37 = vld [vmem:[#allocation11 + $0x218] ss:$12 sps:$4 sm:$0xff]  }
 0x1db   : > { %v7621_v1 = vpack.c.bf16 %v1452_v19, %v1443_v39  ;;  %v6490_v19 = vld [vmem:[#allocation11 + $0x200] ss:$12 sps:$4 sm:$0xff]   ;;  %v1406_v39 = vrot.slane %v7594_v30, 7 }
 0x1dc   : > { %1974 = vmatpush2.bf16.msra.mxu1 %v6458_v16  ;;  %5248 = vmatmul.mubr.msk.bf16.gmra.mxu0 %vm7459_vm13, %v7599_v42  ;;  %v6481_v16 = vld [vmem:[#allocation11 + $0xe0] ss:$12 sps:$4 sm:$0xff]  }
 0x1dd   : > { %5606 = vmatpush3.bf16.msra.mxu0 %v6462_v3  ;;  %1975 = vmatprep.subr.bf16.mxu1 %v6465_v34  ;;  %v6482_v3 = vld [vmem:[#allocation11 + $0x20] ss:$12 sps:$4 sm:$0xff]   ;;  %v1397_v34 = vrot.slane %v7540_v22, 7 }
 0x1de   : > { %5607 = vmatprep.subr.bf16.mxu0 %v6466_v32  ;;  %2078 = vmatprep.mubr.bf16.mxu0 %v6981_v41  ;;  %v1398_v32 = vrot.slane %v7542_v23, 7  ;;  %v6496_v23 = vld [vmem:[#allocation13 + $0x78] sm:$0xff]  }
 0x1df   : > { %v1420_v43 = vsel %vm869_vm0, 0.0, %v1397_v34 }
 0x1e0   : > { %1976 = vmatpush2.bf16.msra.mxu1 %v6463_v2  ;;  %v6485_v2 = vld [vmem:[#allocation11 + $0xc4] ss:$12 sps:$4 sm:$0xff]   ;;  %v1399_v22 = vsel %vm869_vm0, %v1397_v34, %v1398_v32 }
 0x1e1   : > { %5608 = vmatpush3.bf16.msra.mxu0 %v6467_v7  ;;  %1977 = vmatprep.subr.bf16.mxu1 %v6470_v18  ;;  %v6486_v7 = vld [vmem:[#allocation11 + $0xc8] ss:$12 sps:$4 sm:$0xff]   ;;  %v6488_v18 = vld [vmem:[#allocation11 + $0x230] ss:$12 sps:$4 sm:$0xff]   ;;  %v5232_v9 = vpack.c.bf16 %v1399_v22, %v1420_v43  ;;  %v6502_v34 = vld [vmem:[#allocation13 + $0x60] sm:$0xff]   ;;  %v1471_v43 = vpack.c.bf16 %v7607_v53, %v7592_v29 }
 0x1e2   : > { %5609 = vmatprep.subr.bf16.mxu0 %v6471_v12  ;;  %v1400_v12 = vrot.slane %v7538_v20, 7  ;;  %v6493_v22 = vld [vmem:[#allocation11 + $0x1b8] ss:$12 sps:$4 sm:$0xff]  }
 0x1e4   : > { %1978 = vmatpush2.bf16.msra.mxu1 %v6468_v24  ;;  %5251 = vmatmul.mubr.msk.bf16.gmra.mxu0 %vm7515_vm5, %v7612_v10  ;;  %v1402_v24 = vrot.slane %v7575_v54, 7 }
 0x1e5   : > { %5610 = vmatpush3.bf16.msra.mxu0 %v6472_v25  ;;  %1979 = vmatprep.subr.bf16.mxu1 %v6475_v26  ;;  %v6497_v25 = vld [vmem:[#allocation13 + $0x38] sm:$0xff]   ;;  %v6498_v26 = vld [vmem:[#allocation13 + $0x70] sm:$0xff]  }
 0x1e6   : > { %5611 = vmatprep.subr.bf16.mxu0 %v6476_v6  ;;  %2088 = vmatprep.mubr.bf16.mxu0 %v6981_v41  ;;  %v6483_v41 = vld [vmem:[#allocation11 + $0xc0] ss:$12 sps:$4 sm:$0xff]   ;;  %v1401_v6 = vsel %vm869_vm0, %v1398_v32, %v1400_v12 }
 0x1e8   : > { %1980 = vmatpush2.bf16.msra.mxu1 %v6473_v17  ;;  %v1403_v17 = vsel %vm869_vm0, %v1400_v12, %v1402_v24 }
 0x1e9   : > { %5612 = vmatpush3.bf16.msra.mxu0 %v6477_v35  ;;  %1981 = vmatprep.subr.bf16.mxu1 %v6480_v36  ;;  %v5235_v35 = vpack.c.bf16 %v1403_v17, %v1401_v6  ;;  %v1404_v36 = vrot.slane %v7579_v4, 7  ;;  %v6514_v6 = vld [vmem:[#allocation13 + $0x40] sm:$0xff]   ;;  %v6503_v17 = vld [vmem:[#allocation13 + $0xb8] sm:$0xff]  }
 0x1ea   : > { %5613 = vmatprep.subr.bf16.mxu0 %v6481_v16  ;;  %v1468_v16 = vpack.c.bf16 %v7594_v30, %v7579_v4  ;;  %v6492_v4 = vld [vmem:[#allocation11 + $0x1d0] ss:$12 sps:$4 sm:$0xff]   ;;  %v6504_v30 = vld [vmem:[#allocation13 + $0x20] sm:$0xff]  }
 0x1eb   : > { %v1405_v32 = vsel %vm869_vm0, %v1402_v24, %v1404_v36 }
 0x1ec   : > { %1982 = vmatpush2.bf16.msra.mxu1 %v6478_v59  ;;  %5254 = vmatmul.mubr.msk.bf16.gmra.mxu0 %vm7558_vm15, %v7621_v1  ;;  %v6491_v59 = vld [vmem:[#allocation11 + $0x1e8] ss:$12 sps:$4 sm:$0xff]  }
 0x1ed   : > { %5614 = vmatpush3.bf16.msra.mxu0 %v6482_v3  ;;  %2131 = vmatprep.mubr.bf16.mxu0 %v7568_v48  ;;  %v1465_v48 = vpack.c.bf16 %v7575_v54, %v7538_v20  ;;  %v6499_v20 = vld [vmem:[#allocation13 + $0x30] sm:$0xff]   ;;  %v6500_v54 = vld [vmem:[#allocation13 + $0x68] sm:$0xff]  }
 0x1ee   : > { %1983 = vmatprep.subr.bf16.mxu1 %v6485_v2  ;;  %5615 = vmatprep.subr.bf16.mxu0 %v6486_v7  ;;  %v6501_v3 = vld [vmem:[#allocation13 + $0x28] sm:$0xff]   ;;  %v1407_v2 = vsel %vm869_vm0, %v1404_v36, %v1406_v39  ;;  %v6505_v7 = vld [vmem:[#allocation13 + $0x58] sm:$0xff]  }
 0x1ef   : > { %v6520_v36 = vld [vmem:[#allocation13 + $0x138] sm:$0xff]  }
 0x1f0   : > { %1984 = vmatpush2.bf16.msra.mxu1 %v6483_v41  ;;  %v5238_v41 = vpack.c.bf16 %v1407_v2, %v1405_v32 }
 0x1f1   : > { %5616 = vmatpush3.bf16.msra.mxu0 %v6487_v49  ;;  %6013 = vmatprep.subr.bf16.mxu1 %v6488_v18  ;;  %v1408_v49 = vrot.slane %v7592_v29, 7  ;;  %v6494_v29 = vld [vmem:[#allocation11 + $0x1a0] ss:$12 sps:$4 sm:$0xff]  }
 0x1f2   : > { %5653 = vmatprep.subr.bf16.mxu0 %v6496_v23  ;;  %v6507_v23 = vld [vmem:[#allocation13 + $0x18] sm:$0xff]  }
 0x1f3   : > { %5233 = vmatmul.mubr.msk.bf16.vlgmr.msra.gmra.mxu1 %vm7377_vm6, %v5232_v9  ;;  %v1409_v12 = vsel %vm869_vm0, %v1406_v39, %v1408_v49  ;;  %v6519_v39 = vld [vmem:[#allocation13 + $0x80] sm:$0xff]  }
 0x1f4   : > { %1995 = vmatprep.mubr.bf16.mxu1 %v1465_v48  ;;  %5257 = vmatmul.mubr.msk.bf16.vlgmr.msra.gmra.mxu0 %vm7377_vm6, %v5232_v9  ;;  %v6508_v9 = vld [vmem:[#allocation13 + $0x50] sm:$0xff]  }
 0x1f5   : > { %6014 = vmatpush3.bf16.msra.mxu1 %v6488_v18  ;;  %2139 = vmatprep.mubr.bf16.mxu0 %v1465_v48  ;;  %v1410_v18 = vrot.slane %v7607_v53, 7  ;;  %v6510_v53 = vld [vmem:[#allocation13 + $0x10] sm:$0xff]   ;;  %v6511_v48 = vld [vmem:[#allocation13 + $0x48] sm:$0xff]  }
 0x1f6   : > { %6015 = vmatprep.subr.bf16.mxu1 %v6489_v37  ;;  %5654 = vmatpush3.bf16.msra.mxu0 %v6497_v25  ;;  %v6495_v25 = vld [vmem:[#allocation11 + $0x188] ss:$12 sps:$4 sm:$0xff]  }
 0x1f7   : > { %5655 = vmatprep.subr.bf16.mxu0 %v6498_v26  ;;  %v1411_v24 = vsel %vm869_vm0, %v1408_v49, %v1410_v18  ;;  %v6513_v26 = vld [vmem:[#allocation13 + $0x8] sm:$0xff]  }
 0x1f9   : > { %6016 = vmatpush3.bf16.msra.mxu1 %v6489_v37  ;;  %v5241_v37 = vpack.c.bf16 %v1411_v24, %v1409_v12 }
 0x1fa   : > { %6017 = vmatprep.subr.bf16.mxu1 %v6490_v19  ;;  %5656 = vmatpush3.bf16.msra.mxu0 %v6499_v20  ;;  %v6506_v20 = vld [vmem:[#allocation13 + $0xb0] sm:$0xff]  }
 0x1fb   : > { %5236 = vmatmul.mubr.msk.bf16.gmra.mxu1 %vm7441_vm12, %v5235_v35  ;;  %5657 = vmatprep.subr.bf16.mxu0 %v6500_v54  ;;  %v6512_v54 = vld [vmem:[#allocation13 + $0xa0] sm:$0xff]  }
 0x1fc   : > { %2005 = vmatprep.mubr.bf16.mxu1 %v1468_v16  ;;  %5260 = vmatmul.mubr.msk.bf16.gmra.mxu0 %vm7441_vm12, %v5235_v35  ;;  %v6515_v35 = vld [vmem:[#allocation13 + $0x98] sm:$0xff]  }
 0x1fd   : > { %6018 = vmatpush3.bf16.msra.mxu1 %v6490_v19  ;;  %2147 = vmatprep.mubr.bf16.mxu0 %v1468_v16  ;;  %v6516_v19 = vld [vmem:[#allocation13] sm:$0xff]   ;;  %v7677_v16 = vld [vmem:[#allocation13 + $0x178] sm:$0xff]  }
 0x1fe   : > { %6019 = vmatprep.subr.bf16.mxu1 %v6491_v59  ;;  %5658 = vmatpush3.bf16.msra.mxu0 %v6501_v3 }
 0x1ff   : > { %5659 = vmatprep.subr.bf16.mxu0 %v6502_v34 }
 0x201   : > { %6020 = vmatpush3.bf16.msra.mxu1 %v6491_v59  ;;  %v8567_v59 = vsub.s32 3, %v7325_v44 }
 0x202   : > { %6021 = vmatprep.subr.bf16.mxu1 %v6492_v4  ;;  %5660 = vmatpush3.bf16.msra.mxu0 %v6504_v30 }
 0x203   : > { %5239 = vmatmul.mubr.msk.bf16.gmra.mxu1 %vm7502_vm4, %v5238_v41  ;;  %5661 = vmatprep.subr.bf16.mxu0 %v6505_v7 }
 0x204   : > { %2015 = vmatprep.mubr.bf16.mxu1 %v1471_v43  ;;  %5263 = vmatmul.mubr.msk.bf16.gmra.mxu0 %vm7502_vm4, %v5238_v41 }
 0x205   : > { %6022 = vmatpush3.bf16.msra.mxu1 %v6492_v4  ;;  %2155 = vmatprep.mubr.bf16.mxu0 %v1471_v43  ;;  %v7690_v4 = vrot.slane %v7328_v46, %v8567_v59 }
 0x206   : > { %6023 = vmatprep.subr.bf16.mxu1 %v6493_v22  ;;  %5662 = vmatpush3.bf16.msra.mxu0 %v6507_v23 }
 0x207   : > { %5663 = vmatprep.subr.bf16.mxu0 %v6508_v9 }
 0x209   : > { %6024 = vmatpush3.bf16.msra.mxu1 %v6493_v22 }
 0x20a   : > { %6025 = vmatprep.subr.bf16.mxu1 %v6494_v29  ;;  %5664 = vmatpush3.bf16.msra.mxu0 %v6510_v53 }
 0x20b   : > { %5242 = vmatmul.mubr.msk.bf16.gmra.mxu1 %vm7550_vm14, %v5241_v37  ;;  %5665 = vmatprep.subr.bf16.mxu0 %v6511_v48 }
 0x20c   : > { %5266 = vmatmul.mubr.msk.bf16.gmra.mxu0 %vm7550_vm14, %v5241_v37  ;;  %6029 = vmatprep.mubr.msk.bf16.mxu1 %vm7395_vm7, %v7582_v47  ;;  %v6509_v47 = vld [vmem:[#allocation13 + $0xa8] sm:$0xff]  }
 0x20d   : > { %6026 = vmatpush3.bf16.msra.mxu1 %v6494_v29 }
 0x20e   : > { %6027 = vmatprep.subr.bf16.mxu1 %v6495_v25  ;;  %5666 = vmatpush3.bf16.msra.mxu0 %v6513_v26 }
 0x20f   : > { %5667 = vmatprep.subr.bf16.mxu0 %v6514_v6 }
 0x211   : > { %6028 = vmatpush3.bf16.msra.mxu1 %v6495_v25 }
 0x212   : > { %6037 = vmatprep.subr.bf16.mxu1 %v6503_v17  ;;  %5668 = vmatpush3.bf16.msra.mxu0 %v6516_v19 }
 0x213   : > { %5705 = vmatprep.subr.bf16.mxu0 %v6520_v36 }
 0x214   : > { %6030 = vmatmul.mubr.msk.bf16.vlgmr.msra.gmra.mxu1 %vm7459_vm13, %v7599_v42  ;;  %v6517_v42 = vld [vmem:[#allocation13 + $0x90] sm:$0xff]  }
 0x215   : > { %6033 = vmatprep.mubr.msk.bf16.mxu1 %vm7515_vm5, %v7612_v10  ;;  %6038 = vmatpush3.bf16.msra.mxu1 %v6503_v17  ;;  %v6518_v10 = vld [vmem:[#allocation13 + $0x88] sm:$0xff]  }
 0x216   : > { %6039 = vmatprep.subr.bf16.mxu1 %v6506_v20 }
 0x219   : > { %6040 = vmatpush3.bf16.msra.mxu1 %v6506_v20 }
 0x21a   : > { %6041 = vmatprep.subr.bf16.mxu1 %v6509_v47 }
 0x21c   : > { %6034 = vmatmul.mubr.msk.bf16.gmra.mxu1 %vm7558_vm15, %v7621_v1  ;;  %v8568_v1 = vsub.s32 2, %v7325_v44 }
 0x21d   : > { %6042 = vmatpush3.bf16.msra.mxu1 %v6509_v47 }
 0x21e   : > { %6043 = vmatprep.subr.bf16.mxu1 %v6512_v54  ;;  %v7685_v3 = vrot.slane %v7328_v46, %v8568_v1 }
 0x221   : > { %6044 = vmatpush3.bf16.msra.mxu1 %v6512_v54 }
 0x222   : > { %6045 = vmatprep.subr.bf16.mxu1 %v6515_v35 }
 0x225   : > { %6046 = vmatpush3.bf16.msra.mxu1 %v6515_v35 }
 0x226   : > { %6047 = vmatprep.subr.bf16.mxu1 %v6517_v42 }
 0x229   : > { %6048 = vmatpush3.bf16.msra.mxu1 %v6517_v42 }
 0x22a   : > { %6049 = vmatprep.subr.bf16.mxu1 %v6518_v10 }
 0x22d   : > { %6050 = vmatpush3.bf16.msra.mxu1 %v6518_v10 }
 0x22e   : > { %6051 = vmatprep.subr.bf16.mxu1 %v6519_v39 }
 0x231   : > { %6052 = vmatpush3.bf16.msra.mxu1 %v6519_v39 }
 0x232   : > { %6061 = vmatprep.subr.bf16.mxu1 %v7677_v16 }
 0x273   : > { %v1269_v34 = vpop.f32.mrf.mxu0  ;;  %v1342_v32 = vpop.f32.mrf.mxu1 }
 0x274   : > { %v1343_v2 = vadd.f32 %v1342_v32, %v1269_v34 }
 0x275   : > { %v1271_v30 = vpop.f32.mrf.mxu0  ;;  %v1344_v7 = vpop.f32.mrf.mxu1 }
 0x276   : > { %v2233_v41 = vadd.f32 %v7685_v3, %v1343_v2  ;;  %v1345_v49 = vadd.f32 %v1344_v7, %v1271_v30 }
 0x277   : > { %v1273_v18 = vpop.f32.mrf.mxu0  ;;  %v1346_v43 = vpop.f32.mrf.mxu1 }
 0x278   : > { %v2289_v22 = vmax.f32 %v2233_v41, 0.0  ;;  %v2245_v23 = vadd.f32 %v7690_v4, %v1345_v49  ;;  %v1347_v9 = vadd.f32 %v1346_v43, %v1273_v18  ;;  %v6521_v43 = vld [vmem:[#allocation13 + $0xf8] sm:$0xff]  }
 0x279   : > { %v1275_v12 = vpop.f32.mrf.mxu0  ;;  %v1348_v24 = vpop.f32.mrf.mxu1 }
 0x27a   : > { %v2305_v29 = vrot.slane %v2289_v22, 7  ;;  %v7694_v53 = vmax.f32 %v2245_v23, 0.0  ;;  %v2234_v48 = vadd.f32 %v7685_v3, %v1347_v9  ;;  %v1349_v46 = vadd.f32 %v1348_v24, %v1275_v12 }
 0x27b   : > { %v1279_v37 = vpop.f32.mrf.mxu0  ;;  %v1352_v25 = vpop.f32.mrf.mxu1  ;;  %v2337_v6 = vrot.slane %v2289_v22, 1 }
 0x27c   : > { %v7697_v26 = vmax.f32 %v2234_v48, 0.0  ;;  %v2246_v17 = vadd.f32 %v7690_v4, %v1349_v46  ;;  %v1353_v19 = vadd.f32 %v1352_v25, %v1279_v37  ;;  %v2328_v54 = vsel %vm869_vm0, 0.0, %v2305_v29  ;;  %v6522_v37 = vld [vmem:[#allocation13 + $0x130] sm:$0xff]  }
 0x27d   : > { %v1281_v20 = vpop.f32.mrf.mxu0  ;;  %v1354_v47 = vpop.f32.mrf.mxu1  ;;  %v3158_v35 = vrot.slane %v7694_v53, 7  ;;  %v3190_v10 = vrot.slane %v7694_v53, 1 }
 0x27e   : > { %v2306_v42 = vrot.slane %v7697_v26, 7  ;;  %v1355_v36 = vadd.f32 %v1354_v47, %v1281_v20  ;;  %v7704_v39 = vmax.f32 %v2246_v17, 0.0  ;;  %v2235_v34 = vadd.f32 %v7685_v3, %v1353_v19 }
 0x27f   : > { %v1283_v32 = vpop.f32.mrf.mxu0  ;;  %v1356_v2 = vpop.f32.mrf.mxu1  ;;  %v2370_v30 = vpack.c.bf16 %v7697_v26, %v2289_v22  ;;  %v2338_v41 = vrot.slane %v7697_v26, 1  ;;  %v7719_v17 = vsel %vm869_vm0, 0.0, %v3158_v35 }
 0x280   : > { %v2307_v7 = vsel %vm869_vm0, %v2305_v29, %v2306_v42  ;;  %v2247_v49 = vadd.f32 %v7690_v4, %v1355_v36  ;;  %v1357_v18 = vadd.f32 %v1356_v2, %v1283_v32  ;;  %v3159_v9 = vrot.slane %v7704_v39, 7 }
 0x281   : > { %v5304_v23 = vpack.c.bf16 %v2307_v7, %v2328_v54  ;;  %v3191_v12 = vrot.slane %v7704_v39, 1  ;;  %v2291_v24 = vmax.f32 %v2235_v34, 0.0  ;;  %2609 = vmatprep.mubr.bf16.mxu0 %v2370_v30  ;;  %v1285_v48 = vpop.f32.mrf.mxu0  ;;  %v1358_v46 = vpop.f32.mrf.mxu1 }
 0x282   : > { %v7713_v25 = vmax.f32 %v2247_v49, 0.0  ;;  %v2236_v22 = vadd.f32 %v7685_v3, %v1357_v18  ;;  %v1359_v29 = vadd.f32 %v1358_v46, %v1285_v48  ;;  %v7724_v19 = vsel %vm869_vm0, %v3158_v35, %v3159_v9 }
 0x283   : > { %v2340_v20 = vrot.slane %v2291_v24, 1  ;;  %v1289_v47 = vpop.f32.mrf.mxu0  ;;  %v1362_v54 = vpop.f32.mrf.mxu1  ;;  %5305 = vmatmul.mubr.msk.bf16.vlgmr.msra.gmra.mxu0 %vm7377_vm6, %v5304_v23  ;;  %v7729_v36 = vsel %vm902_vm1, %v3190_v10, %v3191_v12  ;;  %v2308_v32 = vrot.slane %v2291_v24, 7  ;;  %v2339_v48 = vsel %vm902_vm1, %v2337_v6, %v2338_v41  ;;  %v6523_v10 = vld [vmem:[#allocation13 + $0xf0] sm:$0xff]  }
 0x284   : > { %v3193_v2 = vrot.slane %v7713_v25, 1  ;;  %v7734_v30 = vmax.f32 %v2236_v22, 0.0  ;;  %5706 = vmatpush3.bf16.msra.mxu0 %v6521_v43  ;;  %v2248_v35 = vadd.f32 %v7690_v4, %v1359_v29  ;;  %v1363_v7 = vadd.f32 %v1362_v54, %v1289_v47  ;;  %v6524_v22 = vld [vmem:[#allocation13 + $0x128] sm:$0xff]  }
 0x285   : > { %v1291_v49 = vpop.f32.mrf.mxu0  ;;  %v1364_v18 = vpop.f32.mrf.mxu1  ;;  %v2341_v23 = vsel %vm902_vm1, %v2338_v41, %v2340_v20  ;;  %5707 = vmatprep.subr.bf16.mxu0 %v6522_v37 }
 0x286   : > { %v8571_v46 = vrot.slane %v7734_v30, 7  ;;  %v2342_v59 = vrot.slane %v7734_v30, 1  ;;  %v1365_v1 = vadd.f32 %v1364_v18, %v1291_v49  ;;  %v5316_v51 = vpack.c.bf16 %v2341_v23, %v2339_v48 }
 0x287   : > { %v7741_v45 = vmax.f32 %v2248_v35, 0.0  ;;  %v2237_v43 = vadd.f32 %v7685_v3, %v1363_v7  ;;  %v1293_v29 = vpop.f32.mrf.mxu0  ;;  %v1366_v47 = vpop.f32.mrf.mxu1  ;;  %v2373_v54 = vpack.c.bf16 %v7734_v30, %v2291_v24  ;;  %v7746_v6 = vsel %vm902_vm1, %v3191_v12, %v3193_v2 }
 0x288   : > { %v2249_v41 = vadd.f32 %v7690_v4, %v1365_v1  ;;  %v1367_v37 = vadd.f32 %v1366_v47, %v1293_v29  ;;  %6053 = vmatprep.mubr.msk.bf16.mxu1 %vm7395_vm7, %v5316_v51  ;;  %v2309_v49 = vsel %vm869_vm0, %v2306_v42, %v2308_v32  ;;  %v2311_v35 = vsel %vm869_vm0, %v2308_v32, %v8571_v46  ;;  %v6525_v1 = vld [vmem:[#allocation13 + $0xe8] sm:$0xff]   ;;  %v6527_v47 = vld [vmem:[#allocation13 + $0x120] sm:$0xff]  }
 0x289   : > { %v8572_v7 = vrot.slane %v7713_v25, 7  ;;  %v3195_v18 = vrot.slane %v7741_v45, 1  ;;  %v2293_v24 = vmax.f32 %v2237_v43, 0.0  ;;  %2617 = vmatprep.mubr.bf16.mxu0 %v2373_v54  ;;  %v1295_v12 = vpop.f32.mrf.mxu0  ;;  %v1368_v48 = vpop.f32.mrf.mxu1  ;;  %v5307_v23 = vpack.c.bf16 %v2311_v35, %v2309_v49  ;;  %5708 = vmatpush3.bf16.msra.mxu0 %v6523_v10  ;;  %v6528_v46 = vld [vmem:[#allocation13 + $0xe0] sm:$0xff]  }
 0x28a   : > { %v7757_v29 = vmax.f32 %v2249_v41, 0.0  ;;  %v2238_v51 = vadd.f32 %v7685_v3, %v1367_v37  ;;  %v1369_v42 = vadd.f32 %v1368_v48, %v1295_v12  ;;  %5709 = vmatprep.subr.bf16.mxu0 %v6524_v22  ;;  %v2343_v34 = vsel %vm902_vm1, %v2340_v20, %v2342_v59  ;;  %v6530_v22 = vld [vmem:[#allocation13 + $0x118] sm:$0xff]  }
 0x28b   : > { %v7764_v43 = vsel %vm902_vm1, %v3193_v2, %v3195_v18  ;;  %v2344_v54 = vrot.slane %v2293_v24, 1  ;;  %v1299_v26 = vpop.f32.mrf.mxu0  ;;  %v1372_v49 = vpop.f32.mrf.mxu1  ;;  %5308 = vmatmul.mubr.msk.bf16.gmra.mxu0 %vm7441_vm12, %v5307_v23  ;;  %v2312_v35 = vrot.slane %v2293_v24, 7  ;;  %v7781_v23 = vsel %vm869_vm0, %v3159_v9, %v8572_v7 }
 0x28c   : > { %v8573_v41 = vrot.slane %v7757_v29, 1  ;;  %v7772_v37 = vmax.f32 %v2238_v51, 0.0  ;;  %v2250_v20 = vadd.f32 %v7690_v4, %v1369_v42  ;;  %v1373_v12 = vadd.f32 %v1372_v49, %v1299_v26 }
 0x28d   : > { %v2345_v2 = vsel %vm902_vm1, %v2342_v59, %v2344_v54  ;;  %v1301_v48 = vpop.f32.mrf.mxu0  ;;  %v1374_v32 = vpop.f32.mrf.mxu1  ;;  %5710 = vmatpush3.bf16.msra.mxu0 %v6525_v1  ;;  %v6529_v1 = vld [vmem:[#allocation13 + $0x170] sm:$0xff]  }
 0x28e   : > { %v5319_v10 = vpack.c.bf16 %v2345_v2, %v2343_v34  ;;  %v7786_v51 = vsel %vm902_vm1, %v3195_v18, %v8573_v41  ;;  %v8578_v59 = vrot.slane %v7772_v37, 7  ;;  %v2346_v26 = vrot.slane %v7772_v37, 1  ;;  %5711 = vmatprep.subr.bf16.mxu0 %v6527_v47  ;;  %v6533_v18 = vld [vmem:[#allocation13 + $0x110] sm:$0xff]  }
 0x28f   : > { %v7792_v49 = vmax.f32 %v2250_v20, 0.0  ;;  %v2239_v9 = vadd.f32 %v7685_v3, %v1373_v12  ;;  %v1375_v7 = vadd.f32 %v1374_v32, %v1301_v48  ;;  %v1303_v34 = vpop.f32.mrf.mxu0  ;;  %v1376_v2 = vpop.f32.mrf.mxu1  ;;  %v2376_v47 = vpack.c.bf16 %v7772_v37, %v2293_v24 }
 0x290   : > { %v1377_v41 = vadd.f32 %v1376_v2, %v1303_v34  ;;  %6054 = vmatmul.mubr.msk.bf16.vlgmr.msra.gmra.mxu1 %vm7459_vm13, %v5319_v10  ;;  %v2315_v42 = vsel %vm869_vm0, %v2312_v35, %v8578_v59  ;;  %v8677_v48 = vrot.slane %v7734_v30, 7  ;;  %v2347_v34 = vsel %vm902_vm1, %v2344_v54, %v2346_v26  ;;  %v6531_v10 = vld [vmem:[#allocation13 + $0xd8] sm:$0xff]  }
 0x291   : > { %v2295_v20 = vmax.f32 %v2239_v9, 0.0  ;;  %v2251_v0 = vadd.f32 %v7690_v4, %v1375_v7  ;;  %v1305_v12 = vpop.f32.mrf.mxu0  ;;  %v1378_v32 = vpop.f32.mrf.mxu1  ;;  %6062 = vmatpush3.bf16.msra.mxu1 %v7677_v16  ;;  %5712 = vmatpush3.bf16.msra.mxu0 %v6528_v46  ;;  %v3199_v24 = vrot.slane %v7792_v49, 1  ;;  %v6532_v7 = vld [vmem:[#allocation13 + $0x168] sm:$0xff]   ;;  %v8678_v54 = vrot.slane %v7741_v45, 7 }
 0x292   : > { %v2313_v11 = vsel %vm869_vm0, %v8677_v48, %v2312_v35  ;;  %v2240_v2 = vadd.f32 %v7685_v3, %v1377_v41  ;;  %2625 = vmatprep.mubr.bf16.mxu0 %v2376_v47  ;;  %v1379_v9 = vadd.f32 %v1378_v32, %v1305_v12  ;;  %6063 = vmatprep.subr.bf16.mxu1 %v6529_v1  ;;  %v8679_v16 = vrot.slane %v7713_v25, 7  ;;  %v6534_v48 = vld [vmem:[#allocation13 + $0xd0] sm:$0xff]  }
 0x293   : > { %v5310_v59 = vpack.c.bf16 %v2315_v42, %v2313_v11  ;;  %v2316_v28 = vrot.slane %v2295_v20, 7  ;;  %v2348_v30 = vrot.slane %v2295_v20, 1  ;;  %v7810_v8 = vmax.f32 %v2251_v0, 0.0  ;;  %5713 = vmatprep.subr.bf16.mxu0 %v6530_v22 }
 0x294   : > { %v7817_v46 = vsel %vm869_vm0, %v8679_v16, %v8678_v54  ;;  %v2296_v35 = vmax.f32 %v2240_v2, 0.0  ;;  %v2252_v3 = vadd.f32 %v7690_v4, %v1379_v9  ;;  %v3167_v22 = vrot.slane %v7792_v49, 7  ;;  %v6535_v2 = vld [vmem:[#allocation13 + $0x160] sm:$0xff]   ;;  %v2060_v9 = vpop.f32.mrf.mxu0  ;;  %v6536_v16 = vld [vmem:[#allocation13 + $0x108] sm:$0xff]  }
 0x295   : > { %5311 = vmatmul.mubr.msk.bf16.gmra.mxu0 %vm7502_vm4, %v5310_v59  ;;  %v3169_v41 = vrot.slane %v7810_v8, 7  ;;  %v8583_v42 = vrot.slane %v7810_v8, 1  ;;  %v2349_v47 = vsel %vm902_vm1, %v2346_v26, %v2348_v30  ;;  %6064 = vmatpush3.bf16.msra.mxu1 %v6529_v1  ;;  %v8680_v0 = vrot.slane %v7757_v29, 1 }
 0x296   : > { %5714 = vmatpush3.bf16.msra.mxu0 %v6531_v10  ;;  %v2318_v4 = vrot.slane %v2296_v35, 7  ;;  %v2350_v12 = vrot.slane %v2296_v35, 1  ;;  %v7830_v32 = vmax.f32 %v2252_v3, 0.0  ;;  %v5322_v59 = vpack.c.bf16 %v2349_v47, %v2347_v34  ;;  %6065 = vmatprep.subr.bf16.mxu1 %v6532_v7 }
 0x297   : > { %5715 = vmatprep.subr.bf16.mxu0 %v6533_v18  ;;  %v2379_v54 = vpack.c.bf16 %v2296_v35, %v2295_v20  ;;  %v7835_v11 = vsel %vm902_vm1, %v8680_v0, %v3199_v24  ;;  %v7840_v26 = vsel %vm902_vm1, %v3199_v24, %v8583_v42  ;;  %v8681_v1 = vrot.slane %v7757_v29, 7 }
 0x298   : > { %v8682_v34 = vrot.slane %v7741_v45, 7  ;;  %v3171_v20 = vrot.slane %v7830_v32, 7  ;;  %6057 = vmatprep.mubr.msk.bf16.mxu1 %vm7515_vm5, %v5322_v59  ;;  %v8683_v10 = vrot.slane %v7772_v37, 7  ;;  %v2319_v3 = vsel %vm869_vm0, %v2316_v28, %v2318_v4  ;;  %v7867_v4 = vpop.f32.mrf.mxu0 }
 0x299   : > { %v2351_v24 = vsel %vm902_vm1, %v2348_v30, %v2350_v12  ;;  %2633 = vmatprep.mubr.bf16.mxu0 %v2379_v54  ;;  %v2360_v47 = vsel %vm902_vm1, %v2350_v12, 0.0  ;;  %6066 = vmatpush3.bf16.msra.mxu1 %v6532_v7  ;;  %v6539_v7 = vld [vmem:[#allocation13 + $0x100] sm:$0xff]   ;;  %v7870_v12 = vsel %vm869_vm0, %v3167_v22, %v3169_v41 }
 0x29a   : > { %v7847_v18 = vsel %vm869_vm0, %v8682_v34, %v8681_v1  ;;  %v2317_v35 = vsel %vm869_vm0, %v8683_v10, %v2316_v28  ;;  %v8684_v34 = vmov %v8681_v1  ;;  %v5325_v37 = vpack.c.bf16 %v2360_v47, %v2351_v24  ;;  %5716 = vmatpush3.bf16.msra.mxu0 %v6534_v48  ;;  %6067 = vmatprep.subr.bf16.mxu1 %v6535_v2  ;;  %v6537_v10 = vld [vmem:[#allocation13 + $0xc8] sm:$0xff]   ;;  %v6538_v28 = vld [vmem:[#allocation13 + $0x158] sm:$0xff]   ;;  %v6547_v24 = vld [vmem:[#allocation13 + $0x140] sm:$0xff]  }
 0x29b   : > { %v5313_v0 = vpack.c.bf16 %v2319_v3, %v2317_v35  ;;  %v7863_v59 = vsel %vm869_vm0, %v8684_v34, %v3167_v22  ;;  %5717 = vmatprep.subr.bf16.mxu0 %v6536_v16  ;;  %8685 = vst [vmem:[#allocation41_spill] sm:$0xff] %v7870_v12  ;;  %v7873_v54 = vsel %vm869_vm0, %v3169_v41, %v3171_v20  ;;  %v6540_v16 = vld [vmem:[#allocation13 + $0xc0] sm:$0xff]   ;;  %v6541_v35 = vld [vmem:[#allocation13 + $0x150] sm:$0xff]   ;;  %v2064_v3 = vpop.f32.mrf.mxu0  ;;  %v6542_v22 = vld [vmem:[#allocation13 + $0x1f8] sm:$0xff]   ;;  %v8588_v34 = vsub.s32 4, %v7325_v44 }
 0x29c   : > { %8686 = vst [vmem:[#allocation42_spill] sm:$0xff] %v7873_v54  ;;  %6058 = vmatmul.mubr.msk.bf16.gmra.mxu1 %vm7558_vm15, %v5325_v37  ;;  %v6544_v41 = vld [vmem:[#allocation13 + $0x148] sm:$0xff]  }
 0x29d   : > { %5314 = vmatmul.mubr.msk.bf16.gmra.mxu0 %vm7550_vm14, %v5313_v0  ;;  %6068 = vmatpush3.bf16.msra.mxu1 %v6535_v2  ;;  %v7881_v20 = vpop.f32.mrf.mxu0  ;;  %v7883_v2 = vld [vmem:[#allocation13 + $0x238] sm:$0xff]  }
 0x29e   : > { %5718 = vmatpush3.bf16.msra.mxu0 %v6537_v10  ;;  %6069 = vmatprep.subr.bf16.mxu1 %v6538_v28  ;;  %v7889_v10 = vld [vmem:[#allocation16] sm:$0xff] }
 0x29f   : > { %5719 = vmatprep.subr.bf16.mxu0 %v6539_v7  ;;  %v2070_v0 = vpop.f32.mrf.mxu0 }
 0x2a1   : > { %6070 = vmatpush3.bf16.msra.mxu1 %v6538_v28  ;;  %v7885_v47 = vpop.f32.mrf.mxu0  ;;  %v7894_v28 = vrot.slane %v7889_v10, %v8588_v34 }
 0x2a2   : > { %5720 = vmatpush3.bf16.msra.mxu0 %v6540_v16  ;;  %6071 = vmatprep.subr.bf16.mxu1 %v6541_v35 }
 0x2a3   : > { %5757 = vmatprep.subr.bf16.mxu0 %v6542_v22  ;;  %v2074_v37 = vpop.f32.mrf.mxu0 }
 0x2a5   : > { %6072 = vmatpush3.bf16.msra.mxu1 %v6541_v35  ;;  %v7896_v7 = vpop.f32.mrf.mxu0 }
 0x2a6   : > { %6073 = vmatprep.subr.bf16.mxu1 %v6544_v41 }
 0x2a9   : > { %6074 = vmatpush3.bf16.msra.mxu1 %v6544_v41 }
 0x2aa   : > { %6075 = vmatprep.subr.bf16.mxu1 %v6547_v24 }
 0x2ad   : > { %6076 = vmatpush3.bf16.msra.mxu1 %v6547_v24  ;;  %v2080_v24 = vpop.f32.mrf.mxu0 }
 0x2ae   : > { %6085 = vmatprep.subr.bf16.mxu1 %v7883_v2 }
 0x2af   : > { %v7904_v60 = vpop.f32.mrf.mxu0 }
 0x2b0   : > { %8687 = vst [vmem:[#allocation43_spill] sm:$0xff] %v7904_v60 }
 0x2b3   : > { %v1987_v16 = vpop.f32.mrf.mxu1 }
 0x2b4   : > { %v2061_v35 = vadd.f32 %v2060_v9, %v1987_v16  ;;  %v2084_v16 = vpop.f32.mrf.mxu0 }
 0x2b5   : > { %v7898_v22 = vpop.f32.mrf.mxu1 }
 0x2b6   : > { %v2257_v41 = vadd.f32 %v7894_v28, %v2061_v35  ;;  %v7914_v55 = vpop.f32.mrf.mxu0 }
 0x2b7   : > { %v1991_v48 = vpop.f32.mrf.mxu1  ;;  %8688 = vst [vmem:[#allocation44_spill] sm:$0xff] %v7914_v55 }
 0x2b8   : > { %v2707_v30 = vmax.f32 %v2257_v41, 0.0  ;;  %v2065_v42 = vadd.f32 %v2064_v3, %v1991_v48  ;;  %v2090_v55 = vpop.f32.mrf.mxu0 }
 0x2b9   : > { %v7901_v1 = vpop.f32.mrf.mxu1 }
 0x2ba   : > { %v2258_v58 = vadd.f32 %v7894_v28, %v2065_v42  ;;  %v2723_v50 = vrot.slane %v2707_v30, 7  ;;  %v6543_v42 = vld [vmem:[#allocation13 + $0x1b8] sm:$0xff]  }
 0x2bb   : > { %v1997_v34 = vpop.f32.mrf.mxu1 }
 0x2bc   : > { %v2708_v52 = vmax.f32 %v2258_v58, 0.0  ;;  %v2071_v40 = vadd.f32 %v2070_v0, %v1997_v34  ;;  %v2746_v48 = vsel %vm869_vm0, 0.0, %v2723_v50  ;;  %v6545_v0 = vld [vmem:[#allocation13 + $0x1f0] sm:$0xff]  }
 0x2bd   : > { %v7906_v27 = vpop.f32.mrf.mxu1 }
 0x2be   : > { %v2724_v9 = vrot.slane %v2708_v52, 7  ;;  %v2259_v35 = vadd.f32 %v7894_v28, %v2071_v40  ;;  %v2788_v61 = vpack.c.bf16 %v2708_v52, %v2707_v30  ;;  %v2756_v15 = vrot.slane %v2708_v52, 1  ;;  %v6546_v52 = vld [vmem:[#allocation13 + $0x1b0] sm:$0xff]  }
 0x2bf   : > { %v2001_v62 = vpop.f32.mrf.mxu1  ;;  %v2755_v40 = vrot.slane %v2707_v30, 1 }
 0x2c0   : > { %v2725_v3 = vsel %vm869_vm0, %v2723_v50, %v2724_v9  ;;  %v2075_v41 = vadd.f32 %v2074_v37, %v2001_v62  ;;  %v2709_v56 = vmax.f32 %v2259_v35, 0.0  ;;  %3028 = vmatprep.mubr.bf16.mxu0 %v2788_v61 }
 0x2c1   : > { %v5352_v14 = vpack.c.bf16 %v2725_v3, %v2746_v48  ;;  %v7911_v58 = vpop.f32.mrf.mxu1  ;;  %v2757_v35 = vsel %vm902_vm1, %v2755_v40, %v2756_v15  ;;  %v6548_v3 = vld [vmem:[#allocation13 + $0x1e8] sm:$0xff]  }
 0x2c2   : > { %v2260_v34 = vadd.f32 %v7894_v28, %v2075_v41  ;;  %v2758_v12 = vrot.slane %v2709_v56, 1  ;;  %v2726_v62 = vrot.slane %v2709_v56, 7 }
 0x2c3   : > { %v2007_v54 = vpop.f32.mrf.mxu1  ;;  %5353 = vmatmul.mubr.msk.bf16.vlgmr.msra.gmra.mxu0 %vm7377_vm6, %v5352_v14 }
 0x2c4   : > { %v7918_v50 = vmax.f32 %v2260_v34, 0.0  ;;  %5758 = vmatpush3.bf16.msra.mxu0 %v6543_v42  ;;  %v2081_v37 = vadd.f32 %v2080_v24, %v2007_v54  ;;  %v2759_v48 = vsel %vm902_vm1, %v2756_v15, %v2758_v12 }
 0x2c5   : > { %v7920_v61 = vpop.f32.mrf.mxu1  ;;  %5759 = vmatprep.subr.bf16.mxu0 %v6545_v0  ;;  %v5364_v41 = vpack.c.bf16 %v2759_v48, %v2757_v35  ;;  %v2727_v0 = vsel %vm869_vm0, %v2724_v9, %v2726_v62  ;;  %v7935_v48 = vpop.f32.mrf.mxu0 }
 0x2c6   : > { %8689 = vst [vmem:[#allocation45_spill] sm:$0xff] %v7920_v61  ;;  %v2728_v30 = vrot.slane %v7918_v50, 7  ;;  %v2261_v14 = vadd.f32 %v7894_v28, %v2081_v37  ;;  %v2791_v42 = vpack.c.bf16 %v7918_v50, %v2709_v56  ;;  %v2760_v54 = vrot.slane %v7918_v50, 1  ;;  %v6549_v37 = vld [vmem:[#allocation13 + $0x1a8] sm:$0xff]   ;;  %8691 = vst [vmem:[#allocation47_spill] sm:$0xff] %v7935_v48  ;;  %v6554_v61 = vld [vmem:[#allocation13 + $0x1d8] sm:$0xff]  }
 0x2c7   : > { %v2011_v34 = vpop.f32.mrf.mxu1  ;;  %6077 = vmatprep.mubr.msk.bf16.mxu1 %vm7395_vm7, %v5364_v41 }
 0x2c8   : > { %v2085_v60 = vadd.f32 %v2084_v16, %v2011_v34  ;;  %5760 = vmatpush3.bf16.msra.mxu0 %v6546_v52  ;;  %v2711_v24 = vmax.f32 %v2261_v14, 0.0  ;;  %3036 = vmatprep.mubr.bf16.mxu0 %v2791_v42  ;;  %v2729_v40 = vsel %vm869_vm0, %v2726_v62, %v2728_v30  ;;  %v6551_v16 = vld [vmem:[#allocation13 + $0x1e0] sm:$0xff]   ;;  %v2761_v50 = vsel %vm902_vm1, %v2758_v12, %v2760_v54 }
 0x2c9   : > { %v7930_v15 = vpop.f32.mrf.mxu1  ;;  %5761 = vmatprep.subr.bf16.mxu0 %v6548_v3  ;;  %v5355_v56 = vpack.c.bf16 %v2729_v40, %v2727_v0  ;;  %v6552_v3 = vld [vmem:[#allocation13 + $0x1a0] sm:$0xff]   ;;  %v6553_v0 = vld [vmem:[#allocation13 + $0x230] sm:$0xff]   ;;  %v2094_v40 = vpop.f32.mrf.mxu0 }
 0x2ca   : > { %8690 = vst [vmem:[#allocation46_spill] sm:$0xff] %v7930_v15  ;;  %v2262_v35 = vadd.f32 %v7894_v28, %v2085_v60  ;;  %v2762_v41 = vrot.slane %v2711_v24, 1  ;;  %v2730_v15 = vrot.slane %v2711_v24, 7 }
 0x2cb   : > { %v2017_v52 = vpop.f32.mrf.mxu1  ;;  %5356 = vmatmul.mubr.msk.bf16.gmra.mxu0 %vm7441_vm12, %v5355_v56 }
 0x2cc   : > { %v2712_v34 = vmax.f32 %v2262_v35, 0.0  ;;  %v2763_v9 = vsel %vm902_vm1, %v2760_v54, %v2762_v41  ;;  %v2091_v14 = vadd.f32 %v2090_v55, %v2017_v52  ;;  %5762 = vmatpush3.bf16.msra.mxu0 %v6549_v37  ;;  %v6555_v37 = vld [vmem:[#allocation13 + $0x198] sm:$0xff]  }
 0x2cd   : > { %v7941_v62 = vpop.f32.mrf.mxu1  ;;  %v5367_v60 = vpack.c.bf16 %v2763_v9, %v2761_v50  ;;  %5763 = vmatprep.subr.bf16.mxu0 %v6551_v16  ;;  %v6556_v50 = vld [vmem:[#allocation13 + $0x228] sm:$0xff]  }
 0x2ce   : > { %v2732_v42 = vrot.slane %v2712_v34, 7  ;;  %v2263_v35 = vadd.f32 %v7894_v28, %v2091_v14  ;;  %v2794_v12 = vpack.c.bf16 %v2712_v34, %v2711_v24  ;;  %v2764_v16 = vrot.slane %v2712_v34, 1  ;;  %v6557_v14 = vld [vmem:[#allocation13 + $0x1d0] sm:$0xff]  }
 0x2cf   : > { %v2021_v48 = vpop.f32.mrf.mxu1  ;;  %6078 = vmatmul.mubr.msk.bf16.vlgmr.msra.gmra.mxu1 %vm7459_vm13, %v5367_v60  ;;  %v6558_v34 = vld [vmem:[#allocation13 + $0x190] sm:$0xff]  }
 0x2d0   : > { %v2095_v56 = vadd.f32 %v2094_v40, %v2021_v48  ;;  %v2713_v55 = vmax.f32 %v2263_v35, 0.0  ;;  %6086 = vmatpush3.bf16.msra.mxu1 %v7883_v2  ;;  %5764 = vmatpush3.bf16.msra.mxu0 %v6552_v3  ;;  %v2733_v54 = vsel %vm869_vm0, %v2730_v15, %v2732_v42  ;;  %v2731_v48 = vsel %vm869_vm0, %v2728_v30, %v2730_v15  ;;  %v6560_v30 = vld [vmem:[#allocation13 + $0x1c8] sm:$0xff]  }
 0x2d1   : > { %3044 = vmatprep.mubr.bf16.mxu0 %v2794_v12  ;;  %6087 = vmatprep.subr.bf16.mxu1 %v6553_v0  ;;  %v5358_v24 = vpack.c.bf16 %v2733_v54, %v2731_v48  ;;  %v6563_v48 = vld [vmem:[#allocation13 + $0x1c0] sm:$0xff]  }
 0x2d2   : > { %v2264_v52 = vadd.f32 %v7894_v28, %v2095_v56  ;;  %v2766_v9 = vrot.slane %v2713_v55, 1  ;;  %5765 = vmatprep.subr.bf16.mxu0 %v6554_v61  ;;  %v2734_v40 = vrot.slane %v2713_v55, 7  ;;  %v2765_v28 = vsel %vm902_vm1, %v2762_v41, %v2764_v16  ;;  %v6559_v61 = vld [vmem:[#allocation13 + $0x220] sm:$0xff]  }
 0x2d3   : > { %5359 = vmatmul.mubr.msk.bf16.gmra.mxu0 %vm7502_vm4, %v5358_v24  ;;  %v6566_v24 = vld [vmem:[#allocation13 + $0x2b8] sm:$0xff]  }
 0x2d4   : > { %v2714_v60 = vmax.f32 %v2264_v52, 0.0  ;;  %6088 = vmatpush3.bf16.msra.mxu1 %v6553_v0  ;;  %5766 = vmatpush3.bf16.msra.mxu0 %v6555_v37  ;;  %v2767_v2 = vsel %vm902_vm1, %v2764_v16, %v2766_v9  ;;  %v2735_v0 = vsel %vm869_vm0, %v2732_v42, %v2734_v40  ;;  %v6561_v16 = vld [vmem:[#allocation13 + $0x188] sm:$0xff]   ;;  %v6565_v42 = vld [vmem:[#allocation13 + $0x210] sm:$0xff]  }
 0x2d5   : > { %6089 = vmatprep.subr.bf16.mxu1 %v6556_v50  ;;  %v5370_v56 = vpack.c.bf16 %v2767_v2, %v2765_v28  ;;  %5767 = vmatprep.subr.bf16.mxu0 %v6557_v14  ;;  %v7960_v14 = vpop.f32.mrf.mxu0  ;;  %v2267_v2 = vsub.s32 5, %v7325_v44  ;;  %v2067_v28 = vadd.f32 %v7881_v20, %v7901_v1  ;;  %v6572_v1 = vld [vmem:[#allocation13 + $0x2a8] sm:$0xff]   ;;  %v6574_v20 = vld [vmem:[#allocation13 + $0x2f8] sm:$0xff]  }
 0x2d6   : > { %v2736_v3 = vrot.slane %v2714_v60, 7  ;;  %v2768_v35 = vrot.slane %v2714_v60, 1  ;;  %v2797_v15 = vpack.c.bf16 %v2714_v60, %v2713_v55  ;;  %v6562_v55 = vld [vmem:[#allocation13 + $0x218] sm:$0xff]   ;;  %v8693_v60 = vpack.c.bf16 %v7746_v6, %v7729_v36  ;;  %v6569_v36 = vld [vmem:[#allocation13 + $0x2b0] sm:$0xff]  }
 0x2d7   : > { %6081 = vmatprep.mubr.msk.bf16.mxu1 %vm7515_vm5, %v5370_v56  ;;  %v7980_v6 = vrot.slane %v7889_v10, %v2267_v2  ;;  %v6571_v56 = vld [vmem:[#allocation13 + $0x200] sm:$0xff]  }
 0x2d8   : > { %v2737_v12 = vsel %vm869_vm0, %v2734_v40, %v2736_v3  ;;  %6090 = vmatpush3.bf16.msra.mxu1 %v6556_v50  ;;  %3052 = vmatprep.mubr.bf16.mxu0 %v2797_v15  ;;  %v2769_v37 = vsel %vm902_vm1, %v2766_v9, %v2768_v35  ;;  %v2778_v41 = vsel %vm902_vm1, %v2768_v35, 0.0  ;;  %v8692_v50 = vpack.c.bf16 %v7704_v39, %v7694_v53  ;;  %v6564_v9 = vld [vmem:[#allocation13 + $0x180] sm:$0xff]   ;;  %v7974_v40 = vpop.f32.mrf.mxu0  ;;  %v6568_v3 = vld [vmem:[#allocation13 + $0x208] sm:$0xff]   ;;  %v6567_v53 = vld [vmem:[#allocation13 + $0x278] sm:$0xff]  }
 0x2d9   : > { %5768 = vmatpush3.bf16.msra.mxu0 %v6558_v34  ;;  %v5361_v54 = vpack.c.bf16 %v2737_v12, %v2735_v0  ;;  %6091 = vmatprep.subr.bf16.mxu1 %v6559_v61  ;;  %v5373_v52 = vpack.c.bf16 %v2778_v41, %v2769_v37  ;;  %v2073_v39 = vadd.f32 %v7885_v47, %v7906_v27  ;;  %v6570_v47 = vld [vmem:[#allocation13 + $0x270] sm:$0xff]   ;;  %v6573_v15 = vld [vmem:[#allocation13 + $0x268] sm:$0xff]   ;;  %v6575_v12 = vld [vmem:[#allocation13 + $0x2a0] sm:$0xff]   ;;  %v3203_v37 = vrot.slane %v7830_v32, 1 }
 0x2da   : > { %5769 = vmatprep.subr.bf16.mxu0 %v6560_v30  ;;  %v7982_v35 = vpop.f32.mrf.mxu0  ;;  %v8694_v34 = vpack.c.bf16 %v7724_v19, %v7719_v17  ;;  %v8695_v27 = vpack.c.bf16 %v7741_v45, %v7713_v25  ;;  %v2270_v19 = vadd.f32 %v7980_v6, %v2067_v28  ;;  %v8696_v0 = vpack.c.bf16 %v7817_v46, %v7781_v23  ;;  %v6578_v46 = vld [vmem:[#allocation13 + $0x298] sm:$0xff]  }
 0x2db   : > { %5362 = vmatmul.mubr.msk.bf16.gmra.mxu0 %vm7550_vm14, %v5361_v54  ;;  %6082 = vmatmul.mubr.msk.bf16.gmra.mxu1 %vm7558_vm15, %v5373_v52  ;;  %v2271_v30 = vadd.f32 %v7980_v6, %v2073_v39  ;;  %v6577_v54 = vld [vmem:[#allocation13 + $0x2f0] sm:$0xff]   ;;  %v8697_v41 = vpack.c.bf16 %v7792_v49, %v7757_v29  ;;  %v8698_v23 = vpack.c.bf16 %v7786_v51, %v7764_v43  ;;  %v6580_v43 = vld [vmem:[#allocation13 + $0x2e8] sm:$0xff]   ;;  %v6579_v51 = vld [vmem:[#allocation13 + $0x258] sm:$0xff]  }
 0x2dc   : > { %6092 = vmatpush3.bf16.msra.mxu1 %v6559_v61  ;;  %3463 = vmatprep.mubr.bf16.mxu0 %v8692_v50  ;;  %v2063_v61 = vadd.f32 %v7867_v4, %v7898_v22  ;;  %v7997_v17 = vpop.f32.mrf.mxu0  ;;  %v8003_v4 = vmax.f32 %v2270_v19, 0.0  ;;  %v8699_v29 = vpack.c.bf16 %v7840_v26, %v7835_v11  ;;  %v8700_v50 = vrot.slane %v7810_v8, 1  ;;  %v6581_v26 = vld [vmem:[#allocation13 + $0x290] sm:$0xff]   ;;  %v6585_v19 = vld [vmem:[#allocation13 + $0x248] sm:$0xff]  }
 0x2dd   : > { %5770 = vmatpush3.bf16.msra.mxu0 %v6561_v16  ;;  %6101 = vmatprep.mubr.msk.bf16.mxu1 %vm7395_vm7, %v8693_v60  ;;  %v8001_v25 = vmax.f32 %v2271_v30, 0.0  ;;  %v6576_v16 = vld [vmem:[#allocation13 + $0x260] sm:$0xff]   ;;  %v3213_v60 = vsel %vm902_vm1, %v3203_v37, 0.0  ;;  %v8701_v39 = vpack.c.bf16 %v7863_v59, %v7847_v18 }
 0x2de   : > { %6093 = vmatprep.subr.bf16.mxu1 %v6562_v55  ;;  %5771 = vmatprep.subr.bf16.mxu0 %v6563_v48  ;;  %v2269_v45 = vadd.f32 %v7980_v6, %v2063_v61  ;;  %v8005_v22 = vpop.f32.mrf.mxu0  ;;  %v8024_v48 = vpop.f32.mrf.mxu1  ;;  %v3610_v49 = vrot.slane %v8003_v4, 1  ;;  %v8702_v61 = vld [vmem:[#allocation45_spill] sm:$0xff]  ;;  %v8703_v30 = vld [vmem:[#allocation43_spill] sm:$0xff] }
 0x2e0   : > { %6094 = vmatpush3.bf16.msra.mxu1 %v6562_v55  ;;  %v8016_v52 = vmax.f32 %v2269_v45, 0.0  ;;  %v3612_v55 = vrot.slane %v8001_v25, 1  ;;  %v8042_v2 = vpop.f32.mrf.mxu1  ;;  %v6587_v45 = vld [vmem:[#allocation13 + $0x280] sm:$0xff]  }
 0x2e1   : > { %6095 = vmatprep.subr.bf16.mxu1 %v6565_v42  ;;  %5772 = vmatpush3.bf16.msra.mxu0 %v6564_v9  ;;  %v3204_v9 = vsel %vm902_vm1, %v8700_v50, %v3203_v37  ;;  %v8705_v37 = vld [vmem:[#allocation46_spill] sm:$0xff] }
 0x2e2   : > { %5809 = vmatprep.subr.bf16.mxu0 %v6566_v24  ;;  %v3609_v11 = vrot.slane %v8016_v52, 1  ;;  %v3613_v24 = vsel %vm902_vm1, %v3610_v49, %v3612_v55  ;;  %v2198_v18 = vpop.f32.mrf.mxu1 }
 0x2e4   : > { %6096 = vmatpush3.bf16.msra.mxu1 %v6565_v42  ;;  %5401 = vmatmul.mubr.msk.bf16.vlgmr.msra.gmra.mxu0 %vm7377_vm6, %v8694_v34  ;;  %v8032_v42 = vpop.f32.mrf.mxu0  ;;  %v3611_v28 = vsel %vm902_vm1, %v3609_v11, %v3610_v49  ;;  %v6583_v34 = vld [vmem:[#allocation13 + $0x2e0] sm:$0xff]   ;;  %v3577_v49 = vrot.slane %v8016_v52, 7 }
 0x2e5   : > { %6097 = vmatprep.subr.bf16.mxu1 %v6568_v3  ;;  %3471 = vmatprep.mubr.bf16.mxu0 %v8695_v27  ;;  %v6582_v27 = vld [vmem:[#allocation13 + $0x250] sm:$0xff]  }
 0x2e6   : > { %5810 = vmatpush3.bf16.msra.mxu0 %v6567_v53  ;;  %v5624_v53 = vpop.f32.mrf.mxu0 }
 0x2e7   : > { %5811 = vmatprep.subr.bf16.mxu0 %v6569_v36  ;;  %v5421_v36 = vpack.c.bf16 %v3213_v60, %v3204_v9  ;;  %v6590_v9 = vld [vmem:[#allocation13 + $0x378] sm:$0xff]  }
 0x2e8   : > { %6098 = vmatpush3.bf16.msra.mxu1 %v6568_v3  ;;  %v3232_v3 = vpack.c.bf16 %v7830_v32, %v7810_v8  ;;  %v6584_v8 = vld [vmem:[#allocation13 + $0x288] sm:$0xff]   ;;  %v2077_v32 = vadd.f32 %v7896_v7, %v7911_v58  ;;  %v8058_v59 = vpop.f32.mrf.mxu0  ;;  %v3578_v7 = vrot.slane %v8003_v4, 7 }
 0x2e9   : > { %6099 = vmatprep.subr.bf16.mxu1 %v6571_v56 }
 0x2ea   : > { %5812 = vmatpush3.bf16.msra.mxu0 %v6570_v47  ;;  %v6586_v47 = vld [vmem:[#allocation13 + $0x2d8] sm:$0xff]   ;;  %v2272_v58 = vadd.f32 %v7980_v6, %v2077_v32  ;;  %v3579_v60 = vsel %vm869_vm0, %v3577_v49, %v3578_v7 }
 0x2eb   : > { %5813 = vmatprep.subr.bf16.mxu0 %v6572_v1  ;;  %v2083_v1 = vadd.f32 %v8703_v30, %v8702_v61  ;;  %v6593_v61 = vld [vmem:[#allocation13 + $0x370] sm:$0xff]  }
 0x2ec   : > { %6100 = vmatpush3.bf16.msra.mxu1 %v6571_v56  ;;  %5404 = vmatmul.mubr.msk.bf16.gmra.mxu0 %vm7441_vm12, %v8696_v0  ;;  %v5460_v56 = vpack.c.bf16 %v3613_v24, %v3611_v28  ;;  %v3642_v0 = vpack.c.bf16 %v8003_v4, %v8016_v52  ;;  %v8085_v11 = vmax.f32 %v2272_v58, 0.0  ;;  %v5622_v52 = vadd.f32 %v8005_v22, %v7997_v17  ;;  %v6591_v17 = vld [vmem:[#allocation13 + $0x338] sm:$0xff]  }
 0x2ed   : > { %6109 = vmatprep.subr.bf16.mxu1 %v6574_v20  ;;  %3479 = vmatprep.mubr.bf16.mxu0 %v8697_v41  ;;  %v8706_v41 = vld [vmem:[#allocation44_spill] sm:$0xff]  ;;  %v3600_v28 = vsel %vm869_vm0, 0.0, %v3577_v49 }
 0x2ee   : > { %5814 = vmatpush3.bf16.msra.mxu0 %v6573_v15  ;;  %v5448_v22 = vpack.c.bf16 %v3579_v60, %v3600_v28  ;;  %v3582_v30 = vrot.slane %v8085_v11, 7  ;;  %v3614_v58 = vrot.slane %v8085_v11, 1  ;;  %v6597_v49 = vld [vmem:[#allocation13 + $0x328] sm:$0xff]  }
 0x2ef   : > { %6102 = vmatmul.mubr.msk.bf16.vlgmr.msra.gmra.mxu1 %vm7459_vm13, %v8698_v23  ;;  %5815 = vmatprep.subr.bf16.mxu0 %v6575_v12  ;;  %v8066_v12 = vpop.f32.mrf.mxu1  ;;  %v8707_v23 = vld [vmem:[#allocation42_spill] sm:$0xff] }
 0x2f0   : > { %6105 = vmatprep.mubr.msk.bf16.mxu1 %vm7515_vm5, %v8699_v29  ;;  %6110 = vmatpush3.bf16.msra.mxu1 %v6574_v20  ;;  %v8704_v20 = vld [vmem:[#allocation47_spill] sm:$0xff]  ;;  %v6589_v29 = vld [vmem:[#allocation13 + $0x2d0] sm:$0xff]   ;;  %v3615_v60 = vsel %vm902_vm1, %v3612_v55, %v3614_v58 }
 0x2f1   : > { %6111 = vmatprep.subr.bf16.mxu1 %v6577_v54  ;;  %v2093_v15 = vadd.f32 %v8704_v20, %v7941_v62  ;;  %v6601_v55 = vld [vmem:[#allocation13 + $0x3b0] sm:$0xff]  }
 0x2f2   : > { %5816 = vmatpush3.bf16.msra.mxu0 %v6576_v16  ;;  %v2087_v16 = vadd.f32 %v8706_v41, %v8705_v37 }
 0x2f3   : > { %5817 = vmatprep.subr.bf16.mxu0 %v6578_v46  ;;  %v8708_v46 = vld [vmem:[#allocation41_spill] sm:$0xff]  ;;  %v2275_v50 = vadd.f32 %v7980_v6, %v2093_v15 }
 0x2f4   : > { %6112 = vmatpush3.bf16.msra.mxu1 %v6577_v54  ;;  %5407 = vmatmul.mubr.msk.bf16.gmra.mxu0 %vm7502_vm4, %v8701_v39  ;;  %v8070_v54 = vpop.f32.mrf.mxu0  ;;  %v8709_v62 = vpack.c.bf16 %v8707_v23, %v8708_v46  ;;  %v2279_v39 = vsub.s32 6, %v7325_v44  ;;  %v6598_v23 = vld [vmem:[#allocation13 + $0x3b8] sm:$0xff]  }
 0x2f5   : > { %6113 = vmatprep.subr.bf16.mxu1 %v6580_v43  ;;  %3487 = vmatprep.mubr.bf16.mxu0 %v3232_v3  ;;  %v2274_v3 = vadd.f32 %v7980_v6, %v2087_v16  ;;  %v8101_v32 = vmax.f32 %v2275_v50, 0.0 }
 0x2f6   : > { %5818 = vmatpush3.bf16.msra.mxu0 %v6579_v51  ;;  %v6588_v51 = vld [vmem:[#allocation13 + $0x240] sm:$0xff]   ;;  %v8089_v24 = vpop.f32.mrf.mxu0 }
 0x2f7   : > { %6106 = vmatmul.mubr.msk.bf16.gmra.mxu1 %vm7558_vm15, %v5421_v36  ;;  %5819 = vmatprep.subr.bf16.mxu0 %v6581_v26  ;;  %v2201_v26 = vpop.f32.mrf.mxu1  ;;  %v6592_v36 = vld [vmem:[#allocation13 + $0x2c8] sm:$0xff]  }
 0x2f8   : > { %6114 = vmatpush3.bf16.msra.mxu1 %v6580_v43  ;;  %6125 = vmatprep.mubr.msk.bf16.mxu1 %vm7395_vm7, %v5460_v56  ;;  %v2273_v43 = vadd.f32 %v7980_v6, %v2083_v1  ;;  %v8108_v1 = vmax.f32 %v2274_v3, 0.0 }
 0x2f9   : > { %6115 = vmatprep.subr.bf16.mxu1 %v6583_v34 }
 0x2fa   : > { %5820 = vmatpush3.bf16.msra.mxu0 %v6582_v27  ;;  %v8096_v56 = vmax.f32 %v2273_v43, 0.0  ;;  %v2097_v27 = vadd.f32 %v7960_v14, %v8024_v48  ;;  %v8112_v48 = vrot.slane %v7889_v10, %v2279_v39 }
 0x2fb   : > { %5821 = vmatprep.subr.bf16.mxu0 %v6584_v8  ;;  %v5625_v8 = vadd.f32 %v5624_v53, %v8032_v42  ;;  %v6595_v53 = vld [vmem:[#allocation13 + $0x2c0] sm:$0xff]  }
 0x2fc   : > { %6116 = vmatpush3.bf16.msra.mxu1 %v6583_v34  ;;  %5410 = vmatmul.mubr.msk.bf16.gmra.mxu0 %vm7550_vm14, %v8709_v62  ;;  %v5619_v34 = vadd.f32 %v7982_v35, %v7974_v40  ;;  %v3645_v40 = vpack.c.bf16 %v8085_v11, %v8001_v25  ;;  %v8106_v35 = vpop.f32.mrf.mxu0  ;;  %v3616_v20 = vrot.slane %v8096_v56, 1  ;;  %v2276_v15 = vadd.f32 %v7980_v6, %v2097_v27 }
 0x2fd   : > { %6117 = vmatprep.subr.bf16.mxu1 %v6586_v47  ;;  %3882 = vmatprep.mubr.bf16.mxu0 %v3642_v0  ;;  %v2207_v14 = vadd.f32 %v8042_v2, %v5625_v8  ;;  %v3620_v2 = vrot.slane %v8101_v32, 1  ;;  %v3618_v6 = vrot.slane %v8108_v1, 1  ;;  %v3648_v4 = vpack.c.bf16 %v8108_v1, %v8096_v56  ;;  %v6602_v8 = vld [vmem:[#allocation13 + $0x358] sm:$0xff]  }
 0x2fe   : > { %5822 = vmatpush3.bf16.msra.mxu0 %v6585_v19  ;;  %v2199_v42 = vadd.f32 %v5619_v34, %v2198_v18  ;;  %v3580_v19 = vrot.slane %v8001_v25, 7  ;;  %v6596_v18 = vld [vmem:[#allocation13 + $0x368] sm:$0xff]   ;;  %v8125_v37 = vpop.f32.mrf.mxu0  ;;  %v3617_v46 = vsel %vm902_vm1, %v3614_v58, %v3616_v20  ;;  %v8131_v62 = vmax.f32 %v2276_v15, 0.0 }
 0x2ff   : > { %5823 = vmatprep.subr.bf16.mxu0 %v6587_v45  ;;  %v6594_v45 = vld [vmem:[#allocation13 + $0x330] sm:$0xff]   ;;  %v2283_v41 = vadd.f32 %v8112_v48, %v2207_v14  ;;  %v3621_v50 = vsel %vm902_vm1, %v3618_v6, %v3620_v2  ;;  %v3619_v25 = vsel %vm902_vm1, %v3616_v20, %v3618_v6  ;;  %v3584_v28 = vrot.slane %v8096_v56, 7 }
 0x300   : > { %6118 = vmatpush3.bf16.msra.mxu1 %v6586_v47  ;;  %v2202_v47 = vadd.f32 %v5622_v52, %v2201_v26  ;;  %v3583_v0 = vsel %vm869_vm0, %v3580_v19, %v3582_v30  ;;  %v2281_v16 = vadd.f32 %v8112_v48, %v2199_v42  ;;  %v3586_v26 = vrot.slane %v8108_v1, 7  ;;  %v8143_v52 = vpop.f32.mrf.mxu1  ;;  %v5633_v3 = vpop.f32.mrf.mxu0  ;;  %v6604_v42 = vld [vmem:[#allocation13 + $0x3a8] sm:$0xff]  }
 0x301   : > { %6119 = vmatprep.subr.bf16.mxu1 %v6589_v29  ;;  %v8147_v39 = vmax.f32 %v2283_v41, 0.0  ;;  %v3622_v34 = vrot.slane %v8131_v62, 1  ;;  %v5466_v27 = vpack.c.bf16 %v3621_v50, %v3619_v25  ;;  %v6607_v41 = vld [vmem:[#allocation13 + $0x3a0] sm:$0xff]  }
 0x302   : > { %5824 = vmatpush3.bf16.msra.mxu0 %v6588_v51  ;;  %v2282_v10 = vadd.f32 %v8112_v48, %v2202_v47  ;;  %v3587_v47 = vsel %vm869_vm0, %v3584_v28, %v3586_v26  ;;  %v5635_v56 = vpop.f32.mrf.mxu0  ;;  %v6611_v25 = vld [vmem:[#allocation13 + $0x340] sm:$0xff]  }
 0x303   : > { %5861 = vmatprep.subr.bf16.mxu0 %v6590_v9  ;;  %v6599_v9 = vld [vmem:[#allocation13 + $0x360] sm:$0xff]   ;;  %v3623_v20 = vsel %vm902_vm1, %v3620_v2, %v3622_v34  ;;  %v3632_v15 = vsel %vm902_vm1, %v3622_v34, 0.0 }
 0x304   : > { %6120 = vmatpush3.bf16.msra.mxu1 %v6589_v29  ;;  %v3581_v29 = vsel %vm869_vm0, %v3578_v7, %v3580_v19  ;;  %v8136_v43 = vmax.f32 %v2282_v10, 0.0  ;;  %v5463_v7 = vpack.c.bf16 %v3617_v46, %v3615_v60  ;;  %v6603_v19 = vld [vmem:[#allocation13 + $0x318] sm:$0xff]   ;;  %v6605_v10 = vld [vmem:[#allocation13 + $0x350] sm:$0xff]   ;;  %v5636_v6 = vpop.f32.mrf.mxu0  ;;  %v5469_v2 = vpack.c.bf16 %v3632_v15, %v3623_v20 }
 0x305   : > { %5449 = vmatmul.mubr.msk.bf16.vlgmr.msra.gmra.mxu0 %vm7377_vm6, %v5448_v22  ;;  %6121 = vmatprep.subr.bf16.mxu1 %v6592_v36  ;;  %v5451_v51 = vpack.c.bf16 %v3583_v0, %v3581_v29  ;;  %v3590_v0 = vrot.slane %v8131_v62, 7  ;;  %v6606_v29 = vld [vmem:[#allocation13 + $0x310] sm:$0xff]  }
 0x306   : > { %3890 = vmatprep.mubr.bf16.mxu0 %v3645_v40  ;;  %5862 = vmatpush3.bf16.msra.mxu0 %v6591_v17  ;;  %v6600_v17 = vld [vmem:[#allocation13 + $0x320] sm:$0xff]   ;;  %v4045_v22 = vrot.slane %v8136_v43, 1  ;;  %v4047_v40 = vrot.slane %v8147_v39, 1  ;;  %v6618_v20 = vld [vmem:[#allocation14 + $0x70] sm:$0xff]  }
 0x307   : > { %5863 = vmatprep.subr.bf16.mxu0 %v6593_v61  ;;  %v2214_v61 = vpop.f32.mrf.mxu1 }
 0x308   : > { %6122 = vmatpush3.bf16.msra.mxu1 %v6592_v36  ;;  %v8149_v36 = vmax.f32 %v2281_v16, 0.0  ;;  %v4048_v58 = vsel %vm902_vm1, %v4045_v22, %v4047_v40  ;;  %v5628_v16 = vadd.f32 %v8070_v54, %v8058_v59  ;;  %v5634_v59 = vadd.f32 %v5633_v3, %v8125_v37  ;;  %v5638_v54 = vpop.f32.mrf.mxu0 }
 0x309   : > { %6123 = vmatprep.subr.bf16.mxu1 %v6595_v53  ;;  %v6036_v11 = vpop.f32.mrf.mxu1 }
 0x30a   : > { %5864 = vmatpush3.bf16.msra.mxu0 %v6594_v45  ;;  %v4044_v14 = vrot.slane %v8149_v36, 1  ;;  %v2210_v50 = vadd.f32 %v8066_v12, %v5628_v16  ;;  %v4077_v37 = vpack.c.bf16 %v8136_v43, %v8149_v36  ;;  %v5639_v3 = vpop.f32.mrf.mxu0 }
 0x30b   : > { %5865 = vmatprep.subr.bf16.mxu0 %v6596_v18 }
 0x30c   : > { %6124 = vmatpush3.bf16.msra.mxu1 %v6595_v53  ;;  %v3585_v53 = vsel %vm869_vm0, %v3582_v30, %v3584_v28  ;;  %v4046_v18 = vsel %vm902_vm1, %v4044_v14, %v4045_v22  ;;  %v3651_v30 = vpack.c.bf16 %v8131_v62, %v8101_v32  ;;  %v6608_v62 = vld [vmem:[#allocation13 + $0x348] sm:$0xff]   ;;  %v2284_v21 = vadd.f32 %v8112_v48, %v2210_v50  ;;  %v6616_v22 = vld [vmem:[#allocation14 + $0x78] sm:$0xff]  }
 0x30d   : > { %5452 = vmatmul.mubr.msk.bf16.gmra.mxu0 %vm7441_vm12, %v5451_v51  ;;  %6133 = vmatprep.subr.bf16.mxu1 %v6598_v23  ;;  %v5454_v45 = vpack.c.bf16 %v3587_v47, %v3585_v53  ;;  %v5508_v46 = vpack.c.bf16 %v4048_v58, %v4046_v18  ;;  %v4012_v28 = vrot.slane %v8149_v36, 7  ;;  %v4015_v18 = vrot.slane %v8147_v39, 7 }
 0x30e   : > { %3898 = vmatprep.mubr.bf16.mxu0 %v3648_v4  ;;  %5866 = vmatpush3.bf16.msra.mxu0 %v6597_v49  ;;  %v5631_v49 = vadd.f32 %v8106_v35, %v8089_v24  ;;  %v6609_v24 = vld [vmem:[#allocation13 + $0x308] sm:$0xff]   ;;  %v5637_v35 = vadd.f32 %v5636_v6, %v5635_v56 }
 0x30f   : > { %6126 = vmatmul.mubr.msk.bf16.vlgmr.msra.gmra.mxu1 %vm7459_vm13, %v5463_v7  ;;  %5867 = vmatprep.subr.bf16.mxu0 %v6599_v9  ;;  %v2217_v9 = vpop.f32.mrf.mxu1  ;;  %v4035_v36 = vsel %vm869_vm0, 0.0, %v4012_v28 }
 0x310   : > { %6129 = vmatprep.mubr.msk.bf16.mxu1 %vm7515_vm5, %v5466_v27  ;;  %6134 = vmatpush3.bf16.msra.mxu1 %v6598_v23  ;;  %v3588_v23 = vrot.slane %v8101_v32, 7  ;;  %v6610_v32 = vld [vmem:[#allocation13 + $0x398] sm:$0xff]   ;;  %v2215_v4 = vadd.f32 %v5631_v49, %v2214_v61  ;;  %v2218_v7 = vadd.f32 %v5634_v59, %v2217_v9  ;;  %v2223_v1 = vadd.f32 %v8143_v52, %v5637_v35  ;;  %v6612_v27 = vld [vmem:[#allocation13 + $0x300] sm:$0xff]   ;;  %v6614_v61 = vld [vmem:[#allocation13 + $0x388] sm:$0xff]  }
 0x311   : > { %6135 = vmatprep.subr.bf16.mxu1 %v6601_v55  ;;  %v6623_v9 = vld [vmem:[#allocation14 + $0x60] sm:$0xff]  }
 0x312   : > { %5868 = vmatpush3.bf16.msra.mxu0 %v6600_v17  ;;  %v3591_v51 = vsel %vm869_vm0, %v3588_v23, %v3590_v0  ;;  %v3589_v60 = vsel %vm869_vm0, %v3586_v26, %v3588_v23  ;;  %v6613_v26 = vld [vmem:[#allocation13 + $0x390] sm:$0xff]   ;;  %v2285_v34 = vadd.f32 %v8112_v48, %v2215_v4  ;;  %v2286_v17 = vadd.f32 %v8112_v48, %v2218_v7  ;;  %v6622_v23 = vld [vmem:[#allocation14 + $0xb8] sm:$0xff]  }
 0x313   : > { %5869 = vmatprep.subr.bf16.mxu0 %v6602_v8  ;;  %v5457_v12 = vpack.c.bf16 %v3591_v51, %v3589_v60  ;;  %v8205_v8 = vmax.f32 %v2284_v21, 0.0  ;;  %v2287_v47 = vadd.f32 %v8112_v48, %v2223_v1  ;;  %v6625_v4 = vld [vmem:[#allocation14 + $0xb0] sm:$0xff]  }
 0x314   : > { %6136 = vmatpush3.bf16.msra.mxu1 %v6601_v55  ;;  %v4013_v55 = vrot.slane %v8136_v43, 7  ;;  %v5640_v43 = vadd.f32 %v5639_v3, %v5638_v54  ;;  %v8210_v56 = vmax.f32 %v2285_v34, 0.0  ;;  %v6629_v3 = vld [vmem:[#allocation14 + $0x50] sm:$0xff]  }
 0x315   : > { %5455 = vmatmul.mubr.msk.bf16.gmra.mxu0 %vm7502_vm4, %v5454_v45  ;;  %6137 = vmatprep.subr.bf16.mxu1 %v6604_v42  ;;  %v4080_v15 = vpack.c.bf16 %v8205_v8, %v8147_v39  ;;  %v8216_v45 = vmax.f32 %v2287_v47, 0.0  ;;  %v4017_v58 = vrot.slane %v8205_v8, 7  ;;  %v4049_v13 = vrot.slane %v8205_v8, 1  ;;  %v6624_v39 = vld [vmem:[#allocation14 + $0x20] sm:$0xff]   ;;  %v6633_v8 = vld [vmem:[#allocation14 + $0x8] sm:$0xff]  }
 0x316   : > { %3906 = vmatprep.mubr.bf16.mxu0 %v3651_v30  ;;  %5870 = vmatpush3.bf16.msra.mxu0 %v6603_v19  ;;  %v4014_v52 = vsel %vm869_vm0, %v4012_v28, %v4013_v55  ;;  %v2226_v14 = vadd.f32 %v6036_v11, %v5640_v43  ;;  %v8212_v19 = vmax.f32 %v2286_v17, 0.0  ;;  %v4051_v0 = vrot.slane %v8210_v56, 1  ;;  %v6619_v30 = vld [vmem:[#allocation14 + $0x30] sm:$0xff]   ;;  %v6632_v17 = vld [vmem:[#allocation14 + $0x48] sm:$0xff]   ;;  %v6635_v47 = vld [vmem:[#allocation14 + $0x40] sm:$0xff]  }
 0x317   : > { %6130 = vmatmul.mubr.msk.bf16.gmra.mxu1 %vm7558_vm15, %v5469_v2  ;;  %5871 = vmatprep.subr.bf16.mxu0 %v6605_v10  ;;  %v5496_v53 = vpack.c.bf16 %v4014_v52, %v4035_v36  ;;  %v6615_v10 = vld [vmem:[#allocation13 + $0x380] sm:$0xff]   ;;  %v6620_v2 = vld [vmem:[#allocation14 + $0x68] sm:$0xff]   ;;  %v4055_v16 = vrot.slane %v8216_v45, 1  ;;  %v4050_v59 = vsel %vm902_vm1, %v4047_v40, %v4049_v13  ;;  %v6626_v40 = vld [vmem:[#allocation14 + $0x58] sm:$0xff]   ;;  %v4023_v28 = vrot.slane %v8216_v45, 7 }
 0x318   : > { %6138 = vmatpush3.bf16.msra.mxu1 %v6604_v42  ;;  %6149 = vmatprep.mubr.msk.bf16.mxu1 %vm7395_vm7, %v5508_v46  ;;  %v6617_v42 = vld [vmem:[#allocation14 + $0x38] sm:$0xff]   ;;  %v2288_v11 = vadd.f32 %v8112_v48, %v2226_v14  ;;  %v4053_v6 = vrot.slane %v8212_v19, 1  ;;  %v4018_v46 = vsel %vm869_vm0, %v4015_v18, %v4017_v58  ;;  %v4052_v48 = vsel %vm902_vm1, %v4049_v13, %v4051_v0  ;;  %v6638_v36 = vld [vmem:[#allocation14 + $0x88] sm:$0xff]   ;;  %v6639_v14 = vld [vmem:[#allocation14 + $0x80] sm:$0xff]  }
 0x319   : > { %6139 = vmatprep.subr.bf16.mxu1 %v6607_v41  ;;  %v4021_v54 = vrot.slane %v8212_v19, 7  ;;  %v5511_v60 = vpack.c.bf16 %v4052_v48, %v4050_v59 }
 0x31a   : > { %5872 = vmatpush3.bf16.msra.mxu0 %v6606_v29  ;;  %v4003_v29 = vmax.f32 %v2288_v11, 0.0  ;;  %v4054_v51 = vsel %vm902_vm1, %v4051_v0, %v4053_v6  ;;  %v4056_v50 = vsel %vm902_vm1, %v4053_v6, %v4055_v16 }
 0x31b   : > { %5873 = vmatprep.subr.bf16.mxu0 %v6608_v62  ;;  %v6621_v62 = vld [vmem:[#allocation14 + $0x28] sm:$0xff]   ;;  %v5514_v7 = vpack.c.bf16 %v4056_v50, %v4054_v51  ;;  %v2431_v51 = vsub.s32 7, %v7325_v44 }
 0x31c   : > { %6140 = vmatpush3.bf16.msra.mxu1 %v6607_v41  ;;  %v4016_v41 = vsel %vm869_vm0, %v4013_v55, %v4015_v18  ;;  %v4057_v35 = vrot.slane %v4003_v29, 1  ;;  %v4086_v1 = vpack.c.bf16 %v4003_v29, %v8216_v45  ;;  %v4025_v34 = vrot.slane %v4003_v29, 7 }
 0x31d   : > { %5458 = vmatmul.mubr.msk.bf16.gmra.mxu0 %vm7550_vm14, %v5457_v12  ;;  %6141 = vmatprep.subr.bf16.mxu1 %v6610_v32  ;;  %v5499_v49 = vpack.c.bf16 %v4018_v46, %v4016_v41 }
 0x31e   : > { %5874 = vmatpush3.bf16.msra.mxu0 %v6609_v24  ;;  %4317 = vmatprep.mubr.bf16.mxu0 %v4077_v37  ;;  %v4019_v24 = vrot.slane %v8210_v56, 7  ;;  %v4058_v21 = vsel %vm902_vm1, %v4055_v16, %v4057_v35  ;;  %v4067_v55 = vsel %vm902_vm1, %v4057_v35, 0.0  ;;  %v6627_v37 = vld [vmem:[#allocation14 + $0x18] sm:$0xff]   ;;  %v4026_v43 = vsel %vm869_vm0, %v4023_v28, %v4025_v34 }
 0x31f   : > { %5875 = vmatprep.subr.bf16.mxu0 %v6611_v25  ;;  %v5517_v31 = vpack.c.bf16 %v4067_v55, %v4058_v21  ;;  %vm4480_vm1 = vcmask 1045504  }
 0x320   : > { %6142 = vmatpush3.bf16.msra.mxu1 %v6610_v32  ;;  %v4083_v32 = vpack.c.bf16 %v8212_v19, %v8210_v56  ;;  %v4022_v12 = vsel %vm869_vm0, %v4019_v24, %v4021_v54  ;;  %v4020_v25 = vsel %vm869_vm0, %v4017_v58, %v4019_v24 }
 0x321   : > { %6143 = vmatprep.subr.bf16.mxu1 %v6613_v26  ;;  %v5502_v5 = vpack.c.bf16 %v4022_v12, %v4020_v25 }
 0x322   : > { %5876 = vmatpush3.bf16.msra.mxu0 %v6612_v27  ;;  %v6630_v27 = vld [vmem:[#allocation14 + $0x10] sm:$0xff]  }
 0x323   : > { %5913 = vmatprep.subr.bf16.mxu0 %v6616_v22  ;;  %v4024_v22 = vsel %vm869_vm0, %v4021_v54, %v4023_v28  ;;  %v8274_v54 = vld [vmem:[#allocation16 + $0x8] sm:$0x1f]  ;;  %vm4447_vm0 = vcmask 1041408  }
 0x324   : > { %6144 = vmatpush3.bf16.msra.mxu1 %v6613_v26  ;;  %v6631_v26 = vld [vmem:[#allocation14 + $0xa0] sm:$0xff]   ;;  %v5505_v52 = vpack.c.bf16 %v4026_v43, %v4024_v22 }
 0x325   : > { %5497 = vmatmul.mubr.msk.bf16.vlgmr.msra.gmra.mxu0 %vm7377_vm6, %v5496_v53  ;;  %6145 = vmatprep.subr.bf16.mxu1 %v6614_v61 }
 0x326   : > { %4325 = vmatprep.mubr.bf16.mxu0 %v4080_v15  ;;  %5914 = vmatpush3.bf16.msra.mxu0 %v6617_v42 }
 0x327   : > { %5915 = vmatprep.subr.bf16.mxu0 %v6618_v20 }
 0x328   : > { %6146 = vmatpush3.bf16.msra.mxu1 %v6614_v61  ;;  %v6636_v61 = vld [vmem:[#allocation14] sm:$0xff]  }
 0x329   : > { %6147 = vmatprep.subr.bf16.mxu1 %v6615_v10 }
 0x32a   : > { %5916 = vmatpush3.bf16.msra.mxu0 %v6619_v30 }
 0x32b   : > { %5917 = vmatprep.subr.bf16.mxu0 %v6620_v2 }
 0x32c   : > { %6148 = vmatpush3.bf16.msra.mxu1 %v6615_v10 }
 0x32d   : > { %5500 = vmatmul.mubr.msk.bf16.gmra.mxu0 %vm7441_vm12, %v5499_v49  ;;  %6157 = vmatprep.subr.bf16.mxu1 %v6622_v23 }
 0x32e   : > { %4333 = vmatprep.mubr.bf16.mxu0 %v4083_v32  ;;  %5918 = vmatpush3.bf16.msra.mxu0 %v6621_v62  ;;  %v6641_v32 = vld [vmem:[#allocation16] sm:$0xff] }
 0x32f   : > { %6150 = vmatmul.mubr.msk.bf16.vlgmr.msra.gmra.mxu1 %vm7459_vm13, %v5511_v60  ;;  %5919 = vmatprep.subr.bf16.mxu0 %v6623_v9  ;;  %v8276_v60 = vrot.slane %v6641_v32, %v2431_v51 }
 0x330   : > { %6153 = vmatprep.mubr.msk.bf16.mxu1 %vm7515_vm5, %v5514_v7  ;;  %6158 = vmatpush3.bf16.msra.mxu1 %v6622_v23  ;;  %v8710_v7 = vsub.s32 0, %v7325_v44 }
 0x331   : > { %6159 = vmatprep.subr.bf16.mxu1 %v6625_v4 }
 0x332   : > { %5920 = vmatpush3.bf16.msra.mxu0 %v6624_v39  ;;  %v8281_v39 = vrot.slane %v8274_v54, %v8710_v7 }
 0x333   : > { %5921 = vmatprep.subr.bf16.mxu0 %v6626_v40 }
 0x334   : > { %6160 = vmatpush3.bf16.msra.mxu1 %v6625_v4 }
 0x335   : > { %5503 = vmatmul.mubr.msk.bf16.gmra.mxu0 %vm7502_vm4, %v5502_v5  ;;  %6161 = vmatprep.subr.bf16.mxu1 %v6628_v57 }
 0x336   : > { %4341 = vmatprep.mubr.bf16.mxu0 %v4086_v1  ;;  %5922 = vmatpush3.bf16.msra.mxu0 %v6627_v37 }
 0x337   : > { %6154 = vmatmul.mubr.msk.bf16.gmra.mxu1 %vm7558_vm15, %v5517_v31  ;;  %5923 = vmatprep.subr.bf16.mxu0 %v6629_v3 }
 0x338   : > { %6162 = vmatpush3.bf16.msra.mxu1 %v6628_v57 }
 0x339   : > { %6163 = vmatprep.subr.bf16.mxu1 %v6631_v26 }
 0x33a   : > { %5924 = vmatpush3.bf16.msra.mxu0 %v6630_v27 }
 0x33b   : > { %5925 = vmatprep.subr.bf16.mxu0 %v6632_v17 }
 0x33c   : > { %6164 = vmatpush3.bf16.msra.mxu1 %v6631_v26 }
 0x33d   : > { %5506 = vmatmul.mubr.msk.bf16.gmra.mxu0 %vm7550_vm14, %v5505_v52  ;;  %6165 = vmatprep.subr.bf16.mxu1 %v6634_v38 }
 0x33e   : > { %5926 = vmatpush3.bf16.msra.mxu0 %v6633_v8 }
 0x33f   : > { %5927 = vmatprep.subr.bf16.mxu0 %v6635_v47 }
 0x340   : > { %6166 = vmatpush3.bf16.msra.mxu1 %v6634_v38 }
 0x341   : > { %6167 = vmatprep.subr.bf16.mxu1 %v6637_v33 }
 0x342   : > { %5928 = vmatpush3.bf16.msra.mxu0 %v6636_v61 }
 0x343   : > { %v5669_v56 = vpop.f32.mrf.mxu0 }
 0x344   : > { %6168 = vmatpush3.bf16.msra.mxu1 %v6637_v33 }
 0x345   : > { %6169 = vmatprep.subr.bf16.mxu1 %v6638_v36  ;;  %v5670_v42 = vpop.f32.mrf.mxu0 }
 0x346   : > { %v5671_v24 = vadd.f32 %v5670_v42, %v5669_v56 }
 0x347   : > { %v5672_v53 = vpop.f32.mrf.mxu0 }
 0x348   : > { %6170 = vmatpush3.bf16.msra.mxu1 %v6638_v36  ;;  %v2612_v5 = vadd.f32 %v5671_v24, %v8276_v60 }
 0x349   : > { %6171 = vmatprep.subr.bf16.mxu1 %v6639_v14  ;;  %v5673_v63 = vpop.f32.mrf.mxu0 }
 0x34a   : > { %v5674_v26 = vadd.f32 %v5673_v63, %v5672_v53 }
 0x34b   : > { %v5675_v19 = vpop.f32.mrf.mxu0 }
 0x34c   : > { %6172 = vmatpush3.bf16.msra.mxu1 %v6639_v14  ;;  %v2615_v56 = vadd.f32 %v5674_v26, %v8276_v60 }
 0x34d   : > { %v5676_v20 = vpop.f32.mrf.mxu0 }
 0x34e   : > { %v5677_v9 = vadd.f32 %v5676_v20, %v5675_v19 }
 0x34f   : > { %v5678_v15 = vpop.f32.mrf.mxu0 }
 0x350   : > { %v6055_v11 = vpop.f32.mrf.mxu1  ;;  %v2620_v40 = vadd.f32 %v5677_v9, %v8276_v60  ;;  %v8712_v9 = vld [vmem:[#allocation28_spill] sm:$0xff] }
 0x351   : > { %v5679_v45 = vpop.f32.mrf.mxu0  ;;  %vm532_vm7 = vcmp.ge.s32.totalorder %v8712_v9, 2  ;;  %vm540_vm13 = vcmp.lt.s32.totalorder %v8712_v9, 6 }
 0x352   : > { %v2676_v6 = vpop.f32.mrf.mxu1  ;;  %v5680_v21 = vadd.f32 %v5679_v45, %v5678_v15  ;;  %v2685_v28 = vadd.f32 %v6055_v11, %v2620_v40 }
 0x353   : > { %v2677_v17 = vadd.f32 %v2676_v6, %v2612_v5 }
 0x354   : > { %v6056_v13 = vpop.f32.mrf.mxu1  ;;  %v2623_v8 = vadd.f32 %v5680_v21, %v8276_v60 }
 0x355   : > { %v5681_v10 = vpop.f32.mrf.mxu0 }
 0x356   : > { %v2679_v16 = vpop.f32.mrf.mxu1  ;;  %v2688_v20 = vadd.f32 %v6056_v13, %v2623_v8 }
 0x357   : > { %v5682_v18 = vpop.f32.mrf.mxu0  ;;  %v2680_v15 = vadd.f32 %v2679_v16, %v2615_v56 }
 0x358   : > { %v5683_v53 = vadd.f32 %v5682_v18, %v5681_v10 }
 0x359   : > { %v8259_v58 = vpop.f32.mrf.mxu0 }
 0x35b   : > { %v8261_v0 = vpop.f32.mrf.mxu0 }
 0x35c   : > { %v8267_v46 = vpop.f32.mrf.mxu1 }
 0x35d   : > { %v5687_v30 = vpop.f32.mrf.mxu0 }
 0x35e   : > { %v8269_v62 = vpop.f32.mrf.mxu1 }
 0x35f   : > { %v5688_v2 = vpop.f32.mrf.mxu0 }
 0x360   : > { %v8272_v59 = vpop.f32.mrf.mxu1  ;;  %v5689_v6 = vadd.f32 %v5688_v2, %v5687_v30  ;;  %v5686_v30 = vadd.f32 %v8261_v0, %v8259_v58 }
 0x361   : > { %v8263_v41 = vpop.f32.mrf.mxu0 }
 0x362   : > { %v8284_v12 = vpop.f32.mrf.mxu1  ;;  %v2636_v2 = vadd.f32 %v5689_v6, %v8276_v60 }
 0x363   : > { %v8265_v23 = vpop.f32.mrf.mxu0 }
 0x383   : > { %v5721_v48 = vpop.f32.mrf.mxu0 }
 0x385   : > { %v5722_v29 = vpop.f32.mrf.mxu0 }
 0x386   : > { %v5723_v35 = vadd.f32 %v5722_v29, %v5721_v48 }
 0x387   : > { %v5724_v49 = vpop.f32.mrf.mxu0 }
 0x388   : > { %v3031_v31 = vadd.f32 %v5723_v35, %v8281_v39  ;;  %v8713_v35 = vld [vmem:[#allocation33_spill] sm:$0xff] }
 0x389   : > { %v5725_v50 = vpop.f32.mrf.mxu0  ;;  %vm533_vm2 = vcmp.ge.s32.totalorder %v8713_v35, 2  ;;  %vm541_vm8 = vcmp.lt.s32.totalorder %v8713_v35, 6 }
 0x38a   : > { %v5726_v3 = vadd.f32 %v5725_v50, %v5724_v49  ;;  %v2628_v49 = vadd.f32 %v5683_v53, %v8276_v60  ;;  %v8711_v50 = vld [vmem:[#allocation27_spill] sm:$0xff] }
 0x38b   : > { %v5727_v4 = vpop.f32.mrf.mxu0  ;;  %vm531_vm6 = vcmp.ge.s32.totalorder %v8711_v50, 2  ;;  %vm539_vm12 = vcmp.lt.s32.totalorder %v8711_v50, 6 }
 0x38c   : > { %v3034_v36 = vadd.f32 %v5726_v3, %v8281_v39  ;;  %vm8322_vm3 = vmpackc.low %vm532_vm7, %vm531_vm6 }
 0x38d   : > { %v5728_v57 = vpop.f32.mrf.mxu0  ;;  %vm8334_vm4 = vmpackc.low %vm540_vm13, %vm539_vm12 }
 0x38e   : > { %v5729_v25 = vadd.f32 %v5728_v57, %v5727_v4  ;;  %v2693_v4 = vadd.f32 %v8269_v62, %v2628_v49 }
 0x38f   : > { %v5730_v55 = vpop.f32.mrf.mxu0  ;;  %v6079_v37 = vpop.f32.mrf.mxu1 }
 0x390   : > { %v3039_v1 = vadd.f32 %v5729_v25, %v8281_v39 }
 0x391   : > { %v5731_v34 = vpop.f32.mrf.mxu0  ;;  %v3095_v27 = vpop.f32.mrf.mxu1 }
 0x392   : > { %v3104_v22 = vadd.f32 %v6079_v37, %v3039_v1  ;;  %v5732_v38 = vadd.f32 %v5731_v34, %v5730_v55  ;;  %v3096_v43 = vadd.f32 %v3095_v27, %v3031_v31  ;;  %v5692_v37 = vadd.f32 %v8265_v23, %v8263_v41 }
 0x393   : > { %v6080_v52 = vpop.f32.mrf.mxu1  ;;  %v5733_v14 = vpop.f32.mrf.mxu0 }
 0x394   : > { %v3128_v47 = vadd.f32 %v3104_v22, %v2685_v28  ;;  %v3126_v33 = vadd.f32 %v3096_v43, %v2677_v17  ;;  %v3042_v61 = vadd.f32 %v5732_v38, %v8281_v39  ;;  %v2631_v38 = vadd.f32 %v5686_v30, %v8276_v60 }
 0x395   : > { %v3098_v42 = vpop.f32.mrf.mxu1  ;;  %v5734_v11 = vpop.f32.mrf.mxu0 }
 0x396   : > { %3136 = vst [vmem:[%s8294_s5 + $0x40] sm:$0xff] %v3128_v47  ;;  %3134 = vst [vmem:[%s8294_s5] sm:$0xff] %v3126_v33  ;;  %v3107_v63 = vadd.f32 %v6080_v52, %v3042_v61  ;;  %v3099_v19 = vadd.f32 %v3098_v42, %v3034_v36  ;;  %v4431_v45 = vmax.f32 %v3126_v33, 0.0  ;;  %v8298_v48 = vmax.f32 %v3128_v47, 0.0  ;;  %v8718_v33 = vld [vmem:[#allocation34_spill] sm:$0xff] }
 0x397   : > { %v5736_v18 = vpop.f32.mrf.mxu0  ;;  %v5735_v51 = vadd.f32 %v5734_v11, %v5733_v14  ;;  %vm534_vm5 = vcmp.ge.s32.totalorder %v8718_v33, 2  ;;  %v2701_v14 = vadd.f32 %v8267_v46, %v2636_v2  ;;  %v2639_v42 = vadd.f32 %v5692_v37, %v8276_v60 }
 0x398   : > { %v3129_v29 = vadd.f32 %v3107_v63, %v2688_v20  ;;  %v3127_v10 = vadd.f32 %v3099_v19, %v2680_v15  ;;  %v4448_v13 = vrot.slane %v4431_v45, 6  ;;  %v4484_v24 = vrot.slane %v8298_v48, 2  ;;  %vm5546_vm10 = vmpackc.low %vm534_vm5, %vm533_vm2 }
 0x399   : > { %v5737_v32 = vpop.f32.mrf.mxu0  ;;  %v4481_v7 = vrot.slane %v4431_v45, 2  ;;  %v3047_v58 = vadd.f32 %v5735_v51, %v8281_v39  ;;  %v4451_v53 = vrot.slane %v8298_v48, 6  ;;  %vm542_vm9 = vcmp.lt.s32.totalorder %v8718_v33, 6 }
 0x39a   : > { %3137 = vst [vmem:[%s8294_s5 + $0x60] sm:$0xff] %v3129_v29  ;;  %3135 = vst [vmem:[%s8294_s5 + $0x20] sm:$0xff] %v3127_v10  ;;  %v4432_v16 = vmax.f32 %v3127_v10, 0.0  ;;  %v8313_v40 = vmax.f32 %v3129_v29, 0.0  ;;  %v5738_v5 = vadd.f32 %v5737_v32, %v5736_v18  ;;  %v4471_v3 = vsel %vm4447_vm0, 0.0, %v4448_v13 }
 0x39b   : > { %v5739_v21 = vpop.f32.mrf.mxu0  ;;  %v6083_v55 = vpop.f32.mrf.mxu1  ;;  %v2696_v29 = vadd.f32 %v8284_v12, %v2631_v38  ;;  %v2704_v51 = vadd.f32 %v8272_v59, %v2639_v42  ;;  %vm5558_vm11 = vmpackc.low %vm542_vm9, %vm541_vm8 }
 0x39c   : > { %v4449_v57 = vrot.slane %v4432_v16, 6  ;;  %v4482_v25 = vrot.slane %v4432_v16, 2  ;;  %v4514_v0 = vpack.c.bf16 %v4432_v16, %v4431_v45  ;;  %v4453_v43 = vrot.slane %v8313_v40, 6 }
 0x39d   : > { %v5740_v31 = vpop.f32.mrf.mxu0  ;;  %v3111_v26 = vpop.f32.mrf.mxu1  ;;  %v4517_v47 = vpack.c.bf16 %v8313_v40, %v8298_v48  ;;  %v3050_v56 = vadd.f32 %v5738_v5, %v8281_v39  ;;  %v4486_v63 = vrot.slane %v8313_v40, 2 }
 0x39e   : > { %v4450_v1 = vsel %vm4447_vm0, %v4448_v13, %v4449_v57  ;;  %v4483_v41 = vsel %vm4480_vm1, %v4481_v7, %v4482_v25  ;;  %v4485_v23 = vsel %vm4480_vm1, %v4482_v25, %v4484_v24  ;;  %v5741_v27 = vadd.f32 %v5740_v31, %v5739_v21  ;;  %4753 = vmatprep.mubr.bf16.mxu0 %v4514_v0  ;;  %v8720_v7 = vld [vmem:[#allocation37_spill] sm:$0xff]  ;;  %v8722_v31 = vld [vmem:[#allocation40_spill] sm:$0xff] }
 0x39f   : > { %v5544_v34 = vpack.c.bf16 %v4450_v1, %v4471_v3  ;;  %v3112_v17 = vadd.f32 %v3111_v26, %v3047_v58  ;;  %v5556_v22 = vpack.c.bf16 %v4485_v23, %v4483_v41  ;;  %v5742_v8 = vpop.f32.mrf.mxu0  ;;  %v6084_v52 = vpop.f32.mrf.mxu1  ;;  %v4452_v46 = vsel %vm4447_vm0, %v4449_v57, %v4451_v53  ;;  %v8721_v58 = vld [vmem:[#allocation39_spill] sm:$0xff] }
 0x3a0   : > { %v3055_v61 = vadd.f32 %v5741_v27, %v8281_v39  ;;  %v4454_v60 = vsel %vm4447_vm0, %v4451_v53, %v4453_v43  ;;  %v4487_v50 = vsel %vm4480_vm1, %v4484_v24, %v4486_v63  ;;  %v8719_v24 = vld [vmem:[#allocation36_spill] sm:$0xff]  ;;  %vm544_vm15 = vcmp.lt.s32.totalorder %v8720_v7, 6 }
 0x3a1   : > { %v3130_v36 = vadd.f32 %v3112_v17, %v2693_v4  ;;  %5545 = vmatmul.mubr.msk.bf16.vlgmr.msra.gmra.mxu0 %vm8322_vm3, %v5544_v34  ;;  %6173 = vmatprep.mubr.msk.bf16.mxu1 %vm8334_vm4, %v5556_v22  ;;  %v5743_v19 = vpop.f32.mrf.mxu0  ;;  %v3114_v20 = vpop.f32.mrf.mxu1  ;;  %v5547_v30 = vpack.c.bf16 %v4454_v60, %v4452_v46  ;;  %vm543_vm14 = vcmp.lt.s32.totalorder %v8719_v24, 6  ;;  %vm535_vm6 = vcmp.ge.s32.totalorder %v8719_v24, 2 }
 0x3a2   : > { %4761 = vmatprep.mubr.bf16.mxu0 %v4517_v47  ;;  %v3120_v15 = vadd.f32 %v6083_v55, %v3055_v61  ;;  %v5744_v11 = vadd.f32 %v5743_v19, %v5742_v8  ;;  %v3115_v6 = vadd.f32 %v3114_v20, %v3050_v56  ;;  %vm536_vm7 = vcmp.ge.s32.totalorder %v8720_v7, 2  ;;  %vm5561_vm13 = vmpackc.low %vm544_vm15, %vm543_vm14 }
 0x3a3   : > { %3138 = vst [vmem:[%s8294_s5 + $0x80] sm:$0xff] %v3130_v36  ;;  %v4435_v45 = vmax.f32 %v3130_v36, 0.0  ;;  %vm545_vm12 = vcmp.lt.s32.totalorder %v8721_v58, 6  ;;  %vm546_vm2 = vcmp.lt.s32.totalorder %v8722_v31, 6  ;;  %vm5549_vm3 = vmpackc.low %vm536_vm7, %vm535_vm6  ;;  %vm537_vm5 = vcmp.ge.s32.totalorder %v8721_v58, 2 }
 0x3a4   : > { %v8356_v10 = vpop.f32.mrf.mxu0  ;;  %v3132_v48 = vadd.f32 %v3120_v15, %v2701_v14  ;;  %v3058_v49 = vadd.f32 %v5744_v11, %v8281_v39  ;;  %v3131_v12 = vadd.f32 %v3115_v6, %v2696_v29  ;;  %vm5564_vm4 = vmpackc.low %vm546_vm2, %vm545_vm12  ;;  %vm538_vm8 = vcmp.ge.s32.totalorder %v8722_v31, 2 }
 0x3a5   : > { %v4488_v18 = vrot.slane %v4435_v45, 2  ;;  %v4455_v25 = vrot.slane %v4435_v45, 6 }
 0x3a6   : > { %v8366_v9 = vpop.f32.mrf.mxu0  ;;  %3140 = vst [vmem:[%s8294_s5 + $0xc0] sm:$0xff] %v3132_v48  ;;  %v4437_v13 = vmax.f32 %v3132_v48, 0.0  ;;  %v3123_v32 = vadd.f32 %v6084_v52, %v3058_v49  ;;  %3139 = vst [vmem:[%s8294_s5 + $0xa0] sm:$0xff] %v3131_v12  ;;  %v4436_v39 = vmax.f32 %v3131_v12, 0.0 }
 0x3a7   : > { %v4489_v16 = vsel %vm4480_vm1, %v4486_v63, %v4488_v18  ;;  %v4456_v28 = vsel %vm4447_vm0, %v4453_v43, %v4455_v25  ;;  %v5775_v12 = vadd.f32 %v8366_v9, %v8356_v10 }
 0x3a8   : > { %v5559_v59 = vpack.c.bf16 %v4489_v16, %v4487_v50  ;;  %v8377_v2 = vpop.f32.mrf.mxu0  ;;  %v3133_v4 = vadd.f32 %v3123_v32, %v2704_v51  ;;  %v4492_v57 = vrot.slane %v4437_v13, 2  ;;  %v4457_v21 = vrot.slane %v4436_v39, 6 }
 0x3a9   : > { %5548 = vmatmul.mubr.msk.bf16.gmra.mxu0 %vm5546_vm10, %v5547_v30  ;;  %v4490_v55 = vrot.slane %v4436_v39, 2  ;;  %v4520_v35 = vpack.c.bf16 %v4436_v39, %v4435_v45  ;;  %v4459_v33 = vrot.slane %v4437_v13, 6  ;;  %v8724_v30 = vsub.s32 2, %v7325_v44 }
 0x3aa   : > { %v8381_v37 = vpop.f32.mrf.mxu0  ;;  %6174 = vmatmul.mubr.msk.bf16.vlgmr.msra.gmra.mxu1 %vm5558_vm11, %v5559_v59  ;;  %3141 = vst [vmem:[%s8294_s5 + $0xe0] sm:$0xff] %v3133_v4  ;;  %v4438_v5 = vmax.f32 %v3133_v4, 0.0  ;;  %v4458_v1 = vsel %vm4447_vm0, %v4455_v25, %v4457_v21 }
 0x3ab   : > { %4769 = vmatprep.mubr.bf16.mxu0 %v4520_v35  ;;  %v4491_v62 = vsel %vm4480_vm1, %v4488_v18, %v4490_v55  ;;  %v4493_v3 = vsel %vm4480_vm1, %v4490_v55, %v4492_v57  ;;  %v5550_v34 = vpack.c.bf16 %v4458_v1, %v4456_v28  ;;  %v4460_v14 = vsel %vm4447_vm0, %v4457_v21, %v4459_v33 }
 0x3ac   : > { %v5779_v0 = vpop.f32.mrf.mxu0  ;;  %v5562_v26 = vpack.c.bf16 %v4493_v3, %v4491_v62  ;;  %v4494_v41 = vrot.slane %v4438_v5, 2  ;;  %v4461_v22 = vrot.slane %v4438_v5, 6  ;;  %v4523_v47 = vpack.c.bf16 %v4438_v5, %v4437_v13 }
 0x3ad   : > { %v8723_v13 = vsub.s32 1, %v7325_v44  ;;  %v8428_v59 = vrot.slane %v8274_v54, %v8724_v30  ;;  %v5778_v24 = vadd.f32 %v8381_v37, %v8377_v2 }
 0x3ae   : > { %v5780_v23 = vpop.f32.mrf.mxu0  ;;  %6177 = vmatprep.mubr.msk.bf16.mxu1 %vm5561_vm13, %v5562_v26  ;;  %v4495_v27 = vsel %vm4480_vm1, %v4492_v57, %v4494_v41  ;;  %v4504_v17 = vsel %vm4480_vm1, %v4494_v41, 0.0  ;;  %v4462_v36 = vsel %vm4447_vm0, %v4459_v33, %v4461_v22  ;;  %vm5552_vm1 = vmpackc.low %vm538_vm8, %vm537_vm5 }
 0x3af   : > { %v6103_v38 = vpop.f32.mrf.mxu1  ;;  %v5565_v52 = vpack.c.bf16 %v4504_v17, %v4495_v27  ;;  %v5553_v42 = vpack.c.bf16 %v4462_v36, %v4460_v14  ;;  %v5781_v51 = vadd.f32 %v5780_v23, %v5779_v0  ;;  %v8423_v16 = vrot.slane %v8274_v54, %v8723_v13 }
 0x3b0   : > { %v5782_v8 = vpop.f32.mrf.mxu0 }
 0x3b1   : > { %5551 = vmatmul.mubr.msk.bf16.gmra.mxu0 %vm5549_vm3, %v5550_v34  ;;  %v3530_v43 = vpop.f32.mrf.mxu1  ;;  %v3474_v7 = vadd.f32 %v5781_v51, %v8423_v16  ;;  %v3466_v25 = vadd.f32 %v5775_v12, %v8423_v16  ;;  %v3469_v37 = vadd.f32 %v5778_v24, %v8423_v16 }
 0x3b2   : > { %v5783_v40 = vpop.f32.mrf.mxu0  ;;  %6178 = vmatmul.mubr.msk.bf16.gmra.mxu1 %vm5564_vm4, %v5565_v52  ;;  %4777 = vmatprep.mubr.bf16.mxu0 %v4523_v47 }
 0x3b3   : > { %v6104_v53 = vpop.f32.mrf.mxu1  ;;  %v5784_v57 = vadd.f32 %v5783_v40, %v5782_v8  ;;  %v3531_v0 = vadd.f32 %v3530_v43, %v3466_v25  ;;  %v3539_v1 = vadd.f32 %v6103_v38, %v3474_v7 }
 0x3b4   : > { %v5785_v61 = vpop.f32.mrf.mxu0 }
 0x3b5   : > { %v3533_v20 = vpop.f32.mrf.mxu1  ;;  %v3477_v2 = vadd.f32 %v5784_v57, %v8423_v16 }
 0x3b6   : > { %v5786_v56 = vpop.f32.mrf.mxu0  ;;  %v3534_v8 = vadd.f32 %v3533_v20, %v3469_v37 }
 0x3b7   : > { %v8410_v11 = vpop.f32.mrf.mxu1  ;;  %v5787_v31 = vadd.f32 %v5786_v56, %v5785_v61  ;;  %v3542_v33 = vadd.f32 %v6104_v53, %v3477_v2 }
 0x3b8   : > { %v5788_v63 = vpop.f32.mrf.mxu0 }
 0x3b9   : > { %5554 = vmatmul.mubr.msk.bf16.gmra.mxu0 %vm5552_vm1, %v5553_v42  ;;  %v3546_v46 = vpop.f32.mrf.mxu1  ;;  %v3482_v36 = vadd.f32 %v5787_v31, %v8423_v16 }
 0x3ba   : > { %v5789_v19 = vpop.f32.mrf.mxu0 }
 0x3bb   : > { %v8416_v18 = vpop.f32.mrf.mxu1  ;;  %v5790_v40 = vadd.f32 %v5789_v19, %v5788_v63  ;;  %v3547_v19 = vadd.f32 %v3546_v46, %v3482_v36 }
 0x3bc   : > { %v8406_v15 = vpop.f32.mrf.mxu0 }
 0x3bd   : > { %v3549_v39 = vpop.f32.mrf.mxu1  ;;  %v3485_v51 = vadd.f32 %v5790_v40, %v8423_v16 }
 0x3be   : > { %v8408_v45 = vpop.f32.mrf.mxu0 }
 0x3bf   : > { %v3550_v7 = vadd.f32 %v3549_v39, %v3485_v51 }
 0x3c0   : > { %v8412_v6 = vpop.f32.mrf.mxu0 }
 0x3c2   : > { %v8414_v29 = vpop.f32.mrf.mxu0 }
 0x3c5   : > { %v5825_v60 = vpop.f32.mrf.mxu0 }
 0x3c7   : > { %v5826_v48 = vpop.f32.mrf.mxu0 }
 0x3c8   : > { %v5827_v32 = vadd.f32 %v5826_v48, %v5825_v60 }
 0x3c9   : > { %v5828_v49 = vpop.f32.mrf.mxu0 }
 0x3ca   : > { %v3885_v35 = vadd.f32 %v5827_v32, %v8428_v59 }
 0x3cb   : > { %v5829_v50 = vpop.f32.mrf.mxu0 }
 0x3cc   : > { %v5830_v21 = vadd.f32 %v5829_v50, %v5828_v49  ;;  %v5793_v50 = vadd.f32 %v8408_v45, %v8406_v15 }
 0x3cd   : > { %v5831_v4 = vpop.f32.mrf.mxu0 }
 0x3ce   : > { %v3888_v27 = vadd.f32 %v5830_v21, %v8428_v59 }
 0x3cf   : > { %v5832_v10 = vpop.f32.mrf.mxu0  ;;  %v6127_v9 = vpop.f32.mrf.mxu1 }
 0x3d0   : > { %v5833_v55 = vadd.f32 %v5832_v10, %v5831_v4  ;;  %v3490_v10 = vadd.f32 %v5793_v50, %v8423_v16 }
 0x3d1   : > { %v5834_v5 = vpop.f32.mrf.mxu0  ;;  %v3949_v58 = vpop.f32.mrf.mxu1 }
 0x3d2   : > { %v3893_v62 = vadd.f32 %v5833_v55, %v8428_v59  ;;  %v3950_v3 = vadd.f32 %v3949_v58, %v3885_v35  ;;  %v3555_v35 = vadd.f32 %v8410_v11, %v3490_v10  ;;  %v8725_v11 = vsub.s32 3, %v7325_v44 }
 0x3d3   : > { %v5835_v26 = vpop.f32.mrf.mxu0  ;;  %v6128_v41 = vpop.f32.mrf.mxu1 }
 0x3d4   : > { %v3958_v23 = vadd.f32 %v6127_v9, %v3893_v62  ;;  %v3980_v28 = vadd.f32 %v3950_v3, %v3531_v0  ;;  %v5836_v34 = vadd.f32 %v5835_v26, %v5834_v5  ;;  %v5796_v9 = vadd.f32 %v8414_v29, %v8412_v6 }
 0x3d5   : > { %v5837_v17 = vpop.f32.mrf.mxu0  ;;  %v3952_v22 = vpop.f32.mrf.mxu1 }
 0x3d6   : > { %v3982_v52 = vadd.f32 %v3958_v23, %v3539_v1  ;;  %3988 = vst [vmem:[%s8294_s5 + $0x8] sm:$0xff] %v3980_v28  ;;  %v3896_v38 = vadd.f32 %v5836_v34, %v8428_v59  ;;  %v3953_v47 = vadd.f32 %v3952_v22, %v3888_v27  ;;  %v3493_v39 = vadd.f32 %v5796_v9, %v8423_v16 }
 0x3d7   : > { %v5838_v43 = vpop.f32.mrf.mxu0  ;;  %v6131_v61 = vpop.f32.mrf.mxu1  ;;  %v4140_v16 = vrot.slane %v8274_v54, %v8725_v11 }
 0x3d8   : > { %3990 = vst [vmem:[%s8294_s5 + $0x48] sm:$0xff] %v3982_v52  ;;  %v3961_v56 = vadd.f32 %v6128_v41, %v3896_v38  ;;  %v3981_v14 = vadd.f32 %v3953_v47, %v3534_v8  ;;  %v5839_v42 = vadd.f32 %v5838_v43, %v5837_v17  ;;  %v3558_v3 = vadd.f32 %v8416_v18, %v3493_v39  ;;  %v8731_v39 = vld [vmem:[#allocation35_spill] sm:$0xff] }
 0x3d9   : > { %v5840_v60 = vpop.f32.mrf.mxu0  ;;  %v3965_v48 = vpop.f32.mrf.mxu1 }
 0x3da   : > { %v3983_v20 = vadd.f32 %v3961_v56, %v3542_v33  ;;  %3989 = vst [vmem:[%s8294_s5 + $0x28] sm:$0xff] %v3981_v14  ;;  %v3901_v49 = vadd.f32 %v5839_v42, %v8428_v59  ;;  %v8726_v33 = vld [vmem:[#allocation26_spill] sm:$0xff]  ;;  %v8727_v14 = vld [vmem:[#allocation25_spill] sm:$0xff] }
 0x3db   : > { %v5841_v53 = vpop.f32.mrf.mxu0  ;;  %v6132_v63 = vpop.f32.mrf.mxu1 }
 0x3dc   : > { %3991 = vst [vmem:[%s8294_s5 + $0x68] sm:$0xff] %v3983_v20  ;;  %v3966_v12 = vadd.f32 %v3965_v48, %v3901_v49  ;;  %v5842_v13 = vadd.f32 %v5841_v53, %v5840_v60  ;;  %v8728_v53 = vld [vmem:[#allocation30_spill] sm:$0xff] }
 0x3dd   : > { %v5843_v32 = vpop.f32.mrf.mxu0  ;;  %v3968_v30 = vpop.f32.mrf.mxu1 }
 0x3de   : > { %v3984_v4 = vadd.f32 %v3966_v12, %v3547_v19  ;;  %v3904_v24 = vadd.f32 %v5842_v13, %v8428_v59  ;;  %v8729_v13 = vld [vmem:[#allocation29_spill] sm:$0xff] }
 0x3df   : > { %v5844_v57 = vpop.f32.mrf.mxu0 }
 0x3e0   : > { %3992 = vst [vmem:[%s8294_s5 + $0x88] sm:$0xff] %v3984_v4  ;;  %v3969_v46 = vadd.f32 %v3968_v30, %v3904_v24  ;;  %v5845_v15 = vadd.f32 %v5844_v57, %v5843_v32 }
 0x3e1   : > { %v5846_v45 = vpop.f32.mrf.mxu0 }
 0x3e2   : > { %v3985_v25 = vadd.f32 %v3969_v46, %v3550_v7  ;;  %v3909_v21 = vadd.f32 %v5845_v15, %v8428_v59  ;;  %v8730_v46 = vld [vmem:[#allocation31_spill] sm:$0xff] }
 0x3e3   : > { %v5847_v55 = vpop.f32.mrf.mxu0 }
 0x3e4   : > { %3993 = vst [vmem:[%s8294_s5 + $0xa8] sm:$0xff] %v3985_v25  ;;  %v3974_v5 = vadd.f32 %v6131_v61, %v3909_v21  ;;  %v5848_v58 = vadd.f32 %v5847_v55, %v5846_v45 }
 0x3e5   : > { %v5877_v0 = vpop.f32.mrf.mxu0 }
 0x3e6   : > { %v3986_v62 = vadd.f32 %v3974_v5, %v3555_v35  ;;  %v3912_v6 = vadd.f32 %v5848_v58, %v8428_v59 }
 0x3e7   : > { %v5878_v29 = vpop.f32.mrf.mxu0 }
 0x3e8   : > { %3994 = vst [vmem:[%s8294_s5 + $0xc8] sm:$0xff] %v3986_v62  ;;  %v3977_v1 = vadd.f32 %v6132_v63, %v3912_v6  ;;  %v5879_v26 = vadd.f32 %v5878_v29, %v5877_v0  ;;  %v8732_v29 = vld [vmem:[#allocation32_spill] sm:$0xff] }
 0x3e9   : > { %v5880_v2 = vpop.f32.mrf.mxu0 }
 0x3ea   : > { %v3987_v37 = vadd.f32 %v3977_v1, %v3558_v3  ;;  %v4320_v27 = vadd.f32 %v5879_v26, %v4140_v16 }
 0x3eb   : > { %v5881_v31 = vpop.f32.mrf.mxu0 }
 0x3ec   : > { %3995 = vst [vmem:[%s8294_s5 + $0xe8] sm:$0xff] %v3987_v37  ;;  %v5882_v34 = vadd.f32 %v5881_v31, %v5880_v2  ;;  %v8733_v37 = vld [vmem:[#allocation38_spill] sm:$0xff] }
 0x3ed   : > { %v5883_v41 = vpop.f32.mrf.mxu0 }
 0x3ee   : > { %v4323_v61 = vadd.f32 %v5882_v34, %v4140_v16  ;;  %v8734_v34 = vsub.s32 4, %v7325_v44 }
 0x3ef   : > { %v5884_v23 = vpop.f32.mrf.mxu0  ;;  %v6151_v28 = vpop.f32.mrf.mxu1 }
 0x3f0   : > { %v5885_v59 = vadd.f32 %v5884_v23, %v5883_v41 }
 0x3f1   : > { %v5886_v17 = vpop.f32.mrf.mxu0  ;;  %v4384_v18 = vpop.f32.mrf.mxu1 }
 0x3f2   : > { %v4328_v22 = vadd.f32 %v5885_v59, %v4140_v16  ;;  %v4385_v8 = vadd.f32 %v4384_v18, %v4320_v27  ;;  %v4576_v59 = vrot.slane %v8274_v54, %v8734_v34 }
 0x3f3   : > { %v5887_v52 = vpop.f32.mrf.mxu0  ;;  %v6152_v38 = vpop.f32.mrf.mxu1 }
 0x3f4   : > { %v4393_v47 = vadd.f32 %v6151_v28, %v4328_v22  ;;  %v4415_v40 = vadd.f32 %v4385_v8, %v8726_v33  ;;  %v5888_v43 = vadd.f32 %v5887_v52, %v5886_v17 }
 0x3f5   : > { %v5889_v36 = vpop.f32.mrf.mxu0  ;;  %v4387_v56 = vpop.f32.mrf.mxu1 }
 0x3f6   : > { %v4417_v42 = vadd.f32 %v4393_v47, %v8727_v14  ;;  %4423 = vst [vmem:[%s8294_s5 + $0x10] sm:$0xff] %v4415_v40  ;;  %v4331_v60 = vadd.f32 %v5888_v43, %v4140_v16  ;;  %v4388_v48 = vadd.f32 %v4387_v56, %v4323_v61 }
 0x3f7   : > { %v5890_v20 = vpop.f32.mrf.mxu0  ;;  %v6155_v49 = vpop.f32.mrf.mxu1 }
 0x3f8   : > { %4425 = vst [vmem:[%s8294_s5 + $0x50] sm:$0xff] %v4417_v42  ;;  %v4396_v51 = vadd.f32 %v6152_v38, %v4331_v60  ;;  %v4416_v63 = vadd.f32 %v4388_v48, %v8728_v53  ;;  %v5891_v19 = vadd.f32 %v5890_v20, %v5889_v36 }
 0x3f9   : > { %v5892_v50 = vpop.f32.mrf.mxu0  ;;  %v4400_v12 = vpop.f32.mrf.mxu1 }
 0x3fa   : > { %v4418_v32 = vadd.f32 %v4396_v51, %v8729_v13  ;;  %4424 = vst [vmem:[%s8294_s5 + $0x30] sm:$0xff] %v4416_v63  ;;  %v4336_v30 = vadd.f32 %v5891_v19, %v4140_v16 }
 0x3fb   : > { %v5893_v4 = vpop.f32.mrf.mxu0  ;;  %v6156_v24 = vpop.f32.mrf.mxu1 }
 0x3fc   : > { %4426 = vst [vmem:[%s8294_s5 + $0x70] sm:$0xff] %v4418_v32  ;;  %v4401_v7 = vadd.f32 %v4400_v12, %v4336_v30  ;;  %v5894_v57 = vadd.f32 %v5893_v4, %v5892_v50 }
 0x3fd   : > { %v5895_v10 = vpop.f32.mrf.mxu0  ;;  %v4403_v9 = vpop.f32.mrf.mxu1 }
 0x3fe   : > { %v4419_v15 = vadd.f32 %v4401_v7, %v8730_v46  ;;  %v4339_v45 = vadd.f32 %v5894_v57, %v4140_v16 }
 0x3ff   : > { %v5896_v25 = vpop.f32.mrf.mxu0 }
 0x400   : > { %4427 = vst [vmem:[%s8294_s5 + $0x90] sm:$0xff] %v4419_v15  ;;  %v4404_v21 = vadd.f32 %v4403_v9, %v4339_v45  ;;  %v5897_v55 = vadd.f32 %v5896_v25, %v5895_v10 }
 0x401   : > { %v5898_v35 = vpop.f32.mrf.mxu0 }
 0x402   : > { %v4420_v5 = vadd.f32 %v4404_v21, %v8731_v39  ;;  %v4344_v58 = vadd.f32 %v5897_v55, %v4140_v16 }
 0x403   : > { %v5899_v0 = vpop.f32.mrf.mxu0 }
 0x404   : > { %4428 = vst [vmem:[%s8294_s5 + $0xb0] sm:$0xff] %v4420_v5  ;;  %v4409_v62 = vadd.f32 %v6155_v49, %v4344_v58  ;;  %v5900_v6 = vadd.f32 %v5899_v0, %v5898_v35 }
 0x406   : > { %v4421_v3 = vadd.f32 %v4409_v62, %v8732_v29  ;;  %v4347_v1 = vadd.f32 %v5900_v6, %v4140_v16 }
 0x408   : > { %4429 = vst [vmem:[%s8294_s5 + $0xd0] sm:$0xff] %v4421_v3  ;;  %v4412_v2 = vadd.f32 %v6156_v24, %v4347_v1 }
 0x40a   : > { %v4422_v31 = vadd.f32 %v4412_v2, %v8733_v37 }
 0x40c   : > { %4430 = vst [vmem:[%s8294_s5 + $0xf0] sm:$0xff] %v4422_v31 }
 0x461   : > { %v5929_v26 = vpop.f32.mrf.mxu0 }
 0x463   : > { %v5930_v11 = vpop.f32.mrf.mxu0 }
 0x464   : > { %v5931_v23 = vadd.f32 %v5930_v11, %v5929_v26 }
 0x465   : > { %v5932_v41 = vpop.f32.mrf.mxu0 }
 0x466   : > { %v4756_v16 = vadd.f32 %v5931_v23, %v4576_v59 }
 0x467   : > { %v5933_v28 = vpop.f32.mrf.mxu0 }
 0x468   : > { %v5934_v18 = vadd.f32 %v5933_v28, %v5932_v41 }
 0x469   : > { %v5935_v27 = vpop.f32.mrf.mxu0 }
 0x46a   : > { %v6175_v17 = vpop.f32.mrf.mxu1  ;;  %v4759_v56 = vadd.f32 %v5934_v18, %v4576_v59 }
 0x46b   : > { %v5936_v22 = vpop.f32.mrf.mxu0 }
 0x46c   : > { %v5937_v8 = vadd.f32 %v5936_v22, %v5935_v27  ;;  %v4820_v52 = vpop.f32.mrf.mxu1 }
 0x46d   : > { %v4821_v38 = vadd.f32 %v4820_v52, %v4756_v16  ;;  %v5938_v47 = vpop.f32.mrf.mxu0 }
 0x46e   : > { %v4764_v40 = vadd.f32 %v5937_v8, %v4576_v59  ;;  %v6176_v43 = vpop.f32.mrf.mxu1 }
 0x46f   : > { %v4851_v61 = vadd.f32 %v4821_v38, %v8726_v33  ;;  %v5939_v36 = vpop.f32.mrf.mxu0 }
 0x470   : > { %v4829_v44 = vadd.f32 %v6175_v17, %v4764_v40  ;;  %v5940_v54 = vadd.f32 %v5939_v36, %v5938_v47  ;;  %v4823_v42 = vpop.f32.mrf.mxu1 }
 0x471   : > { %4859 = vst [vmem:[%s8294_s5 + $0x18] sm:$0xff] %v4851_v61  ;;  %v4824_v60 = vadd.f32 %v4823_v42, %v4759_v56  ;;  %v5941_v48 = vpop.f32.mrf.mxu0 }
 0x472   : > { %v4853_v20 = vadd.f32 %v4829_v44, %v8727_v14  ;;  %v4767_v49 = vadd.f32 %v5940_v54, %v4576_v59  ;;  %v6179_v51 = vpop.f32.mrf.mxu1 }
 0x473   : > { %v4852_v63 = vadd.f32 %v4824_v60, %v8728_v53  ;;  %v5942_v19 = vpop.f32.mrf.mxu0 }
 0x474   : > { %4861 = vst [vmem:[%s8294_s5 + $0x58] sm:$0xff] %v4853_v20  ;;  %v4832_v50 = vadd.f32 %v6176_v43, %v4767_v49  ;;  %v5943_v33 = vadd.f32 %v5942_v19, %v5941_v48  ;;  %v4836_v12 = vpop.f32.mrf.mxu1 }
 0x475   : > { %4860 = vst [vmem:[%s8294_s5 + $0x38] sm:$0xff] %v4852_v63  ;;  %v5944_v32 = vpop.f32.mrf.mxu0 }
 0x476   : > { %v4854_v30 = vadd.f32 %v4832_v50, %v8729_v13  ;;  %v4772_v4 = vadd.f32 %v5943_v33, %v4576_v59  ;;  %v6180_v24 = vpop.f32.mrf.mxu1 }
 0x477   : > { %v5945_v7 = vpop.f32.mrf.mxu0 }
 0x478   : > { %4862 = vst [vmem:[%s8294_s5 + $0x78] sm:$0xff] %v4854_v30  ;;  %v4837_v14 = vadd.f32 %v4836_v12, %v4772_v4  ;;  %v5946_v57 = vadd.f32 %v5945_v7, %v5944_v32  ;;  %v4839_v15 = vpop.f32.mrf.mxu1 }
 0x479   : > { %v5947_v10 = vpop.f32.mrf.mxu0 }
 0x47a   : > { %v4855_v53 = vadd.f32 %v4837_v14, %v8730_v46  ;;  %v4775_v9 = vadd.f32 %v5946_v57, %v4576_v59 }
 0x47b   : > { %v5948_v45 = vpop.f32.mrf.mxu0 }
 0x47c   : > { %4863 = vst [vmem:[%s8294_s5 + $0x98] sm:$0xff] %v4855_v53  ;;  %v4840_v25 = vadd.f32 %v4839_v15, %v4775_v9  ;;  %v5949_v21 = vadd.f32 %v5948_v45, %v5947_v10 }
 0x47d   : > { %v5950_v13 = vpop.f32.mrf.mxu0 }
 0x47e   : > { %v4856_v55 = vadd.f32 %v4840_v25, %v8731_v39  ;;  %v4780_v35 = vadd.f32 %v5949_v21, %v4576_v59 }
 0x47f   : > { %v5951_v5 = vpop.f32.mrf.mxu0 }
 0x480   : > { %4864 = vst [vmem:[%s8294_s5 + $0xb8] sm:$0xff] %v4856_v55  ;;  %v4845_v58 = vadd.f32 %v6179_v51, %v4780_v35  ;;  %v5952_v46 = vadd.f32 %v5951_v5, %v5950_v13 }
 0x482   : > { %v4857_v0 = vadd.f32 %v4845_v58, %v8732_v29  ;;  %v4783_v62 = vadd.f32 %v5952_v46, %v4576_v59 }
 0x484   : > { %4865 = vst [vmem:[%s8294_s5 + $0xd8] sm:$0xff] %v4857_v0  ;;  %v4848_v6 = vadd.f32 %v6180_v24, %v4783_v62 }
 0x486   : > { %v4858_v39 = vadd.f32 %v4848_v6, %v8733_v37 }
 0x488   : > { %4866 = vst [vmem:[%s8294_s5 + $0xf8] sm:$0xff] %v4858_v39 }
 0x489   : > { %6893 = shalt.err (!%p6890_p7)
}
 0x48a   : > { %s6894_s19 = scalar_lea.hbm %s8503_s4, 4096  ;;  %s6898_s7 = scalar_lea.hbm %s8559_s9, 8192 }
 0x48b   : > { %p6895_p8 = scmp.ne.s32.totalorder %s8503_s4, %s6894_s19  ;;  %p6899_p10 = scmp.lt.s32.totalorder %s8503_s4, %s8559_s9 }
 0x48c   : > { %p6900_p9 = scmp.lt.s32.totalorder %s6898_s7, %s6894_s19 }
 0x48d   : > { %p6896_p11 = pnand %p6895_p8, %p8735_p5 }
 0x48e   : > { %p6901_p12 = por %p6900_p9, %p6899_p10 }
 0x48f   : > { %p6897_p2 = pneg %p6896_p11 }
 0x491   : > { %p6902_p13 = pnand %p6901_p12, %p6897_p2 }
 0x493   : > { %6905 = shalt.err (!%p6902_p13)
}
 0x494   : > { %s6983_s16 = smov 512   ;;  %s6984_s20 = smov 32  }
 0x495   : > { %6213 = dma.vmem_to_hbm [thread:$0]  (%p8735_p5), %s8505_s26, 4096, %s8503_s4, %s4868_s23, %s6983_s16, %s6983_s16, %s6984_s20  }
 0x496 PF: > { %s4897_s13 = sand.u32 1, %s6952_s30   ;;  %p8736_p1 = scmp.ne.s32.totalorder %s8631_s29, 0 }
 0x497   : > { %p8737_p4 = scmp.ge.s32.totalorder %s6964_s12, 2  ;;  %s4898_s5 = scalar_lea.sflag [#allocation4], %s4897_s13 }
 0x499   : > { %p6245_p6 = pnand %p8737_p4, %p8736_p1 }
 0x49b   : > { %p6246_p0 = pneg %p6245_p6 }
 0x49d   : > { %6947 = dma.done.wait (%p6246_p0), %s4898_s5, 4096  }
 0x49e   : > { %6949 = vsyncadd (%p6246_p0), %s4898_s5, 4294963200  ;;  %p28_p3 = scmp.ge.s32.totalorder %s7163_s22, 4   ;;  %s8738_s30 = smov %s6956_s10 }
 0x49f   : > { %s8739_s10 = smov %s6960_s11  ;;  %s8740_s11 = smov %s7175_s28 }
 0x4a0   : > { %s8741_s12 = smov %s7163_s22  ;;  %30 = sbr.rel (!%p28_p3) target bundleno = 19 (0x13), region = 146 }
 0x4a5   :  { %4903 = vsyncpa [#allocation3], 1 }
 0x4a6   :  { %4905 = vsyncpa [#allocation3 + $0x1], 1 }
 0x4a7   :  { %4906 = vsyncpa [#allocation6], 1 }
 0x4a8   :  { %4908 = vsyncpa [#allocation6 + $0x1], 1 }
 0x4a9   :  { %4909 = vsyncpa [#allocation9], 1 }
 0x4aa   :  { %4910 = vsyncpa [#allocation12], 1 }
 0x4ab   :  { %4911 = vsyncpa [#allocation15], 1 }
 0x4ac   :  { %4912 = vsyncpa [#allocation4], 1 }
 0x4ad   :  { %4914 = vsyncpa [#allocation4 + $0x1], 1 }

</bundles_post_ra>
